<compile_context>
chip_gen: v6e
topology: v6e:2x2x1
jax: 0.10.0
libtpu: 0.0.40
codegen_flags: <defaults>
</compile_context>

<pallas_src>
import jax
import jax.numpy as jnp
from jax import lax
from jax.experimental import pallas as pl
from jax.experimental.pallas import tpu as pltpu


def _round_up(x, m):
    return ((x + m - 1) // m) * m


# ----------------------------------------------------------------------------
# Fused Pallas kernel: all LSTM layers + time recurrence + FC + sigmoid
# ----------------------------------------------------------------------------
def _sentiment_lstm_kernel(x_ref, w_ref, b_ref, h0_ref, c0_ref,
                           fcw_ref, fcb_ref,
                           out_ref, hN_ref, cN_ref,
                           xh_sc, seq_sc):
    """
    x_ref:   (S, Bp, Hp)        padded time-major embeddings (f32)
    w_ref:   (L, 2*Hp, 4*Hp)    per-layer [W_ih ; W_hh], gate blocks i|f|g|o (bf16)
    b_ref:   (L, 1, 4*Hp)       combined bias b_ih + b_hh per layer (f32)
    h0/c0:   (L, Bp, Hp)        initial state (f32)
    fcw_ref: (Hp, Op)           FC weight, padded (bf16)
    fcb_ref: (1, Op)            FC bias, padded (f32)
    out_ref: (Bp, Op)           sigmoid(FC(last hidden)) (f32)
    hN/cN:   (L, Bp, Hp)        final hidden / cell state (f32)
    xh_sc:   (Bp, 2*Hp)         staging buffer for [x_t | h_prev]
    seq_sc:  (S, Bp, Hp)        inter-layer activation sequence (stays in VMEM)
    """
    S, Bp, Hp = x_ref.shape
    L = hN_ref.shape[0]

    h_fin = None
    for l in range(L):                      # static layer loop (unrolled at trace time)

        def step(t, carry, l=l):
            h_prev, c_prev = carry          # f32 (Bp, Hp), lives in vregs
            x_t = x_ref[t] if l == 0 else seq_sc[t]
            # Stage [x_t | h_prev] so each timestep issues a single MXU matmul
            # against the pre-concatenated [W_ih ; W_hh] weights.
            xh_sc[:, 0:Hp] = x_t
            xh_sc[:, Hp:2 * Hp] = h_prev
            gates = (jnp.dot(xh_sc[...].astype(jnp.bfloat16), w_ref[l],
                             preferred_element_type=jnp.float32)
                     + b_ref[l])            # (Bp, 4Hp), PyTorch gate order i|f|g|o
            i_g = jax.nn.sigmoid(gates[:, 0 * Hp:1 * Hp])
            f_g = jax.nn.sigmoid(gates[:, 1 * Hp:2 * Hp])
            g_g = jnp.tanh(gates[:, 2 * Hp:3 * Hp])
            o_g = jax.nn.sigmoid(gates[:, 3 * Hp:4 * Hp])
            c_new = f_g * c_prev + i_g * g_g
            h_new = o_g * jnp.tanh(c_new)
            if l < L - 1:
                # only intermediate layers' sequences are consumed (by the next layer)
                seq_sc[t] = h_new
            # TODO(synk): inter-layer LSTM dropout only applies in train mode; eval = identity.
            return h_new, c_new

        h_fin, c_fin = lax.fori_loop(
            0, S, step, (h0_ref[l], c0_ref[l]), unroll=True)
        hN_ref[l] = h_fin
        cN_ref[l] = c_fin

    # lstm_out[:, -1, :] == final hidden state of the top layer.
    # nn.Dropout(0.3) is identity in eval mode.
    logits = (jnp.dot(h_fin.astype(jnp.bfloat16), fcw_ref[...],
                      preferred_element_type=jnp.float32)
              + fcb_ref[...])
    out_ref[...] = jax.nn.sigmoid(logits)


def _run_fused_lstm(x_seq_p, W, b, h0_p, c0_p, fc_w, fc_b, Op):
    S, Bp, Hp = x_seq_p.shape
    L = W.shape[0]
    return pl.pallas_call(
        _sentiment_lstm_kernel,
        out_shape=(jax.ShapeDtypeStruct((Bp, Op), jnp.float32),
                   jax.ShapeDtypeStruct((L, Bp, Hp), jnp.float32),
                   jax.ShapeDtypeStruct((L, Bp, Hp), jnp.float32)),
        in_specs=[pl.BlockSpec(memory_space=pltpu.MemorySpace.VMEM)] * 7,
        out_specs=(pl.BlockSpec(memory_space=pltpu.MemorySpace.VMEM),) * 3,
        scratch_shapes=[pltpu.VMEM((Bp, 2 * Hp), jnp.float32),
                        pltpu.VMEM((S, Bp, Hp), jnp.float32)],
    )(x_seq_p, W, b, h0_p, c0_p, fc_w, fc_b)


# ----------------------------------------------------------------------------
# Parameter init (PyTorch-like layout) and packing into the fused/padded layout
# ----------------------------------------------------------------------------
def init_params(key, vocab_size, output_size, embedding_dim, hidden_dim, n_layers):
    keys = jax.random.split(key, 1 + 4 * n_layers + 2)
    k = 1.0 / float(hidden_dim) ** 0.5
    params = {
        "embedding": jax.random.normal(keys[0], (vocab_size, embedding_dim), jnp.float32),
        "w_ih": [], "w_hh": [], "b_ih": [], "b_hh": [],
    }
    idx = 1
    for l in range(n_layers):
        in_dim = embedding_dim if l == 0 else hidden_dim
        params["w_ih"].append(jax.random.uniform(
            keys[idx], (4 * hidden_dim, in_dim), jnp.float32, -k, k)); idx += 1
        params["w_hh"].append(jax.random.uniform(
            keys[idx], (4 * hidden_dim, hidden_dim), jnp.float32, -k, k)); idx += 1
        params["b_ih"].append(jax.random.uniform(
            keys[idx], (4 * hidden_dim,), jnp.float32, -k, k)); idx += 1
        params["b_hh"].append(jax.random.uniform(
            keys[idx], (4 * hidden_dim,), jnp.float32, -k, k)); idx += 1
    params["fc_w"] = jax.random.uniform(
        keys[idx], (output_size, hidden_dim), jnp.float32, -k, k); idx += 1
    params["fc_b"] = jax.random.uniform(
        keys[idx], (output_size,), jnp.float32, -k, k)
    return params


def _place_gates(w, H, Hp):
    """(rows, 4H) -> (rows, 4*Hp): each H-wide gate block placed at a 128-aligned slot."""
    rows = w.shape[0]
    out = jnp.zeros((rows, 4 * Hp), w.dtype)
    for g in range(4):
        out = out.at[:, g * Hp:g * Hp + H].set(w[:, g * H:(g + 1) * H])
    return out


def pack_params(params, hidden_dim, output_size):
    H = hidden_dim
    O = output_size
    E = params["embedding"].shape[1]
    L = len(params["w_ih"])
    Hp = _round_up(max(H, E), 128)   # hidden padded to lane multiple; also holds padded input
    Op = _round_up(O, 128)           # FC output padded for lane-dense stores

    W_list, b_list = [], []
    for l in range(L):
        w_ih_t = params["w_ih"][l].T       # (in_dim, 4H), gate order i|f|g|o
        w_hh_t = params["w_hh"][l].T       # (H, 4H)
        in_dim = w_ih_t.shape[0]
        top = jnp.zeros((Hp, 4 * Hp), jnp.float32).at[:in_dim].set(_place_gates(w_ih_t, H, Hp))
        bot = jnp.zeros((Hp, 4 * Hp), jnp.float32).at[:H].set(_place_gates(w_hh_t, H, Hp))
        W_list.append(jnp.concatenate([top, bot], axis=0))          # (2Hp, 4Hp)
        b_list.append(_place_gates(
            (params["b_ih"][l] + params["b_hh"][l])[None, :], H, Hp))  # (1, 4Hp)

    fc_w_p = jnp.zeros((Hp, Op), jnp.float32).at[:H, :O].set(params["fc_w"].T)
    fc_b_p = jnp.zeros((1, Op), jnp.float32).at[0, :O].set(params["fc_b"])

    return {
        "W": jnp.stack(W_list).astype(jnp.bfloat16),   # (L, 2Hp, 4Hp) bf16 MXU operand
        "b": jnp.stack(b_list),                        # (L, 1, 4Hp)  f32
        "fc_w": fc_w_p.astype(jnp.bfloat16),           # (Hp, Op)     bf16
        "fc_b": fc_b_p,                                # (1, Op)      f32
        "H": H, "O": O, "Hp": Hp, "Op": Op,
    }


# ----------------------------------------------------------------------------
# Model forward (embedding gather + padding glue in plain JAX, one Pallas call)
# ----------------------------------------------------------------------------
def sentiment_rnn_forward(params, packed, x_tokens, hidden):
    H, O, Hp, Op = packed["H"], packed["O"], packed["Hp"], packed["Op"]
    h0_all, c0_all = hidden                       # (L, B, H) each
    L = h0_all.shape[0]
    B, S = x_tokens.shape
    Bp = _round_up(B, 8)

    x_tokens = x_tokens.astype(jnp.int32)                      # x.long()
    embeds = jnp.take(params["embedding"], x_tokens, axis=0)   # (B, S, E)
    x_seq = jnp.transpose(embeds, (1, 0, 2))                   # (S, B, E) time-major
    E = x_seq.shape[-1]

    x_seq_p = jnp.pad(x_seq, ((0, 0), (0, Bp - B), (0, Hp - E)))
    h0_p = jnp.pad(h0_all, ((0, 0), (0, Bp - B), (0, Hp - H)))
    c0_p = jnp.pad(c0_all, ((0, 0), (0, Bp - B), (0, Hp - H)))

    sig_p, hN_p, cN_p = _run_fused_lstm(
        x_seq_p, packed["W"], packed["b"], h0_p, c0_p,
        packed["fc_w"], packed["fc_b"], Op)

    sig_out = sig_p[:B, :O]                                    # (B, output_size)
    new_hidden = (hN_p[:, :B, :H], cN_p[:, :B, :H])            # (L, B, H) each
    return sig_out, new_hidden


# ----------------------------------------------------------------------------
if __name__ == "__main__":
    vocab_size = 50
    output_size = 1
    embedding_dim = 16
    hidden_dim = 32
    n_layers = 2
    batch = 2
    seq = 8

    key = jax.random.PRNGKey(0)
    k_param, k_tok = jax.random.split(key)

    params = init_params(k_param, vocab_size, output_size,
                         embedding_dim, hidden_dim, n_layers)
    packed = pack_params(params, hidden_dim, output_size)

    x_tokens = jax.random.randint(k_tok, (batch, seq), 0, vocab_size, jnp.int32)
    hidden = (jnp.zeros((n_layers, batch, hidden_dim), jnp.float32),
              jnp.zeros((n_layers, batch, hidden_dim), jnp.float32))

    sig_out, new_hidden = sentiment_rnn_forward(params, packed, x_tokens, hidden)
    jax.block_until_ready(sig_out)
    jax.block_until_ready(new_hidden)

    assert sig_out.shape == (batch, output_size)
    assert new_hidden[0].shape == (n_layers, batch, hidden_dim)
    assert new_hidden[1].shape == (n_layers, batch, hidden_dim)
    print("KERNEL_OK")
</pallas_src>

<mosaic_0001>
module attributes {stable_mosaic.version = 11 : i64} {
  func.func @_sentiment_lstm_kernel(%arg0: memref<8x8x128xf32, #tpu.memory_space<vmem>>, %arg1: memref<2x256x512xbf16, #tpu.memory_space<vmem>>, %arg2: memref<2x1x512xf32, #tpu.memory_space<vmem>>, %arg3: memref<2x8x128xf32, #tpu.memory_space<vmem>>, %arg4: memref<2x8x128xf32, #tpu.memory_space<vmem>>, %arg5: memref<128x128xbf16, #tpu.memory_space<vmem>>, %arg6: memref<1x128xf32, #tpu.memory_space<vmem>>, %arg7: memref<8x128xf32, #tpu.memory_space<vmem>>, %arg8: memref<2x8x128xf32, #tpu.memory_space<vmem>>, %arg9: memref<2x8x128xf32, #tpu.memory_space<vmem>>, %arg10: memref<8x256xf32, #tpu.memory_space<vmem>>, %arg11: memref<8x8x128xf32, #tpu.memory_space<vmem>>) attributes {dimension_semantics = [], scalar_prefetch = 0 : i64, scratch_operands = 2 : i64, tpu.core_type = #tpu.core_type<tc>} {
    %c0 = arith.constant 0 : index
    %c0_0 = arith.constant 0 : index
    %c0_1 = arith.constant 0 : index
    %0 = vector.load %arg3[%c0, %c0_0, %c0_1] : memref<2x8x128xf32, #tpu.memory_space<vmem>>, vector<1x8x128xf32>
    %1 = vector.shape_cast %0 : vector<1x8x128xf32> to vector<8x128xf32>
    %c0_2 = arith.constant 0 : index
    %c0_3 = arith.constant 0 : index
    %c0_4 = arith.constant 0 : index
    %2 = vector.load %arg4[%c0_2, %c0_3, %c0_4] : memref<2x8x128xf32, #tpu.memory_space<vmem>>, vector<1x8x128xf32>
    %3 = vector.shape_cast %2 : vector<1x8x128xf32> to vector<8x128xf32>
    %c0_i32 = arith.constant 0 : i32
    %4 = arith.index_cast %c0_i32 : i32 to index
    %c0_5 = arith.constant 0 : index
    %c0_6 = arith.constant 0 : index
    %5 = vector.load %arg0[%4, %c0_5, %c0_6] : memref<8x8x128xf32, #tpu.memory_space<vmem>>, vector<1x8x128xf32>
    %6 = vector.shape_cast %5 : vector<1x8x128xf32> to vector<8x128xf32>
    %c0_7 = arith.constant 0 : index
    %c0_8 = arith.constant 0 : index
    %7 = vector.load %arg10[%c0_7, %c0_8] : memref<8x256xf32, #tpu.memory_space<vmem>>, vector<8x128xf32>
    tpu.vector_store %arg10[%c0_7, %c0_8], %6 {strides = array<i32>} : memref<8x256xf32, #tpu.memory_space<vmem>>, vector<8x128xf32>,
    %c0_9 = arith.constant 0 : index
    %c128 = arith.constant 128 : index
    %8 = vector.load %arg10[%c0_9, %c128] : memref<8x256xf32, #tpu.memory_space<vmem>>, vector<8x128xf32>
    tpu.vector_store %arg10[%c0_9, %c128], %1 {strides = array<i32>} : memref<8x256xf32, #tpu.memory_space<vmem>>, vector<8x128xf32>,
    %c0_10 = arith.constant 0 : index
    %c0_11 = arith.constant 0 : index
    %9 = vector.load %arg10[%c0_10, %c0_11] : memref<8x256xf32, #tpu.memory_space<vmem>>, vector<8x256xf32>
    %10 = arith.truncf %9 : vector<8x256xf32> to vector<8x256xbf16>
    %c0_12 = arith.constant 0 : index
    %c0_13 = arith.constant 0 : index
    %c0_14 = arith.constant 0 : index
    %11 = vector.load %arg1[%c0_12, %c0_13, %c0_14] : memref<2x256x512xbf16, #tpu.memory_space<vmem>>, vector<1x256x512xbf16>
    %12 = vector.shape_cast %11 : vector<1x256x512xbf16> to vector<256x512xbf16>
    %cst = arith.constant dense<0.000000e+00> : vector<8x512xf32>
    %13 = tpu.matmul %10, %12, %cst {dimension_numbers = #tpu.dot_dimension_numbers<[1], [0], [0], [1], [0, 0, 1, 1], [], []>} : vector<8x256xbf16>, vector<256x512xbf16>, vector<8x512xf32> -> vector<8x512xf32>
    %c0_15 = arith.constant 0 : index
    %c0_16 = arith.constant 0 : index
    %c0_17 = arith.constant 0 : index
    %14 = vector.load %arg2[%c0_15, %c0_16, %c0_17] : memref<2x1x512xf32, #tpu.memory_space<vmem>>, vector<1x1x512xf32>
    %15 = vector.shape_cast %14 : vector<1x1x512xf32> to vector<1x512xf32>
    %16 = vector.broadcast %15 : vector<1x512xf32> to vector<8x512xf32>
    %17 = arith.addf %13, %16 : vector<8x512xf32>
    %18 = vector.extract_strided_slice %17 {offsets = [0, 0], sizes = [8, 128], strides = [1, 1]} : vector<8x512xf32> to vector<8x128xf32>
    %19 = arith.negf %18 : vector<8x128xf32>
    %20 = math.exp %19 : vector<8x128xf32>
    %cst_18 = arith.constant 1.000000e+00 : f32
    %21 = vector.broadcast %cst_18 : f32 to vector<8x128xf32>
    %22 = arith.addf %21, %20 : vector<8x128xf32>
    %23 = arith.divf %21, %22 : vector<8x128xf32>
    %24 = vector.extract_strided_slice %17 {offsets = [0, 128], sizes = [8, 128], strides = [1, 1]} : vector<8x512xf32> to vector<8x128xf32>
    %25 = arith.negf %24 : vector<8x128xf32>
    %26 = math.exp %25 : vector<8x128xf32>
    %cst_19 = arith.constant 1.000000e+00 : f32
    %27 = vector.broadcast %cst_19 : f32 to vector<8x128xf32>
    %28 = arith.addf %27, %26 : vector<8x128xf32>
    %29 = arith.divf %27, %28 : vector<8x128xf32>
    %30 = vector.extract_strided_slice %17 {offsets = [0, 256], sizes = [8, 128], strides = [1, 1]} : vector<8x512xf32> to vector<8x128xf32>
    %31 = math.tanh %30 : vector<8x128xf32>
    %32 = vector.extract_strided_slice %17 {offsets = [0, 384], sizes = [8, 128], strides = [1, 1]} : vector<8x512xf32> to vector<8x128xf32>
    %33 = arith.negf %32 : vector<8x128xf32>
    %34 = math.exp %33 : vector<8x128xf32>
    %cst_20 = arith.constant 1.000000e+00 : f32
    %35 = vector.broadcast %cst_20 : f32 to vector<8x128xf32>
    %36 = arith.addf %35, %34 : vector<8x128xf32>
    %37 = arith.divf %35, %36 : vector<8x128xf32>
    %38 = arith.mulf %29, %3 : vector<8x128xf32>
    %39 = arith.mulf %23, %31 : vector<8x128xf32>
    %40 = arith.addf %38, %39 : vector<8x128xf32>
    %41 = math.tanh %40 : vector<8x128xf32>
    %42 = arith.mulf %37, %41 : vector<8x128xf32>
    %43 = arith.index_cast %c0_i32 : i32 to index
    %c0_21 = arith.constant 0 : index
    %c0_22 = arith.constant 0 : index
    %44 = vector.load %arg11[%43, %c0_21, %c0_22] : memref<8x8x128xf32, #tpu.memory_space<vmem>>, vector<1x8x128xf32>
    %45 = vector.shape_cast %44 : vector<1x8x128xf32> to vector<8x128xf32>
    %46 = vector.shape_cast %42 : vector<8x128xf32> to vector<1x8x128xf32>
    tpu.vector_store %arg11[%43, %c0_21, %c0_22], %46 {strides = array<i32>} : memref<8x8x128xf32, #tpu.memory_space<vmem>>, vector<1x8x128xf32>,
    %c1_i32 = arith.constant 1 : i32
    %47 = arith.index_cast %c1_i32 : i32 to index
    %c0_23 = arith.constant 0 : index
    %c0_24 = arith.constant 0 : index
    %48 = vector.load %arg0[%47, %c0_23, %c0_24] : memref<8x8x128xf32, #tpu.memory_space<vmem>>, vector<1x8x128xf32>
    %49 = vector.shape_cast %48 : vector<1x8x128xf32> to vector<8x128xf32>
    %c0_25 = arith.constant 0 : index
    %c0_26 = arith.constant 0 : index
    %50 = vector.load %arg10[%c0_25, %c0_26] : memref<8x256xf32, #tpu.memory_space<vmem>>, vector<8x128xf32>
    tpu.vector_store %arg10[%c0_25, %c0_26], %49 {strides = array<i32>} : memref<8x256xf32, #tpu.memory_space<vmem>>, vector<8x128xf32>,
    %c0_27 = arith.constant 0 : index
    %c128_28 = arith.constant 128 : index
    %51 = vector.load %arg10[%c0_27, %c128_28] : memref<8x256xf32, #tpu.memory_space<vmem>>, vector<8x128xf32>
    tpu.vector_store %arg10[%c0_27, %c128_28], %42 {strides = array<i32>} : memref<8x256xf32, #tpu.memory_space<vmem>>, vector<8x128xf32>,
    %c0_29 = arith.constant 0 : index
    %c0_30 = arith.constant 0 : index
    %52 = vector.load %arg10[%c0_29, %c0_30] : memref<8x256xf32, #tpu.memory_space<vmem>>, vector<8x256xf32>
    %53 = arith.truncf %52 : vector<8x256xf32> to vector<8x256xbf16>
    %c0_31 = arith.constant 0 : index
    %c0_32 = arith.constant 0 : index
    %c0_33 = arith.constant 0 : index
    %54 = vector.load %arg1[%c0_31, %c0_32, %c0_33] : memref<2x256x512xbf16, #tpu.memory_space<vmem>>, vector<1x256x512xbf16>
    %55 = vector.shape_cast %54 : vector<1x256x512xbf16> to vector<256x512xbf16>
    %cst_34 = arith.constant dense<0.000000e+00> : vector<8x512xf32>
    %56 = tpu.matmul %53, %55, %cst_34 {dimension_numbers = #tpu.dot_dimension_numbers<[1], [0], [0], [1], [0, 0, 1, 1], [], []>} : vector<8x256xbf16>, vector<256x512xbf16>, vector<8x512xf32> -> vector<8x512xf32>
    %c0_35 = arith.constant 0 : index
    %c0_36 = arith.constant 0 : index
    %c0_37 = arith.constant 0 : index
    %57 = vector.load %arg2[%c0_35, %c0_36, %c0_37] : memref<2x1x512xf32, #tpu.memory_space<vmem>>, vector<1x1x512xf32>
    %58 = vector.shape_cast %57 : vector<1x1x512xf32> to vector<1x512xf32>
    %59 = vector.broadcast %58 : vector<1x512xf32> to vector<8x512xf32>
    %60 = arith.addf %56, %59 : vector<8x512xf32>
    %61 = vector.extract_strided_slice %60 {offsets = [0, 0], sizes = [8, 128], strides = [1, 1]} : vector<8x512xf32> to vector<8x128xf32>
    %62 = arith.negf %61 : vector<8x128xf32>
    %63 = math.exp %62 : vector<8x128xf32>
    %cst_38 = arith.constant 1.000000e+00 : f32
    %64 = vector.broadcast %cst_38 : f32 to vector<8x128xf32>
    %65 = arith.addf %64, %63 : vector<8x128xf32>
    %66 = arith.divf %64, %65 : vector<8x128xf32>
    %67 = vector.extract_strided_slice %60 {offsets = [0, 128], sizes = [8, 128], strides = [1, 1]} : vector<8x512xf32> to vector<8x128xf32>
    %68 = arith.negf %67 : vector<8x128xf32>
    %69 = math.exp %68 : vector<8x128xf32>
    %cst_39 = arith.constant 1.000000e+00 : f32
    %70 = vector.broadcast %cst_39 : f32 to vector<8x128xf32>
    %71 = arith.addf %70, %69 : vector<8x128xf32>
    %72 = arith.divf %70, %71 : vector<8x128xf32>
    %73 = vector.extract_strided_slice %60 {offsets = [0, 256], sizes = [8, 128], strides = [1, 1]} : vector<8x512xf32> to vector<8x128xf32>
    %74 = math.tanh %73 : vector<8x128xf32>
    %75 = vector.extract_strided_slice %60 {offsets = [0, 384], sizes = [8, 128], strides = [1, 1]} : vector<8x512xf32> to vector<8x128xf32>
    %76 = arith.negf %75 : vector<8x128xf32>
    %77 = math.exp %76 : vector<8x128xf32>
    %cst_40 = arith.constant 1.000000e+00 : f32
    %78 = vector.broadcast %cst_40 : f32 to vector<8x128xf32>
    %79 = arith.addf %78, %77 : vector<8x128xf32>
    %80 = arith.divf %78, %79 : vector<8x128xf32>
    %81 = arith.mulf %72, %40 : vector<8x128xf32>
    %82 = arith.mulf %66, %74 : vector<8x128xf32>
    %83 = arith.addf %81, %82 : vector<8x128xf32>
    %84 = math.tanh %83 : vector<8x128xf32>
    %85 = arith.mulf %80, %84 : vector<8x128xf32>
    %86 = arith.index_cast %c1_i32 : i32 to index
    %c0_41 = arith.constant 0 : index
    %c0_42 = arith.constant 0 : index
    %87 = vector.load %arg11[%86, %c0_41, %c0_42] : memref<8x8x128xf32, #tpu.memory_space<vmem>>, vector<1x8x128xf32>
    %88 = vector.shape_cast %87 : vector<1x8x128xf32> to vector<8x128xf32>
    %89 = vector.shape_cast %85 : vector<8x128xf32> to vector<1x8x128xf32>
    tpu.vector_store %arg11[%86, %c0_41, %c0_42], %89 {strides = array<i32>} : memref<8x8x128xf32, #tpu.memory_space<vmem>>, vector<1x8x128xf32>,
    %c2_i32 = arith.constant 2 : i32
    %90 = arith.index_cast %c2_i32 : i32 to index
    %c0_43 = arith.constant 0 : index
    %c0_44 = arith.constant 0 : index
    %91 = vector.load %arg0[%90, %c0_43, %c0_44] : memref<8x8x128xf32, #tpu.memory_space<vmem>>, vector<1x8x128xf32>
    %92 = vector.shape_cast %91 : vector<1x8x128xf32> to vector<8x128xf32>
    %c0_45 = arith.constant 0 : index
    %c0_46 = arith.constant 0 : index
    %93 = vector.load %arg10[%c0_45, %c0_46] : memref<8x256xf32, #tpu.memory_space<vmem>>, vector<8x128xf32>
    tpu.vector_store %arg10[%c0_45, %c0_46], %92 {strides = array<i32>} : memref<8x256xf32, #tpu.memory_space<vmem>>, vector<8x128xf32>,
    %c0_47 = arith.constant 0 : index
    %c128_48 = arith.constant 128 : index
    %94 = vector.load %arg10[%c0_47, %c128_48] : memref<8x256xf32, #tpu.memory_space<vmem>>, vector<8x128xf32>
    tpu.vector_store %arg10[%c0_47, %c128_48], %85 {strides = array<i32>} : memref<8x256xf32, #tpu.memory_space<vmem>>, vector<8x128xf32>,
    %c0_49 = arith.constant 0 : index
    %c0_50 = arith.constant 0 : index
    %95 = vector.load %arg10[%c0_49, %c0_50] : memref<8x256xf32, #tpu.memory_space<vmem>>, vector<8x256xf32>
    %96 = arith.truncf %95 : vector<8x256xf32> to vector<8x256xbf16>
    %c0_51 = arith.constant 0 : index
    %c0_52 = arith.constant 0 : index
    %c0_53 = arith.constant 0 : index
    %97 = vector.load %arg1[%c0_51, %c0_52, %c0_53] : memref<2x256x512xbf16, #tpu.memory_space<vmem>>, vector<1x256x512xbf16>
    %98 = vector.shape_cast %97 : vector<1x256x512xbf16> to vector<256x512xbf16>
    %cst_54 = arith.constant dense<0.000000e+00> : vector<8x512xf32>
    %99 = tpu.matmul %96, %98, %cst_54 {dimension_numbers = #tpu.dot_dimension_numbers<[1], [0], [0], [1], [0, 0, 1, 1], [], []>} : vector<8x256xbf16>, vector<256x512xbf16>, vector<8x512xf32> -> vector<8x512xf32>
    %c0_55 = arith.constant 0 : index
    %c0_56 = arith.constant 0 : index
    %c0_57 = arith.constant 0 : index
    %100 = vector.load %arg2[%c0_55, %c0_56, %c0_57] : memref<2x1x512xf32, #tpu.memory_space<vmem>>, vector<1x1x512xf32>
    %101 = vector.shape_cast %100 : vector<1x1x512xf32> to vector<1x512xf32>
    %102 = vector.broadcast %101 : vector<1x512xf32> to vector<8x512xf32>
    %103 = arith.addf %99, %102 : vector<8x512xf32>
    %104 = vector.extract_strided_slice %103 {offsets = [0, 0], sizes = [8, 128], strides = [1, 1]} : vector<8x512xf32> to vector<8x128xf32>
    %105 = arith.negf %104 : vector<8x128xf32>
    %106 = math.exp %105 : vector<8x128xf32>
    %cst_58 = arith.constant 1.000000e+00 : f32
    %107 = vector.broadcast %cst_58 : f32 to vector<8x128xf32>
    %108 = arith.addf %107, %106 : vector<8x128xf32>
    %109 = arith.divf %107, %108 : vector<8x128xf32>
    %110 = vector.extract_strided_slice %103 {offsets = [0, 128], sizes = [8, 128], strides = [1, 1]} : vector<8x512xf32> to vector<8x128xf32>
    %111 = arith.negf %110 : vector<8x128xf32>
    %112 = math.exp %111 : vector<8x128xf32>
    %cst_59 = arith.constant 1.000000e+00 : f32
    %113 = vector.broadcast %cst_59 : f32 to vector<8x128xf32>
    %114 = arith.addf %113, %112 : vector<8x128xf32>
    %115 = arith.divf %113, %114 : vector<8x128xf32>
    %116 = vector.extract_strided_slice %103 {offsets = [0, 256], sizes = [8, 128], strides = [1, 1]} : vector<8x512xf32> to vector<8x128xf32>
    %117 = math.tanh %116 : vector<8x128xf32>
    %118 = vector.extract_strided_slice %103 {offsets = [0, 384], sizes = [8, 128], strides = [1, 1]} : vector<8x512xf32> to vector<8x128xf32>
    %119 = arith.negf %118 : vector<8x128xf32>
    %120 = math.exp %119 : vector<8x128xf32>
    %cst_60 = arith.constant 1.000000e+00 : f32
    %121 = vector.broadcast %cst_60 : f32 to vector<8x128xf32>
    %122 = arith.addf %121, %120 : vector<8x128xf32>
    %123 = arith.divf %121, %122 : vector<8x128xf32>
    %124 = arith.mulf %115, %83 : vector<8x128xf32>
    %125 = arith.mulf %109, %117 : vector<8x128xf32>
    %126 = arith.addf %124, %125 : vector<8x128xf32>
    %127 = math.tanh %126 : vector<8x128xf32>
    %128 = arith.mulf %123, %127 : vector<8x128xf32>
    %129 = arith.index_cast %c2_i32 : i32 to index
    %c0_61 = arith.constant 0 : index
    %c0_62 = arith.constant 0 : index
    %130 = vector.load %arg11[%129, %c0_61, %c0_62] : memref<8x8x128xf32, #tpu.memory_space<vmem>>, vector<1x8x128xf32>
    %131 = vector.shape_cast %130 : vector<1x8x128xf32> to vector<8x128xf32>
    %132 = vector.shape_cast %128 : vector<8x128xf32> to vector<1x8x128xf32>
    tpu.vector_store %arg11[%129, %c0_61, %c0_62], %132 {strides = array<i32>} : memref<8x8x128xf32, #tpu.memory_space<vmem>>, vector<1x8x128xf32>,
    %c3_i32 = arith.constant 3 : i32
    %133 = arith.index_cast %c3_i32 : i32 to index
    %c0_63 = arith.constant 0 : index
    %c0_64 = arith.constant 0 : index
    %134 = vector.load %arg0[%133, %c0_63, %c0_64] : memref<8x8x128xf32, #tpu.memory_space<vmem>>, vector<1x8x128xf32>
    %135 = vector.shape_cast %134 : vector<1x8x128xf32> to vector<8x128xf32>
    %c0_65 = arith.constant 0 : index
    %c0_66 = arith.constant 0 : index
    %136 = vector.load %arg10[%c0_65, %c0_66] : memref<8x256xf32, #tpu.memory_space<vmem>>, vector<8x128xf32>
    tpu.vector_store %arg10[%c0_65, %c0_66], %135 {strides = array<i32>} : memref<8x256xf32, #tpu.memory_space<vmem>>, vector<8x128xf32>,
    %c0_67 = arith.constant 0 : index
    %c128_68 = arith.constant 128 : index
    %137 = vector.load %arg10[%c0_67, %c128_68] : memref<8x256xf32, #tpu.memory_space<vmem>>, vector<8x128xf32>
    tpu.vector_store %arg10[%c0_67, %c128_68], %128 {strides = array<i32>} : memref<8x256xf32, #tpu.memory_space<vmem>>, vector<8x128xf32>,
    %c0_69 = arith.constant 0 : index
    %c0_70 = arith.constant 0 : index
    %138 = vector.load %arg10[%c0_69, %c0_70] : memref<8x256xf32, #tpu.memory_space<vmem>>, vector<8x256xf32>
    %139 = arith.truncf %138 : vector<8x256xf32> to vector<8x256xbf16>
    %c0_71 = arith.constant 0 : index
    %c0_72 = arith.constant 0 : index
    %c0_73 = arith.constant 0 : index
    %140 = vector.load %arg1[%c0_71, %c0_72, %c0_73] : memref<2x256x512xbf16, #tpu.memory_space<vmem>>, vector<1x256x512xbf16>
    %141 = vector.shape_cast %140 : vector<1x256x512xbf16> to vector<256x512xbf16>
    %cst_74 = arith.constant dense<0.000000e+00> : vector<8x512xf32>
    %142 = tpu.matmul %139, %141, %cst_74 {dimension_numbers = #tpu.dot_dimension_numbers<[1], [0], [0], [1], [0, 0, 1, 1], [], []>} : vector<8x256xbf16>, vector<256x512xbf16>, vector<8x512xf32> -> vector<8x512xf32>
    %c0_75 = arith.constant 0 : index
    %c0_76 = arith.constant 0 : index
    %c0_77 = arith.constant 0 : index
    %143 = vector.load %arg2[%c0_75, %c0_76, %c0_77] : memref<2x1x512xf32, #tpu.memory_space<vmem>>, vector<1x1x512xf32>
    %144 = vector.shape_cast %143 : vector<1x1x512xf32> to vector<1x512xf32>
    %145 = vector.broadcast %144 : vector<1x512xf32> to vector<8x512xf32>
    %146 = arith.addf %142, %145 : vector<8x512xf32>
    %147 = vector.extract_strided_slice %146 {offsets = [0, 0], sizes = [8, 128], strides = [1, 1]} : vector<8x512xf32> to vector<8x128xf32>
    %148 = arith.negf %147 : vector<8x128xf32>
    %149 = math.exp %148 : vector<8x128xf32>
    %cst_78 = arith.constant 1.000000e+00 : f32
    %150 = vector.broadcast %cst_78 : f32 to vector<8x128xf32>
    %151 = arith.addf %150, %149 : vector<8x128xf32>
    %152 = arith.divf %150, %151 : vector<8x128xf32>
    %153 = vector.extract_strided_slice %146 {offsets = [0, 128], sizes = [8, 128], strides = [1, 1]} : vector<8x512xf32> to vector<8x128xf32>
    %154 = arith.negf %153 : vector<8x128xf32>
    %155 = math.exp %154 : vector<8x128xf32>
    %cst_79 = arith.constant 1.000000e+00 : f32
    %156 = vector.broadcast %cst_79 : f32 to vector<8x128xf32>
    %157 = arith.addf %156, %155 : vector<8x128xf32>
    %158 = arith.divf %156, %157 : vector<8x128xf32>
    %159 = vector.extract_strided_slice %146 {offsets = [0, 256], sizes = [8, 128], strides = [1, 1]} : vector<8x512xf32> to vector<8x128xf32>
    %160 = math.tanh %159 : vector<8x128xf32>
    %161 = vector.extract_strided_slice %146 {offsets = [0, 384], sizes = [8, 128], strides = [1, 1]} : vector<8x512xf32> to vector<8x128xf32>
    %162 = arith.negf %161 : vector<8x128xf32>
    %163 = math.exp %162 : vector<8x128xf32>
    %cst_80 = arith.constant 1.000000e+00 : f32
    %164 = vector.broadcast %cst_80 : f32 to vector<8x128xf32>
    %165 = arith.addf %164, %163 : vector<8x128xf32>
    %166 = arith.divf %164, %165 : vector<8x128xf32>
    %167 = arith.mulf %158, %126 : vector<8x128xf32>
    %168 = arith.mulf %152, %160 : vector<8x128xf32>
    %169 = arith.addf %167, %168 : vector<8x128xf32>
    %170 = math.tanh %169 : vector<8x128xf32>
    %171 = arith.mulf %166, %170 : vector<8x128xf32>
    %172 = arith.index_cast %c3_i32 : i32 to index
    %c0_81 = arith.constant 0 : index
    %c0_82 = arith.constant 0 : index
    %173 = vector.load %arg11[%172, %c0_81, %c0_82] : memref<8x8x128xf32, #tpu.memory_space<vmem>>, vector<1x8x128xf32>
    %174 = vector.shape_cast %173 : vector<1x8x128xf32> to vector<8x128xf32>
    %175 = vector.shape_cast %171 : vector<8x128xf32> to vector<1x8x128xf32>
    tpu.vector_store %arg11[%172, %c0_81, %c0_82], %175 {strides = array<i32>} : memref<8x8x128xf32, #tpu.memory_space<vmem>>, vector<1x8x128xf32>,
    %c4_i32 = arith.constant 4 : i32
    %176 = arith.index_cast %c4_i32 : i32 to index
    %c0_83 = arith.constant 0 : index
    %c0_84 = arith.constant 0 : index
    %177 = vector.load %arg0[%176, %c0_83, %c0_84] : memref<8x8x128xf32, #tpu.memory_space<vmem>>, vector<1x8x128xf32>
    %178 = vector.shape_cast %177 : vector<1x8x128xf32> to vector<8x128xf32>
    %c0_85 = arith.constant 0 : index
    %c0_86 = arith.constant 0 : index
    %179 = vector.load %arg10[%c0_85, %c0_86] : memref<8x256xf32, #tpu.memory_space<vmem>>, vector<8x128xf32>
    tpu.vector_store %arg10[%c0_85, %c0_86], %178 {strides = array<i32>} : memref<8x256xf32, #tpu.memory_space<vmem>>, vector<8x128xf32>,
    %c0_87 = arith.constant 0 : index
    %c128_88 = arith.constant 128 : index
    %180 = vector.load %arg10[%c0_87, %c128_88] : memref<8x256xf32, #tpu.memory_space<vmem>>, vector<8x128xf32>
    tpu.vector_store %arg10[%c0_87, %c128_88], %171 {strides = array<i32>} : memref<8x256xf32, #tpu.memory_space<vmem>>, vector<8x128xf32>,
    %c0_89 = arith.constant 0 : index
    %c0_90 = arith.constant 0 : index
    %181 = vector.load %arg10[%c0_89, %c0_90] : memref<8x256xf32, #tpu.memory_space<vmem>>, vector<8x256xf32>
    %182 = arith.truncf %181 : vector<8x256xf32> to vector<8x256xbf16>
    %c0_91 = arith.constant 0 : index
    %c0_92 = arith.constant 0 : index
    %c0_93 = arith.constant 0 : index
    %183 = vector.load %arg1[%c0_91, %c0_92, %c0_93] : memref<2x256x512xbf16, #tpu.memory_space<vmem>>, vector<1x256x512xbf16>
    %184 = vector.shape_cast %183 : vector<1x256x512xbf16> to vector<256x512xbf16>
    %cst_94 = arith.constant dense<0.000000e+00> : vector<8x512xf32>
    %185 = tpu.matmul %182, %184, %cst_94 {dimension_numbers = #tpu.dot_dimension_numbers<[1], [0], [0], [1], [0, 0, 1, 1], [], []>} : vector<8x256xbf16>, vector<256x512xbf16>, vector<8x512xf32> -> vector<8x512xf32>
    %c0_95 = arith.constant 0 : index
    %c0_96 = arith.constant 0 : index
    %c0_97 = arith.constant 0 : index
    %186 = vector.load %arg2[%c0_95, %c0_96, %c0_97] : memref<2x1x512xf32, #tpu.memory_space<vmem>>, vector<1x1x512xf32>
    %187 = vector.shape_cast %186 : vector<1x1x512xf32> to vector<1x512xf32>
    %188 = vector.broadcast %187 : vector<1x512xf32> to vector<8x512xf32>
    %189 = arith.addf %185, %188 : vector<8x512xf32>
    %190 = vector.extract_strided_slice %189 {offsets = [0, 0], sizes = [8, 128], strides = [1, 1]} : vector<8x512xf32> to vector<8x128xf32>
    %191 = arith.negf %190 : vector<8x128xf32>
    %192 = math.exp %191 : vector<8x128xf32>
    %cst_98 = arith.constant 1.000000e+00 : f32
    %193 = vector.broadcast %cst_98 : f32 to vector<8x128xf32>
    %194 = arith.addf %193, %192 : vector<8x128xf32>
    %195 = arith.divf %193, %194 : vector<8x128xf32>
    %196 = vector.extract_strided_slice %189 {offsets = [0, 128], sizes = [8, 128], strides = [1, 1]} : vector<8x512xf32> to vector<8x128xf32>
    %197 = arith.negf %196 : vector<8x128xf32>
    %198 = math.exp %197 : vector<8x128xf32>
    %cst_99 = arith.constant 1.000000e+00 : f32
    %199 = vector.broadcast %cst_99 : f32 to vector<8x128xf32>
    %200 = arith.addf %199, %198 : vector<8x128xf32>
    %201 = arith.divf %199, %200 : vector<8x128xf32>
    %202 = vector.extract_strided_slice %189 {offsets = [0, 256], sizes = [8, 128], strides = [1, 1]} : vector<8x512xf32> to vector<8x128xf32>
    %203 = math.tanh %202 : vector<8x128xf32>
    %204 = vector.extract_strided_slice %189 {offsets = [0, 384], sizes = [8, 128], strides = [1, 1]} : vector<8x512xf32> to vector<8x128xf32>
    %205 = arith.negf %204 : vector<8x128xf32>
    %206 = math.exp %205 : vector<8x128xf32>
    %cst_100 = arith.constant 1.000000e+00 : f32
    %207 = vector.broadcast %cst_100 : f32 to vector<8x128xf32>
    %208 = arith.addf %207, %206 : vector<8x128xf32>
    %209 = arith.divf %207, %208 : vector<8x128xf32>
    %210 = arith.mulf %201, %169 : vector<8x128xf32>
    %211 = arith.mulf %195, %203 : vector<8x128xf32>
    %212 = arith.addf %210, %211 : vector<8x128xf32>
    %213 = math.tanh %212 : vector<8x128xf32>
    %214 = arith.mulf %209, %213 : vector<8x128xf32>
    %215 = arith.index_cast %c4_i32 : i32 to index
    %c0_101 = arith.constant 0 : index
    %c0_102 = arith.constant 0 : index
    %216 = vector.load %arg11[%215, %c0_101, %c0_102] : memref<8x8x128xf32, #tpu.memory_space<vmem>>, vector<1x8x128xf32>
    %217 = vector.shape_cast %216 : vector<1x8x128xf32> to vector<8x128xf32>
    %218 = vector.shape_cast %214 : vector<8x128xf32> to vector<1x8x128xf32>
    tpu.vector_store %arg11[%215, %c0_101, %c0_102], %218 {strides = array<i32>} : memref<8x8x128xf32, #tpu.memory_space<vmem>>, vector<1x8x128xf32>,
    %c5_i32 = arith.constant 5 : i32
    %219 = arith.index_cast %c5_i32 : i32 to index
    %c0_103 = arith.constant 0 : index
    %c0_104 = arith.constant 0 : index
    %220 = vector.load %arg0[%219, %c0_103, %c0_104] : memref<8x8x128xf32, #tpu.memory_space<vmem>>, vector<1x8x128xf32>
    %221 = vector.shape_cast %220 : vector<1x8x128xf32> to vector<8x128xf32>
    %c0_105 = arith.constant 0 : index
    %c0_106 = arith.constant 0 : index
    %222 = vector.load %arg10[%c0_105, %c0_106] : memref<8x256xf32, #tpu.memory_space<vmem>>, vector<8x128xf32>
    tpu.vector_store %arg10[%c0_105, %c0_106], %221 {strides = array<i32>} : memref<8x256xf32, #tpu.memory_space<vmem>>, vector<8x128xf32>,
    %c0_107 = arith.constant 0 : index
    %c128_108 = arith.constant 128 : index
    %223 = vector.load %arg10[%c0_107, %c128_108] : memref<8x256xf32, #tpu.memory_space<vmem>>, vector<8x128xf32>
    tpu.vector_store %arg10[%c0_107, %c128_108], %214 {strides = array<i32>} : memref<8x256xf32, #tpu.memory_space<vmem>>, vector<8x128xf32>,
    %c0_109 = arith.constant 0 : index
    %c0_110 = arith.constant 0 : index
    %224 = vector.load %arg10[%c0_109, %c0_110] : memref<8x256xf32, #tpu.memory_space<vmem>>, vector<8x256xf32>
    %225 = arith.truncf %224 : vector<8x256xf32> to vector<8x256xbf16>
    %c0_111 = arith.constant 0 : index
    %c0_112 = arith.constant 0 : index
    %c0_113 = arith.constant 0 : index
    %226 = vector.load %arg1[%c0_111, %c0_112, %c0_113] : memref<2x256x512xbf16, #tpu.memory_space<vmem>>, vector<1x256x512xbf16>
    %227 = vector.shape_cast %226 : vector<1x256x512xbf16> to vector<256x512xbf16>
    %cst_114 = arith.constant dense<0.000000e+00> : vector<8x512xf32>
    %228 = tpu.matmul %225, %227, %cst_114 {dimension_numbers = #tpu.dot_dimension_numbers<[1], [0], [0], [1], [0, 0, 1, 1], [], []>} : vector<8x256xbf16>, vector<256x512xbf16>, vector<8x512xf32> -> vector<8x512xf32>
    %c0_115 = arith.constant 0 : index
    %c0_116 = arith.constant 0 : index
    %c0_117 = arith.constant 0 : index
    %229 = vector.load %arg2[%c0_115, %c0_116, %c0_117] : memref<2x1x512xf32, #tpu.memory_space<vmem>>, vector<1x1x512xf32>
    %230 = vector.shape_cast %229 : vector<1x1x512xf32> to vector<1x512xf32>
    %231 = vector.broadcast %230 : vector<1x512xf32> to vector<8x512xf32>
    %232 = arith.addf %228, %231 : vector<8x512xf32>
    %233 = vector.extract_strided_slice %232 {offsets = [0, 0], sizes = [8, 128], strides = [1, 1]} : vector<8x512xf32> to vector<8x128xf32>
    %234 = arith.negf %233 : vector<8x128xf32>
    %235 = math.exp %234 : vector<8x128xf32>
    %cst_118 = arith.constant 1.000000e+00 : f32
    %236 = vector.broadcast %cst_118 : f32 to vector<8x128xf32>
    %237 = arith.addf %236, %235 : vector<8x128xf32>
    %238 = arith.divf %236, %237 : vector<8x128xf32>
    %239 = vector.extract_strided_slice %232 {offsets = [0, 128], sizes = [8, 128], strides = [1, 1]} : vector<8x512xf32> to vector<8x128xf32>
    %240 = arith.negf %239 : vector<8x128xf32>
    %241 = math.exp %240 : vector<8x128xf32>
    %cst_119 = arith.constant 1.000000e+00 : f32
    %242 = vector.broadcast %cst_119 : f32 to vector<8x128xf32>
    %243 = arith.addf %242, %241 : vector<8x128xf32>
    %244 = arith.divf %242, %243 : vector<8x128xf32>
    %245 = vector.extract_strided_slice %232 {offsets = [0, 256], sizes = [8, 128], strides = [1, 1]} : vector<8x512xf32> to vector<8x128xf32>
    %246 = math.tanh %245 : vector<8x128xf32>
    %247 = vector.extract_strided_slice %232 {offsets = [0, 384], sizes = [8, 128], strides = [1, 1]} : vector<8x512xf32> to vector<8x128xf32>
    %248 = arith.negf %247 : vector<8x128xf32>
    %249 = math.exp %248 : vector<8x128xf32>
    %cst_120 = arith.constant 1.000000e+00 : f32
    %250 = vector.broadcast %cst_120 : f32 to vector<8x128xf32>
    %251 = arith.addf %250, %249 : vector<8x128xf32>
    %252 = arith.divf %250, %251 : vector<8x128xf32>
    %253 = arith.mulf %244, %212 : vector<8x128xf32>
    %254 = arith.mulf %238, %246 : vector<8x128xf32>
    %255 = arith.addf %253, %254 : vector<8x128xf32>
    %256 = math.tanh %255 : vector<8x128xf32>
    %257 = arith.mulf %252, %256 : vector<8x128xf32>
    %258 = arith.index_cast %c5_i32 : i32 to index
    %c0_121 = arith.constant 0 : index
    %c0_122 = arith.constant 0 : index
    %259 = vector.load %arg11[%258, %c0_121, %c0_122] : memref<8x8x128xf32, #tpu.memory_space<vmem>>, vector<1x8x128xf32>
    %260 = vector.shape_cast %259 : vector<1x8x128xf32> to vector<8x128xf32>
    %261 = vector.shape_cast %257 : vector<8x128xf32> to vector<1x8x128xf32>
    tpu.vector_store %arg11[%258, %c0_121, %c0_122], %261 {strides = array<i32>} : memref<8x8x128xf32, #tpu.memory_space<vmem>>, vector<1x8x128xf32>,
    %c6_i32 = arith.constant 6 : i32
    %262 = arith.index_cast %c6_i32 : i32 to index
    %c0_123 = arith.constant 0 : index
    %c0_124 = arith.constant 0 : index
    %263 = vector.load %arg0[%262, %c0_123, %c0_124] : memref<8x8x128xf32, #tpu.memory_space<vmem>>, vector<1x8x128xf32>
    %264 = vector.shape_cast %263 : vector<1x8x128xf32> to vector<8x128xf32>
    %c0_125 = arith.constant 0 : index
    %c0_126 = arith.constant 0 : index
    %265 = vector.load %arg10[%c0_125, %c0_126] : memref<8x256xf32, #tpu.memory_space<vmem>>, vector<8x128xf32>
    tpu.vector_store %arg10[%c0_125, %c0_126], %264 {strides = array<i32>} : memref<8x256xf32, #tpu.memory_space<vmem>>, vector<8x128xf32>,
    %c0_127 = arith.constant 0 : index
    %c128_128 = arith.constant 128 : index
    %266 = vector.load %arg10[%c0_127, %c128_128] : memref<8x256xf32, #tpu.memory_space<vmem>>, vector<8x128xf32>
    tpu.vector_store %arg10[%c0_127, %c128_128], %257 {strides = array<i32>} : memref<8x256xf32, #tpu.memory_space<vmem>>, vector<8x128xf32>,
    %c0_129 = arith.constant 0 : index
    %c0_130 = arith.constant 0 : index
    %267 = vector.load %arg10[%c0_129, %c0_130] : memref<8x256xf32, #tpu.memory_space<vmem>>, vector<8x256xf32>
    %268 = arith.truncf %267 : vector<8x256xf32> to vector<8x256xbf16>
    %c0_131 = arith.constant 0 : index
    %c0_132 = arith.constant 0 : index
    %c0_133 = arith.constant 0 : index
    %269 = vector.load %arg1[%c0_131, %c0_132, %c0_133] : memref<2x256x512xbf16, #tpu.memory_space<vmem>>, vector<1x256x512xbf16>
    %270 = vector.shape_cast %269 : vector<1x256x512xbf16> to vector<256x512xbf16>
    %cst_134 = arith.constant dense<0.000000e+00> : vector<8x512xf32>
    %271 = tpu.matmul %268, %270, %cst_134 {dimension_numbers = #tpu.dot_dimension_numbers<[1], [0], [0], [1], [0, 0, 1, 1], [], []>} : vector<8x256xbf16>, vector<256x512xbf16>, vector<8x512xf32> -> vector<8x512xf32>
    %c0_135 = arith.constant 0 : index
    %c0_136 = arith.constant 0 : index
    %c0_137 = arith.constant 0 : index
    %272 = vector.load %arg2[%c0_135, %c0_136, %c0_137] : memref<2x1x512xf32, #tpu.memory_space<vmem>>, vector<1x1x512xf32>
    %273 = vector.shape_cast %272 : vector<1x1x512xf32> to vector<1x512xf32>
    %274 = vector.broadcast %273 : vector<1x512xf32> to vector<8x512xf32>
    %275 = arith.addf %271, %274 : vector<8x512xf32>
    %276 = vector.extract_strided_slice %275 {offsets = [0, 0], sizes = [8, 128], strides = [1, 1]} : vector<8x512xf32> to vector<8x128xf32>
    %277 = arith.negf %276 : vector<8x128xf32>
    %278 = math.exp %277 : vector<8x128xf32>
    %cst_138 = arith.constant 1.000000e+00 : f32
    %279 = vector.broadcast %cst_138 : f32 to vector<8x128xf32>
    %280 = arith.addf %279, %278 : vector<8x128xf32>
    %281 = arith.divf %279, %280 : vector<8x128xf32>
    %282 = vector.extract_strided_slice %275 {offsets = [0, 128], sizes = [8, 128], strides = [1, 1]} : vector<8x512xf32> to vector<8x128xf32>
    %283 = arith.negf %282 : vector<8x128xf32>
    %284 = math.exp %283 : vector<8x128xf32>
    %cst_139 = arith.constant 1.000000e+00 : f32
    %285 = vector.broadcast %cst_139 : f32 to vector<8x128xf32>
    %286 = arith.addf %285, %284 : vector<8x128xf32>
    %287 = arith.divf %285, %286 : vector<8x128xf32>
    %288 = vector.extract_strided_slice %275 {offsets = [0, 256], sizes = [8, 128], strides = [1, 1]} : vector<8x512xf32> to vector<8x128xf32>
    %289 = math.tanh %288 : vector<8x128xf32>
    %290 = vector.extract_strided_slice %275 {offsets = [0, 384], sizes = [8, 128], strides = [1, 1]} : vector<8x512xf32> to vector<8x128xf32>
    %291 = arith.negf %290 : vector<8x128xf32>
    %292 = math.exp %291 : vector<8x128xf32>
    %cst_140 = arith.constant 1.000000e+00 : f32
    %293 = vector.broadcast %cst_140 : f32 to vector<8x128xf32>
    %294 = arith.addf %293, %292 : vector<8x128xf32>
    %295 = arith.divf %293, %294 : vector<8x128xf32>
    %296 = arith.mulf %287, %255 : vector<8x128xf32>
    %297 = arith.mulf %281, %289 : vector<8x128xf32>
    %298 = arith.addf %296, %297 : vector<8x128xf32>
    %299 = math.tanh %298 : vector<8x128xf32>
    %300 = arith.mulf %295, %299 : vector<8x128xf32>
    %301 = arith.index_cast %c6_i32 : i32 to index
    %c0_141 = arith.constant 0 : index
    %c0_142 = arith.constant 0 : index
    %302 = vector.load %arg11[%301, %c0_141, %c0_142] : memref<8x8x128xf32, #tpu.memory_space<vmem>>, vector<1x8x128xf32>
    %303 = vector.shape_cast %302 : vector<1x8x128xf32> to vector<8x128xf32>
    %304 = vector.shape_cast %300 : vector<8x128xf32> to vector<1x8x128xf32>
    tpu.vector_store %arg11[%301, %c0_141, %c0_142], %304 {strides = array<i32>} : memref<8x8x128xf32, #tpu.memory_space<vmem>>, vector<1x8x128xf32>,
    %c7_i32 = arith.constant 7 : i32
    %305 = arith.index_cast %c7_i32 : i32 to index
    %c0_143 = arith.constant 0 : index
    %c0_144 = arith.constant 0 : index
    %306 = vector.load %arg0[%305, %c0_143, %c0_144] : memref<8x8x128xf32, #tpu.memory_space<vmem>>, vector<1x8x128xf32>
    %307 = vector.shape_cast %306 : vector<1x8x128xf32> to vector<8x128xf32>
    %c0_145 = arith.constant 0 : index
    %c0_146 = arith.constant 0 : index
    %308 = vector.load %arg10[%c0_145, %c0_146] : memref<8x256xf32, #tpu.memory_space<vmem>>, vector<8x128xf32>
    tpu.vector_store %arg10[%c0_145, %c0_146], %307 {strides = array<i32>} : memref<8x256xf32, #tpu.memory_space<vmem>>, vector<8x128xf32>,
    %c0_147 = arith.constant 0 : index
    %c128_148 = arith.constant 128 : index
    %309 = vector.load %arg10[%c0_147, %c128_148] : memref<8x256xf32, #tpu.memory_space<vmem>>, vector<8x128xf32>
    tpu.vector_store %arg10[%c0_147, %c128_148], %300 {strides = array<i32>} : memref<8x256xf32, #tpu.memory_space<vmem>>, vector<8x128xf32>,
    %c0_149 = arith.constant 0 : index
    %c0_150 = arith.constant 0 : index
    %310 = vector.load %arg10[%c0_149, %c0_150] : memref<8x256xf32, #tpu.memory_space<vmem>>, vector<8x256xf32>
    %311 = arith.truncf %310 : vector<8x256xf32> to vector<8x256xbf16>
    %c0_151 = arith.constant 0 : index
    %c0_152 = arith.constant 0 : index
    %c0_153 = arith.constant 0 : index
    %312 = vector.load %arg1[%c0_151, %c0_152, %c0_153] : memref<2x256x512xbf16, #tpu.memory_space<vmem>>, vector<1x256x512xbf16>
    %313 = vector.shape_cast %312 : vector<1x256x512xbf16> to vector<256x512xbf16>
    %cst_154 = arith.constant dense<0.000000e+00> : vector<8x512xf32>
    %314 = tpu.matmul %311, %313, %cst_154 {dimension_numbers = #tpu.dot_dimension_numbers<[1], [0], [0], [1], [0, 0, 1, 1], [], []>} : vector<8x256xbf16>, vector<256x512xbf16>, vector<8x512xf32> -> vector<8x512xf32>
    %c0_155 = arith.constant 0 : index
    %c0_156 = arith.constant 0 : index
    %c0_157 = arith.constant 0 : index
    %315 = vector.load %arg2[%c0_155, %c0_156, %c0_157] : memref<2x1x512xf32, #tpu.memory_space<vmem>>, vector<1x1x512xf32>
    %316 = vector.shape_cast %315 : vector<1x1x512xf32> to vector<1x512xf32>
    %317 = vector.broadcast %316 : vector<1x512xf32> to vector<8x512xf32>
    %318 = arith.addf %314, %317 : vector<8x512xf32>
    %319 = vector.extract_strided_slice %318 {offsets = [0, 0], sizes = [8, 128], strides = [1, 1]} : vector<8x512xf32> to vector<8x128xf32>
    %320 = arith.negf %319 : vector<8x128xf32>
    %321 = math.exp %320 : vector<8x128xf32>
    %cst_158 = arith.constant 1.000000e+00 : f32
    %322 = vector.broadcast %cst_158 : f32 to vector<8x128xf32>
    %323 = arith.addf %322, %321 : vector<8x128xf32>
    %324 = arith.divf %322, %323 : vector<8x128xf32>
    %325 = vector.extract_strided_slice %318 {offsets = [0, 128], sizes = [8, 128], strides = [1, 1]} : vector<8x512xf32> to vector<8x128xf32>
    %326 = arith.negf %325 : vector<8x128xf32>
    %327 = math.exp %326 : vector<8x128xf32>
    %cst_159 = arith.constant 1.000000e+00 : f32
    %328 = vector.broadcast %cst_159 : f32 to vector<8x128xf32>
    %329 = arith.addf %328, %327 : vector<8x128xf32>
    %330 = arith.divf %328, %329 : vector<8x128xf32>
    %331 = vector.extract_strided_slice %318 {offsets = [0, 256], sizes = [8, 128], strides = [1, 1]} : vector<8x512xf32> to vector<8x128xf32>
    %332 = math.tanh %331 : vector<8x128xf32>
    %333 = vector.extract_strided_slice %318 {offsets = [0, 384], sizes = [8, 128], strides = [1, 1]} : vector<8x512xf32> to vector<8x128xf32>
    %334 = arith.negf %333 : vector<8x128xf32>
    %335 = math.exp %334 : vector<8x128xf32>
    %cst_160 = arith.constant 1.000000e+00 : f32
    %336 = vector.broadcast %cst_160 : f32 to vector<8x128xf32>
    %337 = arith.addf %336, %335 : vector<8x128xf32>
    %338 = arith.divf %336, %337 : vector<8x128xf32>
    %339 = arith.mulf %330, %298 : vector<8x128xf32>
    %340 = arith.mulf %324, %332 : vector<8x128xf32>
    %341 = arith.addf %339, %340 : vector<8x128xf32>
    %342 = math.tanh %341 : vector<8x128xf32>
    %343 = arith.mulf %338, %342 : vector<8x128xf32>
    %344 = arith.index_cast %c7_i32 : i32 to index
    %c0_161 = arith.constant 0 : index
    %c0_162 = arith.constant 0 : index
    %345 = vector.load %arg11[%344, %c0_161, %c0_162] : memref<8x8x128xf32, #tpu.memory_space<vmem>>, vector<1x8x128xf32>
    %346 = vector.shape_cast %345 : vector<1x8x128xf32> to vector<8x128xf32>
    %347 = vector.shape_cast %343 : vector<8x128xf32> to vector<1x8x128xf32>
    tpu.vector_store %arg11[%344, %c0_161, %c0_162], %347 {strides = array<i32>} : memref<8x8x128xf32, #tpu.memory_space<vmem>>, vector<1x8x128xf32>,
    %c8_i32 = arith.constant 8 : i32
    %c0_163 = arith.constant 0 : index
    %c0_164 = arith.constant 0 : index
    %c0_165 = arith.constant 0 : index
    %348 = vector.load %arg8[%c0_163, %c0_164, %c0_165] : memref<2x8x128xf32, #tpu.memory_space<vmem>>, vector<1x8x128xf32>
    %349 = vector.shape_cast %348 : vector<1x8x128xf32> to vector<8x128xf32>
    %350 = vector.shape_cast %343 : vector<8x128xf32> to vector<1x8x128xf32>
    tpu.vector_store %arg8[%c0_163, %c0_164, %c0_165], %350 {strides = array<i32>} : memref<2x8x128xf32, #tpu.memory_space<vmem>>, vector<1x8x128xf32>,
    %c0_166 = arith.constant 0 : index
    %c0_167 = arith.constant 0 : index
    %c0_168 = arith.constant 0 : index
    %351 = vector.load %arg9[%c0_166, %c0_167, %c0_168] : memref<2x8x128xf32, #tpu.memory_space<vmem>>, vector<1x8x128xf32>
    %352 = vector.shape_cast %351 : vector<1x8x128xf32> to vector<8x128xf32>
    %353 = vector.shape_cast %341 : vector<8x128xf32> to vector<1x8x128xf32>
    tpu.vector_store %arg9[%c0_166, %c0_167, %c0_168], %353 {strides = array<i32>} : memref<2x8x128xf32, #tpu.memory_space<vmem>>, vector<1x8x128xf32>,
    %c1 = arith.constant 1 : index
    %c0_169 = arith.constant 0 : index
    %c0_170 = arith.constant 0 : index
    %354 = vector.load %arg3[%c1, %c0_169, %c0_170] : memref<2x8x128xf32, #tpu.memory_space<vmem>>, vector<1x8x128xf32>
    %355 = vector.shape_cast %354 : vector<1x8x128xf32> to vector<8x128xf32>
    %c1_171 = arith.constant 1 : index
    %c0_172 = arith.constant 0 : index
    %c0_173 = arith.constant 0 : index
    %356 = vector.load %arg4[%c1_171, %c0_172, %c0_173] : memref<2x8x128xf32, #tpu.memory_space<vmem>>, vector<1x8x128xf32>
    %357 = vector.shape_cast %356 : vector<1x8x128xf32> to vector<8x128xf32>
    %c0_i32_174 = arith.constant 0 : i32
    %358 = arith.index_cast %c0_i32_174 : i32 to index
    %c0_175 = arith.constant 0 : index
    %c0_176 = arith.constant 0 : index
    %359 = vector.load %arg11[%358, %c0_175, %c0_176] : memref<8x8x128xf32, #tpu.memory_space<vmem>>, vector<1x8x128xf32>
    %360 = vector.shape_cast %359 : vector<1x8x128xf32> to vector<8x128xf32>
    %c0_177 = arith.constant 0 : index
    %c0_178 = arith.constant 0 : index
    %361 = vector.load %arg10[%c0_177, %c0_178] : memref<8x256xf32, #tpu.memory_space<vmem>>, vector<8x128xf32>
    tpu.vector_store %arg10[%c0_177, %c0_178], %360 {strides = array<i32>} : memref<8x256xf32, #tpu.memory_space<vmem>>, vector<8x128xf32>,
    %c0_179 = arith.constant 0 : index
    %c128_180 = arith.constant 128 : index
    %362 = vector.load %arg10[%c0_179, %c128_180] : memref<8x256xf32, #tpu.memory_space<vmem>>, vector<8x128xf32>
    tpu.vector_store %arg10[%c0_179, %c128_180], %355 {strides = array<i32>} : memref<8x256xf32, #tpu.memory_space<vmem>>, vector<8x128xf32>,
    %c0_181 = arith.constant 0 : index
    %c0_182 = arith.constant 0 : index
    %363 = vector.load %arg10[%c0_181, %c0_182] : memref<8x256xf32, #tpu.memory_space<vmem>>, vector<8x256xf32>
    %364 = arith.truncf %363 : vector<8x256xf32> to vector<8x256xbf16>
    %c1_183 = arith.constant 1 : index
    %c0_184 = arith.constant 0 : index
    %c0_185 = arith.constant 0 : index
    %365 = vector.load %arg1[%c1_183, %c0_184, %c0_185] : memref<2x256x512xbf16, #tpu.memory_space<vmem>>, vector<1x256x512xbf16>
    %366 = vector.shape_cast %365 : vector<1x256x512xbf16> to vector<256x512xbf16>
    %cst_186 = arith.constant dense<0.000000e+00> : vector<8x512xf32>
    %367 = tpu.matmul %364, %366, %cst_186 {dimension_numbers = #tpu.dot_dimension_numbers<[1], [0], [0], [1], [0, 0, 1, 1], [], []>} : vector<8x256xbf16>, vector<256x512xbf16>, vector<8x512xf32> -> vector<8x512xf32>
    %c1_187 = arith.constant 1 : index
    %c0_188 = arith.constant 0 : index
    %c0_189 = arith.constant 0 : index
    %368 = vector.load %arg2[%c1_187, %c0_188, %c0_189] : memref<2x1x512xf32, #tpu.memory_space<vmem>>, vector<1x1x512xf32>
    %369 = vector.shape_cast %368 : vector<1x1x512xf32> to vector<1x512xf32>
    %370 = vector.broadcast %369 : vector<1x512xf32> to vector<8x512xf32>
    %371 = arith.addf %367, %370 : vector<8x512xf32>
    %372 = vector.extract_strided_slice %371 {offsets = [0, 0], sizes = [8, 128], strides = [1, 1]} : vector<8x512xf32> to vector<8x128xf32>
    %373 = arith.negf %372 : vector<8x128xf32>
    %374 = math.exp %373 : vector<8x128xf32>
    %cst_190 = arith.constant 1.000000e+00 : f32
    %375 = vector.broadcast %cst_190 : f32 to vector<8x128xf32>
    %376 = arith.addf %375, %374 : vector<8x128xf32>
    %377 = arith.divf %375, %376 : vector<8x128xf32>
    %378 = vector.extract_strided_slice %371 {offsets = [0, 128], sizes = [8, 128], strides = [1, 1]} : vector<8x512xf32> to vector<8x128xf32>
    %379 = arith.negf %378 : vector<8x128xf32>
    %380 = math.exp %379 : vector<8x128xf32>
    %cst_191 = arith.constant 1.000000e+00 : f32
    %381 = vector.broadcast %cst_191 : f32 to vector<8x128xf32>
    %382 = arith.addf %381, %380 : vector<8x128xf32>
    %383 = arith.divf %381, %382 : vector<8x128xf32>
    %384 = vector.extract_strided_slice %371 {offsets = [0, 256], sizes = [8, 128], strides = [1, 1]} : vector<8x512xf32> to vector<8x128xf32>
    %385 = math.tanh %384 : vector<8x128xf32>
    %386 = vector.extract_strided_slice %371 {offsets = [0, 384], sizes = [8, 128], strides = [1, 1]} : vector<8x512xf32> to vector<8x128xf32>
    %387 = arith.negf %386 : vector<8x128xf32>
    %388 = math.exp %387 : vector<8x128xf32>
    %cst_192 = arith.constant 1.000000e+00 : f32
    %389 = vector.broadcast %cst_192 : f32 to vector<8x128xf32>
    %390 = arith.addf %389, %388 : vector<8x128xf32>
    %391 = arith.divf %389, %390 : vector<8x128xf32>
    %392 = arith.mulf %383, %357 : vector<8x128xf32>
    %393 = arith.mulf %377, %385 : vector<8x128xf32>
    %394 = arith.addf %392, %393 : vector<8x128xf32>
    %395 = math.tanh %394 : vector<8x128xf32>
    %396 = arith.mulf %391, %395 : vector<8x128xf32>
    %c1_i32_193 = arith.constant 1 : i32
    %397 = arith.index_cast %c1_i32_193 : i32 to index
    %c0_194 = arith.constant 0 : index
    %c0_195 = arith.constant 0 : index
    %398 = vector.load %arg11[%397, %c0_194, %c0_195] : memref<8x8x128xf32, #tpu.memory_space<vmem>>, vector<1x8x128xf32>
    %399 = vector.shape_cast %398 : vector<1x8x128xf32> to vector<8x128xf32>
    %c0_196 = arith.constant 0 : index
    %c0_197 = arith.constant 0 : index
    %400 = vector.load %arg10[%c0_196, %c0_197] : memref<8x256xf32, #tpu.memory_space<vmem>>, vector<8x128xf32>
    tpu.vector_store %arg10[%c0_196, %c0_197], %399 {strides = array<i32>} : memref<8x256xf32, #tpu.memory_space<vmem>>, vector<8x128xf32>,
    %c0_198 = arith.constant 0 : index
    %c128_199 = arith.constant 128 : index
    %401 = vector.load %arg10[%c0_198, %c128_199] : memref<8x256xf32, #tpu.memory_space<vmem>>, vector<8x128xf32>
    tpu.vector_store %arg10[%c0_198, %c128_199], %396 {strides = array<i32>} : memref<8x256xf32, #tpu.memory_space<vmem>>, vector<8x128xf32>,
    %c0_200 = arith.constant 0 : index
    %c0_201 = arith.constant 0 : index
    %402 = vector.load %arg10[%c0_200, %c0_201] : memref<8x256xf32, #tpu.memory_space<vmem>>, vector<8x256xf32>
    %403 = arith.truncf %402 : vector<8x256xf32> to vector<8x256xbf16>
    %c1_202 = arith.constant 1 : index
    %c0_203 = arith.constant 0 : index
    %c0_204 = arith.constant 0 : index
    %404 = vector.load %arg1[%c1_202, %c0_203, %c0_204] : memref<2x256x512xbf16, #tpu.memory_space<vmem>>, vector<1x256x512xbf16>
    %405 = vector.shape_cast %404 : vector<1x256x512xbf16> to vector<256x512xbf16>
    %cst_205 = arith.constant dense<0.000000e+00> : vector<8x512xf32>
    %406 = tpu.matmul %403, %405, %cst_205 {dimension_numbers = #tpu.dot_dimension_numbers<[1], [0], [0], [1], [0, 0, 1, 1], [], []>} : vector<8x256xbf16>, vector<256x512xbf16>, vector<8x512xf32> -> vector<8x512xf32>
    %c1_206 = arith.constant 1 : index
    %c0_207 = arith.constant 0 : index
    %c0_208 = arith.constant 0 : index
    %407 = vector.load %arg2[%c1_206, %c0_207, %c0_208] : memref<2x1x512xf32, #tpu.memory_space<vmem>>, vector<1x1x512xf32>
    %408 = vector.shape_cast %407 : vector<1x1x512xf32> to vector<1x512xf32>
    %409 = vector.broadcast %408 : vector<1x512xf32> to vector<8x512xf32>
    %410 = arith.addf %406, %409 : vector<8x512xf32>
    %411 = vector.extract_strided_slice %410 {offsets = [0, 0], sizes = [8, 128], strides = [1, 1]} : vector<8x512xf32> to vector<8x128xf32>
    %412 = arith.negf %411 : vector<8x128xf32>
    %413 = math.exp %412 : vector<8x128xf32>
    %cst_209 = arith.constant 1.000000e+00 : f32
    %414 = vector.broadcast %cst_209 : f32 to vector<8x128xf32>
    %415 = arith.addf %414, %413 : vector<8x128xf32>
    %416 = arith.divf %414, %415 : vector<8x128xf32>
    %417 = vector.extract_strided_slice %410 {offsets = [0, 128], sizes = [8, 128], strides = [1, 1]} : vector<8x512xf32> to vector<8x128xf32>
    %418 = arith.negf %417 : vector<8x128xf32>
    %419 = math.exp %418 : vector<8x128xf32>
    %cst_210 = arith.constant 1.000000e+00 : f32
    %420 = vector.broadcast %cst_210 : f32 to vector<8x128xf32>
    %421 = arith.addf %420, %419 : vector<8x128xf32>
    %422 = arith.divf %420, %421 : vector<8x128xf32>
    %423 = vector.extract_strided_slice %410 {offsets = [0, 256], sizes = [8, 128], strides = [1, 1]} : vector<8x512xf32> to vector<8x128xf32>
    %424 = math.tanh %423 : vector<8x128xf32>
    %425 = vector.extract_strided_slice %410 {offsets = [0, 384], sizes = [8, 128], strides = [1, 1]} : vector<8x512xf32> to vector<8x128xf32>
    %426 = arith.negf %425 : vector<8x128xf32>
    %427 = math.exp %426 : vector<8x128xf32>
    %cst_211 = arith.constant 1.000000e+00 : f32
    %428 = vector.broadcast %cst_211 : f32 to vector<8x128xf32>
    %429 = arith.addf %428, %427 : vector<8x128xf32>
    %430 = arith.divf %428, %429 : vector<8x128xf32>
    %431 = arith.mulf %422, %394 : vector<8x128xf32>
    %432 = arith.mulf %416, %424 : vector<8x128xf32>
    %433 = arith.addf %431, %432 : vector<8x128xf32>
    %434 = math.tanh %433 : vector<8x128xf32>
    %435 = arith.mulf %430, %434 : vector<8x128xf32>
    %c2_i32_212 = arith.constant 2 : i32
    %436 = arith.index_cast %c2_i32_212 : i32 to index
    %c0_213 = arith.constant 0 : index
    %c0_214 = arith.constant 0 : index
    %437 = vector.load %arg11[%436, %c0_213, %c0_214] : memref<8x8x128xf32, #tpu.memory_space<vmem>>, vector<1x8x128xf32>
    %438 = vector.shape_cast %437 : vector<1x8x128xf32> to vector<8x128xf32>
    %c0_215 = arith.constant 0 : index
    %c0_216 = arith.constant 0 : index
    %439 = vector.load %arg10[%c0_215, %c0_216] : memref<8x256xf32, #tpu.memory_space<vmem>>, vector<8x128xf32>
    tpu.vector_store %arg10[%c0_215, %c0_216], %438 {strides = array<i32>} : memref<8x256xf32, #tpu.memory_space<vmem>>, vector<8x128xf32>,
    %c0_217 = arith.constant 0 : index
    %c128_218 = arith.constant 128 : index
    %440 = vector.load %arg10[%c0_217, %c128_218] : memref<8x256xf32, #tpu.memory_space<vmem>>, vector<8x128xf32>
    tpu.vector_store %arg10[%c0_217, %c128_218], %435 {strides = array<i32>} : memref<8x256xf32, #tpu.memory_space<vmem>>, vector<8x128xf32>,
    %c0_219 = arith.constant 0 : index
    %c0_220 = arith.constant 0 : index
    %441 = vector.load %arg10[%c0_219, %c0_220] : memref<8x256xf32, #tpu.memory_space<vmem>>, vector<8x256xf32>
    %442 = arith.truncf %441 : vector<8x256xf32> to vector<8x256xbf16>
    %c1_221 = arith.constant 1 : index
    %c0_222 = arith.constant 0 : index
    %c0_223 = arith.constant 0 : index
    %443 = vector.load %arg1[%c1_221, %c0_222, %c0_223] : memref<2x256x512xbf16, #tpu.memory_space<vmem>>, vector<1x256x512xbf16>
    %444 = vector.shape_cast %443 : vector<1x256x512xbf16> to vector<256x512xbf16>
    %cst_224 = arith.constant dense<0.000000e+00> : vector<8x512xf32>
    %445 = tpu.matmul %442, %444, %cst_224 {dimension_numbers = #tpu.dot_dimension_numbers<[1], [0], [0], [1], [0, 0, 1, 1], [], []>} : vector<8x256xbf16>, vector<256x512xbf16>, vector<8x512xf32> -> vector<8x512xf32>
    %c1_225 = arith.constant 1 : index
    %c0_226 = arith.constant 0 : index
    %c0_227 = arith.constant 0 : index
    %446 = vector.load %arg2[%c1_225, %c0_226, %c0_227] : memref<2x1x512xf32, #tpu.memory_space<vmem>>, vector<1x1x512xf32>
    %447 = vector.shape_cast %446 : vector<1x1x512xf32> to vector<1x512xf32>
    %448 = vector.broadcast %447 : vector<1x512xf32> to vector<8x512xf32>
    %449 = arith.addf %445, %448 : vector<8x512xf32>
    %450 = vector.extract_strided_slice %449 {offsets = [0, 0], sizes = [8, 128], strides = [1, 1]} : vector<8x512xf32> to vector<8x128xf32>
    %451 = arith.negf %450 : vector<8x128xf32>
    %452 = math.exp %451 : vector<8x128xf32>
    %cst_228 = arith.constant 1.000000e+00 : f32
    %453 = vector.broadcast %cst_228 : f32 to vector<8x128xf32>
    %454 = arith.addf %453, %452 : vector<8x128xf32>
    %455 = arith.divf %453, %454 : vector<8x128xf32>
    %456 = vector.extract_strided_slice %449 {offsets = [0, 128], sizes = [8, 128], strides = [1, 1]} : vector<8x512xf32> to vector<8x128xf32>
    %457 = arith.negf %456 : vector<8x128xf32>
    %458 = math.exp %457 : vector<8x128xf32>
    %cst_229 = arith.constant 1.000000e+00 : f32
    %459 = vector.broadcast %cst_229 : f32 to vector<8x128xf32>
    %460 = arith.addf %459, %458 : vector<8x128xf32>
    %461 = arith.divf %459, %460 : vector<8x128xf32>
    %462 = vector.extract_strided_slice %449 {offsets = [0, 256], sizes = [8, 128], strides = [1, 1]} : vector<8x512xf32> to vector<8x128xf32>
    %463 = math.tanh %462 : vector<8x128xf32>
    %464 = vector.extract_strided_slice %449 {offsets = [0, 384], sizes = [8, 128], strides = [1, 1]} : vector<8x512xf32> to vector<8x128xf32>
    %465 = arith.negf %464 : vector<8x128xf32>
    %466 = math.exp %465 : vector<8x128xf32>
    %cst_230 = arith.constant 1.000000e+00 : f32
    %467 = vector.broadcast %cst_230 : f32 to vector<8x128xf32>
    %468 = arith.addf %467, %466 : vector<8x128xf32>
    %469 = arith.divf %467, %468 : vector<8x128xf32>
    %470 = arith.mulf %461, %433 : vector<8x128xf32>
    %471 = arith.mulf %455, %463 : vector<8x128xf32>
    %472 = arith.addf %470, %471 : vector<8x128xf32>
    %473 = math.tanh %472 : vector<8x128xf32>
    %474 = arith.mulf %469, %473 : vector<8x128xf32>
    %c3_i32_231 = arith.constant 3 : i32
    %475 = arith.index_cast %c3_i32_231 : i32 to index
    %c0_232 = arith.constant 0 : index
    %c0_233 = arith.constant 0 : index
    %476 = vector.load %arg11[%475, %c0_232, %c0_233] : memref<8x8x128xf32, #tpu.memory_space<vmem>>, vector<1x8x128xf32>
    %477 = vector.shape_cast %476 : vector<1x8x128xf32> to vector<8x128xf32>
    %c0_234 = arith.constant 0 : index
    %c0_235 = arith.constant 0 : index
    %478 = vector.load %arg10[%c0_234, %c0_235] : memref<8x256xf32, #tpu.memory_space<vmem>>, vector<8x128xf32>
    tpu.vector_store %arg10[%c0_234, %c0_235], %477 {strides = array<i32>} : memref<8x256xf32, #tpu.memory_space<vmem>>, vector<8x128xf32>,
    %c0_236 = arith.constant 0 : index
    %c128_237 = arith.constant 128 : index
    %479 = vector.load %arg10[%c0_236, %c128_237] : memref<8x256xf32, #tpu.memory_space<vmem>>, vector<8x128xf32>
    tpu.vector_store %arg10[%c0_236, %c128_237], %474 {strides = array<i32>} : memref<8x256xf32, #tpu.memory_space<vmem>>, vector<8x128xf32>,
    %c0_238 = arith.constant 0 : index
    %c0_239 = arith.constant 0 : index
    %480 = vector.load %arg10[%c0_238, %c0_239] : memref<8x256xf32, #tpu.memory_space<vmem>>, vector<8x256xf32>
    %481 = arith.truncf %480 : vector<8x256xf32> to vector<8x256xbf16>
    %c1_240 = arith.constant 1 : index
    %c0_241 = arith.constant 0 : index
    %c0_242 = arith.constant 0 : index
    %482 = vector.load %arg1[%c1_240, %c0_241, %c0_242] : memref<2x256x512xbf16, #tpu.memory_space<vmem>>, vector<1x256x512xbf16>
    %483 = vector.shape_cast %482 : vector<1x256x512xbf16> to vector<256x512xbf16>
    %cst_243 = arith.constant dense<0.000000e+00> : vector<8x512xf32>
    %484 = tpu.matmul %481, %483, %cst_243 {dimension_numbers = #tpu.dot_dimension_numbers<[1], [0], [0], [1], [0, 0, 1, 1], [], []>} : vector<8x256xbf16>, vector<256x512xbf16>, vector<8x512xf32> -> vector<8x512xf32>
    %c1_244 = arith.constant 1 : index
    %c0_245 = arith.constant 0 : index
    %c0_246 = arith.constant 0 : index
    %485 = vector.load %arg2[%c1_244, %c0_245, %c0_246] : memref<2x1x512xf32, #tpu.memory_space<vmem>>, vector<1x1x512xf32>
    %486 = vector.shape_cast %485 : vector<1x1x512xf32> to vector<1x512xf32>
    %487 = vector.broadcast %486 : vector<1x512xf32> to vector<8x512xf32>
    %488 = arith.addf %484, %487 : vector<8x512xf32>
    %489 = vector.extract_strided_slice %488 {offsets = [0, 0], sizes = [8, 128], strides = [1, 1]} : vector<8x512xf32> to vector<8x128xf32>
    %490 = arith.negf %489 : vector<8x128xf32>
    %491 = math.exp %490 : vector<8x128xf32>
    %cst_247 = arith.constant 1.000000e+00 : f32
    %492 = vector.broadcast %cst_247 : f32 to vector<8x128xf32>
    %493 = arith.addf %492, %491 : vector<8x128xf32>
    %494 = arith.divf %492, %493 : vector<8x128xf32>
    %495 = vector.extract_strided_slice %488 {offsets = [0, 128], sizes = [8, 128], strides = [1, 1]} : vector<8x512xf32> to vector<8x128xf32>
    %496 = arith.negf %495 : vector<8x128xf32>
    %497 = math.exp %496 : vector<8x128xf32>
    %cst_248 = arith.constant 1.000000e+00 : f32
    %498 = vector.broadcast %cst_248 : f32 to vector<8x128xf32>
    %499 = arith.addf %498, %497 : vector<8x128xf32>
    %500 = arith.divf %498, %499 : vector<8x128xf32>
    %501 = vector.extract_strided_slice %488 {offsets = [0, 256], sizes = [8, 128], strides = [1, 1]} : vector<8x512xf32> to vector<8x128xf32>
    %502 = math.tanh %501 : vector<8x128xf32>
    %503 = vector.extract_strided_slice %488 {offsets = [0, 384], sizes = [8, 128], strides = [1, 1]} : vector<8x512xf32> to vector<8x128xf32>
    %504 = arith.negf %503 : vector<8x128xf32>
    %505 = math.exp %504 : vector<8x128xf32>
    %cst_249 = arith.constant 1.000000e+00 : f32
    %506 = vector.broadcast %cst_249 : f32 to vector<8x128xf32>
    %507 = arith.addf %506, %505 : vector<8x128xf32>
    %508 = arith.divf %506, %507 : vector<8x128xf32>
    %509 = arith.mulf %500, %472 : vector<8x128xf32>
    %510 = arith.mulf %494, %502 : vector<8x128xf32>
    %511 = arith.addf %509, %510 : vector<8x128xf32>
    %512 = math.tanh %511 : vector<8x128xf32>
    %513 = arith.mulf %508, %512 : vector<8x128xf32>
    %c4_i32_250 = arith.constant 4 : i32
    %514 = arith.index_cast %c4_i32_250 : i32 to index
    %c0_251 = arith.constant 0 : index
    %c0_252 = arith.constant 0 : index
    %515 = vector.load %arg11[%514, %c0_251, %c0_252] : memref<8x8x128xf32, #tpu.memory_space<vmem>>, vector<1x8x128xf32>
    %516 = vector.shape_cast %515 : vector<1x8x128xf32> to vector<8x128xf32>
    %c0_253 = arith.constant 0 : index
    %c0_254 = arith.constant 0 : index
    %517 = vector.load %arg10[%c0_253, %c0_254] : memref<8x256xf32, #tpu.memory_space<vmem>>, vector<8x128xf32>
    tpu.vector_store %arg10[%c0_253, %c0_254], %516 {strides = array<i32>} : memref<8x256xf32, #tpu.memory_space<vmem>>, vector<8x128xf32>,
    %c0_255 = arith.constant 0 : index
    %c128_256 = arith.constant 128 : index
    %518 = vector.load %arg10[%c0_255, %c128_256] : memref<8x256xf32, #tpu.memory_space<vmem>>, vector<8x128xf32>
    tpu.vector_store %arg10[%c0_255, %c128_256], %513 {strides = array<i32>} : memref<8x256xf32, #tpu.memory_space<vmem>>, vector<8x128xf32>,
    %c0_257 = arith.constant 0 : index
    %c0_258 = arith.constant 0 : index
    %519 = vector.load %arg10[%c0_257, %c0_258] : memref<8x256xf32, #tpu.memory_space<vmem>>, vector<8x256xf32>
    %520 = arith.truncf %519 : vector<8x256xf32> to vector<8x256xbf16>
    %c1_259 = arith.constant 1 : index
    %c0_260 = arith.constant 0 : index
    %c0_261 = arith.constant 0 : index
    %521 = vector.load %arg1[%c1_259, %c0_260, %c0_261] : memref<2x256x512xbf16, #tpu.memory_space<vmem>>, vector<1x256x512xbf16>
    %522 = vector.shape_cast %521 : vector<1x256x512xbf16> to vector<256x512xbf16>
    %cst_262 = arith.constant dense<0.000000e+00> : vector<8x512xf32>
    %523 = tpu.matmul %520, %522, %cst_262 {dimension_numbers = #tpu.dot_dimension_numbers<[1], [0], [0], [1], [0, 0, 1, 1], [], []>} : vector<8x256xbf16>, vector<256x512xbf16>, vector<8x512xf32> -> vector<8x512xf32>
    %c1_263 = arith.constant 1 : index
    %c0_264 = arith.constant 0 : index
    %c0_265 = arith.constant 0 : index
    %524 = vector.load %arg2[%c1_263, %c0_264, %c0_265] : memref<2x1x512xf32, #tpu.memory_space<vmem>>, vector<1x1x512xf32>
    %525 = vector.shape_cast %524 : vector<1x1x512xf32> to vector<1x512xf32>
    %526 = vector.broadcast %525 : vector<1x512xf32> to vector<8x512xf32>
    %527 = arith.addf %523, %526 : vector<8x512xf32>
    %528 = vector.extract_strided_slice %527 {offsets = [0, 0], sizes = [8, 128], strides = [1, 1]} : vector<8x512xf32> to vector<8x128xf32>
    %529 = arith.negf %528 : vector<8x128xf32>
    %530 = math.exp %529 : vector<8x128xf32>
    %cst_266 = arith.constant 1.000000e+00 : f32
    %531 = vector.broadcast %cst_266 : f32 to vector<8x128xf32>
    %532 = arith.addf %531, %530 : vector<8x128xf32>
    %533 = arith.divf %531, %532 : vector<8x128xf32>
    %534 = vector.extract_strided_slice %527 {offsets = [0, 128], sizes = [8, 128], strides = [1, 1]} : vector<8x512xf32> to vector<8x128xf32>
    %535 = arith.negf %534 : vector<8x128xf32>
    %536 = math.exp %535 : vector<8x128xf32>
    %cst_267 = arith.constant 1.000000e+00 : f32
    %537 = vector.broadcast %cst_267 : f32 to vector<8x128xf32>
    %538 = arith.addf %537, %536 : vector<8x128xf32>
    %539 = arith.divf %537, %538 : vector<8x128xf32>
    %540 = vector.extract_strided_slice %527 {offsets = [0, 256], sizes = [8, 128], strides = [1, 1]} : vector<8x512xf32> to vector<8x128xf32>
    %541 = math.tanh %540 : vector<8x128xf32>
    %542 = vector.extract_strided_slice %527 {offsets = [0, 384], sizes = [8, 128], strides = [1, 1]} : vector<8x512xf32> to vector<8x128xf32>
    %543 = arith.negf %542 : vector<8x128xf32>
    %544 = math.exp %543 : vector<8x128xf32>
    %cst_268 = arith.constant 1.000000e+00 : f32
    %545 = vector.broadcast %cst_268 : f32 to vector<8x128xf32>
    %546 = arith.addf %545, %544 : vector<8x128xf32>
    %547 = arith.divf %545, %546 : vector<8x128xf32>
    %548 = arith.mulf %539, %511 : vector<8x128xf32>
    %549 = arith.mulf %533, %541 : vector<8x128xf32>
    %550 = arith.addf %548, %549 : vector<8x128xf32>
    %551 = math.tanh %550 : vector<8x128xf32>
    %552 = arith.mulf %547, %551 : vector<8x128xf32>
    %c5_i32_269 = arith.constant 5 : i32
    %553 = arith.index_cast %c5_i32_269 : i32 to index
    %c0_270 = arith.constant 0 : index
    %c0_271 = arith.constant 0 : index
    %554 = vector.load %arg11[%553, %c0_270, %c0_271] : memref<8x8x128xf32, #tpu.memory_space<vmem>>, vector<1x8x128xf32>
    %555 = vector.shape_cast %554 : vector<1x8x128xf32> to vector<8x128xf32>
    %c0_272 = arith.constant 0 : index
    %c0_273 = arith.constant 0 : index
    %556 = vector.load %arg10[%c0_272, %c0_273] : memref<8x256xf32, #tpu.memory_space<vmem>>, vector<8x128xf32>
    tpu.vector_store %arg10[%c0_272, %c0_273], %555 {strides = array<i32>} : memref<8x256xf32, #tpu.memory_space<vmem>>, vector<8x128xf32>,
    %c0_274 = arith.constant 0 : index
    %c128_275 = arith.constant 128 : index
    %557 = vector.load %arg10[%c0_274, %c128_275] : memref<8x256xf32, #tpu.memory_space<vmem>>, vector<8x128xf32>
    tpu.vector_store %arg10[%c0_274, %c128_275], %552 {strides = array<i32>} : memref<8x256xf32, #tpu.memory_space<vmem>>, vector<8x128xf32>,
    %c0_276 = arith.constant 0 : index
    %c0_277 = arith.constant 0 : index
    %558 = vector.load %arg10[%c0_276, %c0_277] : memref<8x256xf32, #tpu.memory_space<vmem>>, vector<8x256xf32>
    %559 = arith.truncf %558 : vector<8x256xf32> to vector<8x256xbf16>
    %c1_278 = arith.constant 1 : index
    %c0_279 = arith.constant 0 : index
    %c0_280 = arith.constant 0 : index
    %560 = vector.load %arg1[%c1_278, %c0_279, %c0_280] : memref<2x256x512xbf16, #tpu.memory_space<vmem>>, vector<1x256x512xbf16>
    %561 = vector.shape_cast %560 : vector<1x256x512xbf16> to vector<256x512xbf16>
    %cst_281 = arith.constant dense<0.000000e+00> : vector<8x512xf32>
    %562 = tpu.matmul %559, %561, %cst_281 {dimension_numbers = #tpu.dot_dimension_numbers<[1], [0], [0], [1], [0, 0, 1, 1], [], []>} : vector<8x256xbf16>, vector<256x512xbf16>, vector<8x512xf32> -> vector<8x512xf32>
    %c1_282 = arith.constant 1 : index
    %c0_283 = arith.constant 0 : index
    %c0_284 = arith.constant 0 : index
    %563 = vector.load %arg2[%c1_282, %c0_283, %c0_284] : memref<2x1x512xf32, #tpu.memory_space<vmem>>, vector<1x1x512xf32>
    %564 = vector.shape_cast %563 : vector<1x1x512xf32> to vector<1x512xf32>
    %565 = vector.broadcast %564 : vector<1x512xf32> to vector<8x512xf32>
    %566 = arith.addf %562, %565 : vector<8x512xf32>
    %567 = vector.extract_strided_slice %566 {offsets = [0, 0], sizes = [8, 128], strides = [1, 1]} : vector<8x512xf32> to vector<8x128xf32>
    %568 = arith.negf %567 : vector<8x128xf32>
    %569 = math.exp %568 : vector<8x128xf32>
    %cst_285 = arith.constant 1.000000e+00 : f32
    %570 = vector.broadcast %cst_285 : f32 to vector<8x128xf32>
    %571 = arith.addf %570, %569 : vector<8x128xf32>
    %572 = arith.divf %570, %571 : vector<8x128xf32>
    %573 = vector.extract_strided_slice %566 {offsets = [0, 128], sizes = [8, 128], strides = [1, 1]} : vector<8x512xf32> to vector<8x128xf32>
    %574 = arith.negf %573 : vector<8x128xf32>
    %575 = math.exp %574 : vector<8x128xf32>
    %cst_286 = arith.constant 1.000000e+00 : f32
    %576 = vector.broadcast %cst_286 : f32 to vector<8x128xf32>
    %577 = arith.addf %576, %575 : vector<8x128xf32>
    %578 = arith.divf %576, %577 : vector<8x128xf32>
    %579 = vector.extract_strided_slice %566 {offsets = [0, 256], sizes = [8, 128], strides = [1, 1]} : vector<8x512xf32> to vector<8x128xf32>
    %580 = math.tanh %579 : vector<8x128xf32>
    %581 = vector.extract_strided_slice %566 {offsets = [0, 384], sizes = [8, 128], strides = [1, 1]} : vector<8x512xf32> to vector<8x128xf32>
    %582 = arith.negf %581 : vector<8x128xf32>
    %583 = math.exp %582 : vector<8x128xf32>
    %cst_287 = arith.constant 1.000000e+00 : f32
    %584 = vector.broadcast %cst_287 : f32 to vector<8x128xf32>
    %585 = arith.addf %584, %583 : vector<8x128xf32>
    %586 = arith.divf %584, %585 : vector<8x128xf32>
    %587 = arith.mulf %578, %550 : vector<8x128xf32>
    %588 = arith.mulf %572, %580 : vector<8x128xf32>
    %589 = arith.addf %587, %588 : vector<8x128xf32>
    %590 = math.tanh %589 : vector<8x128xf32>
    %591 = arith.mulf %586, %590 : vector<8x128xf32>
    %c6_i32_288 = arith.constant 6 : i32
    %592 = arith.index_cast %c6_i32_288 : i32 to index
    %c0_289 = arith.constant 0 : index
    %c0_290 = arith.constant 0 : index
    %593 = vector.load %arg11[%592, %c0_289, %c0_290] : memref<8x8x128xf32, #tpu.memory_space<vmem>>, vector<1x8x128xf32>
    %594 = vector.shape_cast %593 : vector<1x8x128xf32> to vector<8x128xf32>
    %c0_291 = arith.constant 0 : index
    %c0_292 = arith.constant 0 : index
    %595 = vector.load %arg10[%c0_291, %c0_292] : memref<8x256xf32, #tpu.memory_space<vmem>>, vector<8x128xf32>
    tpu.vector_store %arg10[%c0_291, %c0_292], %594 {strides = array<i32>} : memref<8x256xf32, #tpu.memory_space<vmem>>, vector<8x128xf32>,
    %c0_293 = arith.constant 0 : index
    %c128_294 = arith.constant 128 : index
    %596 = vector.load %arg10[%c0_293, %c128_294] : memref<8x256xf32, #tpu.memory_space<vmem>>, vector<8x128xf32>
    tpu.vector_store %arg10[%c0_293, %c128_294], %591 {strides = array<i32>} : memref<8x256xf32, #tpu.memory_space<vmem>>, vector<8x128xf32>,
    %c0_295 = arith.constant 0 : index
    %c0_296 = arith.constant 0 : index
    %597 = vector.load %arg10[%c0_295, %c0_296] : memref<8x256xf32, #tpu.memory_space<vmem>>, vector<8x256xf32>
    %598 = arith.truncf %597 : vector<8x256xf32> to vector<8x256xbf16>
    %c1_297 = arith.constant 1 : index
    %c0_298 = arith.constant 0 : index
    %c0_299 = arith.constant 0 : index
    %599 = vector.load %arg1[%c1_297, %c0_298, %c0_299] : memref<2x256x512xbf16, #tpu.memory_space<vmem>>, vector<1x256x512xbf16>
    %600 = vector.shape_cast %599 : vector<1x256x512xbf16> to vector<256x512xbf16>
    %cst_300 = arith.constant dense<0.000000e+00> : vector<8x512xf32>
    %601 = tpu.matmul %598, %600, %cst_300 {dimension_numbers = #tpu.dot_dimension_numbers<[1], [0], [0], [1], [0, 0, 1, 1], [], []>} : vector<8x256xbf16>, vector<256x512xbf16>, vector<8x512xf32> -> vector<8x512xf32>
    %c1_301 = arith.constant 1 : index
    %c0_302 = arith.constant 0 : index
    %c0_303 = arith.constant 0 : index
    %602 = vector.load %arg2[%c1_301, %c0_302, %c0_303] : memref<2x1x512xf32, #tpu.memory_space<vmem>>, vector<1x1x512xf32>
    %603 = vector.shape_cast %602 : vector<1x1x512xf32> to vector<1x512xf32>
    %604 = vector.broadcast %603 : vector<1x512xf32> to vector<8x512xf32>
    %605 = arith.addf %601, %604 : vector<8x512xf32>
    %606 = vector.extract_strided_slice %605 {offsets = [0, 0], sizes = [8, 128], strides = [1, 1]} : vector<8x512xf32> to vector<8x128xf32>
    %607 = arith.negf %606 : vector<8x128xf32>
    %608 = math.exp %607 : vector<8x128xf32>
    %cst_304 = arith.constant 1.000000e+00 : f32
    %609 = vector.broadcast %cst_304 : f32 to vector<8x128xf32>
    %610 = arith.addf %609, %608 : vector<8x128xf32>
    %611 = arith.divf %609, %610 : vector<8x128xf32>
    %612 = vector.extract_strided_slice %605 {offsets = [0, 128], sizes = [8, 128], strides = [1, 1]} : vector<8x512xf32> to vector<8x128xf32>
    %613 = arith.negf %612 : vector<8x128xf32>
    %614 = math.exp %613 : vector<8x128xf32>
    %cst_305 = arith.constant 1.000000e+00 : f32
    %615 = vector.broadcast %cst_305 : f32 to vector<8x128xf32>
    %616 = arith.addf %615, %614 : vector<8x128xf32>
    %617 = arith.divf %615, %616 : vector<8x128xf32>
    %618 = vector.extract_strided_slice %605 {offsets = [0, 256], sizes = [8, 128], strides = [1, 1]} : vector<8x512xf32> to vector<8x128xf32>
    %619 = math.tanh %618 : vector<8x128xf32>
    %620 = vector.extract_strided_slice %605 {offsets = [0, 384], sizes = [8, 128], strides = [1, 1]} : vector<8x512xf32> to vector<8x128xf32>
    %621 = arith.negf %620 : vector<8x128xf32>
    %622 = math.exp %621 : vector<8x128xf32>
    %cst_306 = arith.constant 1.000000e+00 : f32
    %623 = vector.broadcast %cst_306 : f32 to vector<8x128xf32>
    %624 = arith.addf %623, %622 : vector<8x128xf32>
    %625 = arith.divf %623, %624 : vector<8x128xf32>
    %626 = arith.mulf %617, %589 : vector<8x128xf32>
    %627 = arith.mulf %611, %619 : vector<8x128xf32>
    %628 = arith.addf %626, %627 : vector<8x128xf32>
    %629 = math.tanh %628 : vector<8x128xf32>
    %630 = arith.mulf %625, %629 : vector<8x128xf32>
    %c7_i32_307 = arith.constant 7 : i32
    %631 = arith.index_cast %c7_i32_307 : i32 to index
    %c0_308 = arith.constant 0 : index
    %c0_309 = arith.constant 0 : index
    %632 = vector.load %arg11[%631, %c0_308, %c0_309] : memref<8x8x128xf32, #tpu.memory_space<vmem>>, vector<1x8x128xf32>
    %633 = vector.shape_cast %632 : vector<1x8x128xf32> to vector<8x128xf32>
    %c0_310 = arith.constant 0 : index
    %c0_311 = arith.constant 0 : index
    %634 = vector.load %arg10[%c0_310, %c0_311] : memref<8x256xf32, #tpu.memory_space<vmem>>, vector<8x128xf32>
    tpu.vector_store %arg10[%c0_310, %c0_311], %633 {strides = array<i32>} : memref<8x256xf32, #tpu.memory_space<vmem>>, vector<8x128xf32>,
    %c0_312 = arith.constant 0 : index
    %c128_313 = arith.constant 128 : index
    %635 = vector.load %arg10[%c0_312, %c128_313] : memref<8x256xf32, #tpu.memory_space<vmem>>, vector<8x128xf32>
    tpu.vector_store %arg10[%c0_312, %c128_313], %630 {strides = array<i32>} : memref<8x256xf32, #tpu.memory_space<vmem>>, vector<8x128xf32>,
    %c0_314 = arith.constant 0 : index
    %c0_315 = arith.constant 0 : index
    %636 = vector.load %arg10[%c0_314, %c0_315] : memref<8x256xf32, #tpu.memory_space<vmem>>, vector<8x256xf32>
    %637 = arith.truncf %636 : vector<8x256xf32> to vector<8x256xbf16>
    %c1_316 = arith.constant 1 : index
    %c0_317 = arith.constant 0 : index
    %c0_318 = arith.constant 0 : index
    %638 = vector.load %arg1[%c1_316, %c0_317, %c0_318] : memref<2x256x512xbf16, #tpu.memory_space<vmem>>, vector<1x256x512xbf16>
    %639 = vector.shape_cast %638 : vector<1x256x512xbf16> to vector<256x512xbf16>
    %cst_319 = arith.constant dense<0.000000e+00> : vector<8x512xf32>
    %640 = tpu.matmul %637, %639, %cst_319 {dimension_numbers = #tpu.dot_dimension_numbers<[1], [0], [0], [1], [0, 0, 1, 1], [], []>} : vector<8x256xbf16>, vector<256x512xbf16>, vector<8x512xf32> -> vector<8x512xf32>
    %c1_320 = arith.constant 1 : index
    %c0_321 = arith.constant 0 : index
    %c0_322 = arith.constant 0 : index
    %641 = vector.load %arg2[%c1_320, %c0_321, %c0_322] : memref<2x1x512xf32, #tpu.memory_space<vmem>>, vector<1x1x512xf32>
    %642 = vector.shape_cast %641 : vector<1x1x512xf32> to vector<1x512xf32>
    %643 = vector.broadcast %642 : vector<1x512xf32> to vector<8x512xf32>
    %644 = arith.addf %640, %643 : vector<8x512xf32>
    %645 = vector.extract_strided_slice %644 {offsets = [0, 0], sizes = [8, 128], strides = [1, 1]} : vector<8x512xf32> to vector<8x128xf32>
    %646 = arith.negf %645 : vector<8x128xf32>
    %647 = math.exp %646 : vector<8x128xf32>
    %cst_323 = arith.constant 1.000000e+00 : f32
    %648 = vector.broadcast %cst_323 : f32 to vector<8x128xf32>
    %649 = arith.addf %648, %647 : vector<8x128xf32>
    %650 = arith.divf %648, %649 : vector<8x128xf32>
    %651 = vector.extract_strided_slice %644 {offsets = [0, 128], sizes = [8, 128], strides = [1, 1]} : vector<8x512xf32> to vector<8x128xf32>
    %652 = arith.negf %651 : vector<8x128xf32>
    %653 = math.exp %652 : vector<8x128xf32>
    %cst_324 = arith.constant 1.000000e+00 : f32
    %654 = vector.broadcast %cst_324 : f32 to vector<8x128xf32>
    %655 = arith.addf %654, %653 : vector<8x128xf32>
    %656 = arith.divf %654, %655 : vector<8x128xf32>
    %657 = vector.extract_strided_slice %644 {offsets = [0, 256], sizes = [8, 128], strides = [1, 1]} : vector<8x512xf32> to vector<8x128xf32>
    %658 = math.tanh %657 : vector<8x128xf32>
    %659 = vector.extract_strided_slice %644 {offsets = [0, 384], sizes = [8, 128], strides = [1, 1]} : vector<8x512xf32> to vector<8x128xf32>
    %660 = arith.negf %659 : vector<8x128xf32>
    %661 = math.exp %660 : vector<8x128xf32>
    %cst_325 = arith.constant 1.000000e+00 : f32
    %662 = vector.broadcast %cst_325 : f32 to vector<8x128xf32>
    %663 = arith.addf %662, %661 : vector<8x128xf32>
    %664 = arith.divf %662, %663 : vector<8x128xf32>
    %665 = arith.mulf %656, %628 : vector<8x128xf32>
    %666 = arith.mulf %650, %658 : vector<8x128xf32>
    %667 = arith.addf %665, %666 : vector<8x128xf32>
    %668 = math.tanh %667 : vector<8x128xf32>
    %669 = arith.mulf %664, %668 : vector<8x128xf32>
    %c8_i32_326 = arith.constant 8 : i32
    %c1_327 = arith.constant 1 : index
    %c0_328 = arith.constant 0 : index
    %c0_329 = arith.constant 0 : index
    %670 = vector.load %arg8[%c1_327, %c0_328, %c0_329] : memref<2x8x128xf32, #tpu.memory_space<vmem>>, vector<1x8x128xf32>
    %671 = vector.shape_cast %670 : vector<1x8x128xf32> to vector<8x128xf32>
    %672 = vector.shape_cast %669 : vector<8x128xf32> to vector<1x8x128xf32>
    tpu.vector_store %arg8[%c1_327, %c0_328, %c0_329], %672 {strides = array<i32>} : memref<2x8x128xf32, #tpu.memory_space<vmem>>, vector<1x8x128xf32>,
    %c1_330 = arith.constant 1 : index
    %c0_331 = arith.constant 0 : index
    %c0_332 = arith.constant 0 : index
    %673 = vector.load %arg9[%c1_330, %c0_331, %c0_332] : memref<2x8x128xf32, #tpu.memory_space<vmem>>, vector<1x8x128xf32>
    %674 = vector.shape_cast %673 : vector<1x8x128xf32> to vector<8x128xf32>
    %675 = vector.shape_cast %667 : vector<8x128xf32> to vector<1x8x128xf32>
    tpu.vector_store %arg9[%c1_330, %c0_331, %c0_332], %675 {strides = array<i32>} : memref<2x8x128xf32, #tpu.memory_space<vmem>>, vector<1x8x128xf32>,
    %676 = arith.truncf %669 : vector<8x128xf32> to vector<8x128xbf16>
    %c0_333 = arith.constant 0 : index
    %c0_334 = arith.constant 0 : index
    %677 = vector.load %arg5[%c0_333, %c0_334] : memref<128x128xbf16, #tpu.memory_space<vmem>>, vector<128x128xbf16>
    %cst_335 = arith.constant dense<0.000000e+00> : vector<8x128xf32>
    %678 = tpu.matmul %676, %677, %cst_335 {dimension_numbers = #tpu.dot_dimension_numbers<[1], [0], [0], [1], [0, 0, 1, 1], [], []>} : vector<8x128xbf16>, vector<128x128xbf16>, vector<8x128xf32> -> vector<8x128xf32>
    %c0_336 = arith.constant 0 : index
    %c0_337 = arith.constant 0 : index
    %679 = vector.load %arg6[%c0_336, %c0_337] : memref<1x128xf32, #tpu.memory_space<vmem>>, vector<1x128xf32>
    %680 = vector.broadcast %679 : vector<1x128xf32> to vector<8x128xf32>
    %681 = arith.addf %678, %680 : vector<8x128xf32>
    %682 = arith.negf %681 : vector<8x128xf32>
    %683 = math.exp %682 : vector<8x128xf32>
    %cst_338 = arith.constant 1.000000e+00 : f32
    %684 = vector.broadcast %cst_338 : f32 to vector<8x128xf32>
    %685 = arith.addf %684, %683 : vector<8x128xf32>
    %686 = arith.divf %684, %685 : vector<8x128xf32>
    %c0_339 = arith.constant 0 : index
    %c0_340 = arith.constant 0 : index
    %687 = vector.load %arg7[%c0_339, %c0_340] : memref<8x128xf32, #tpu.memory_space<vmem>>, vector<8x128xf32>
    tpu.vector_store %arg7[%c0_339, %c0_340], %686 {strides = array<i32>} : memref<8x128xf32, #tpu.memory_space<vmem>>, vector<8x128xf32>,
    return
  }
}

</mosaic_0001>

<bundles_post_ra>
// kernel: tpu_custom_call.1
= control target key start
LH: loop header
LB: loop body
LE: loop exit
PB: predicated region body
PF: predicated region fallthrough
CT: control target
= control target key end

     0   :  { %15 = vsyncpa [#allocation5], 0  ;;  %s12861_s0 = inlined_call_operand.hbm [shape: f32[8,8,128], index: 0, kind: input, shape index: {}]   ;;  %s12862_s1 = inlined_call_operand.hbm [shape: bf16[2,256,512], index: 1, kind: input, shape index: {}]   ;;  %s12863_s2 = inlined_call_operand.hbm [shape: f32[2,1,512], index: 2, kind: input, shape index: {}]   ;;  %s12864_s3 = inlined_call_operand.hbm [shape: f32[2,8,128], index: 3, kind: input, shape index: {}]   ;;  %s12865_s4 = inlined_call_operand.hbm [shape: f32[2,8,128], index: 4, kind: input, shape index: {}]   ;;  %s12866_s5 = inlined_call_operand.hbm [shape: bf16[128,128], index: 5, kind: input, shape index: {}]   ;;  %s12867_s6 = inlined_call_operand.vmem [shape: f32[1,128], index: 6, kind: input, shape index: {}]   ;;  %s12868_s7 = inlined_call_operand.hbm [shape: f32[8,128], index: 7, kind: output, shape index: {0}]   ;;  %s12869_s8 = inlined_call_operand.hbm [shape: f32[2,8,128], index: 8, kind: output, shape index: {1}]   ;;  %s12870_s9 = inlined_call_operand.hbm [shape: f32[2,8,128], index: 9, kind: output, shape index: {2}]  }
   0x1   :  { %16 = vsyncpa [#allocation8], 0 }
   0x2   :  { %17 = vsyncpa [#allocation11], 0 }
   0x3   :  { %18 = vsyncpa [#allocation14], 0 }
   0x4   :  { %19 = vsyncpa [#allocation6], 0 }
   0x5   :  { %20 = vsyncpa [#allocation17], 0  ;;  %s10844_s30 = smov [#allocation7]  }
   0x6   :  { %s38_s10 = sshll.u32 %s10844_s30, 4  ;;  %s39_s10 = int_to_ptr.vmem [resolvable:$true] %s38_s10 }
   0x7   :  { %s10660_s11 = scalar_lea.vmem %s39_s10, 16384  ;;  %p10665_p1 = scmp.lt.s32.totalorder %s39_s10, %s39_s10 }
   0x8   :  { %p10661_p0 = scmp.ne.s32.totalorder %s39_s10, %s10660_s11  ;;  %p10666_p2 = scmp.lt.s32.totalorder %s10660_s11, %s10660_s11 }
   0xa   :  { %p10667_p3 = por %p10666_p2, %p10665_p1 }
   0xc   :  { %p10668_p4 = pnand %p10667_p3, %p10661_p0 }
   0xe   :  { %10671 = shalt.err (!%p10668_p4)
}
   0xf   :  { %s10845_s12 = smov 256   ;;  %s10846_s13 = smov 16  }
  0x10   :  { %44 = dma.hbm_to_vmem [thread:$0]  %s12862_s1, 16384, %s39_s10, [#allocation8], %s10845_s12, %s10845_s12, %s10846_s13  }
  0x11   :  { %s10847_s16 = smov [#allocation10]   ;;  %s10848_s18 = smov [#allocation4]  }
  0x12   :  { %s62_s17 = sshll.u32 %s10847_s16, 4  ;;  %s26_s19 = sshll.u32 %s10848_s18, 4  ;;  %s63_s17 = int_to_ptr.vmem [resolvable:$true] %s62_s17  ;;  %s27_s19 = int_to_ptr.vmem [resolvable:$true] %s26_s19 }
  0x13   :  { %s10680_s20 = scalar_lea.vmem %s63_s17, 256  ;;  %p10685_p6 = scmp.lt.s32.totalorder %s63_s17, %s63_s17 }
  0x14   :  { %p10681_p5 = scmp.ne.s32.totalorder %s63_s17, %s10680_s20  ;;  %p10686_p7 = scmp.lt.s32.totalorder %s10680_s20, %s10680_s20 }
  0x16   :  { %p10687_p8 = por %p10686_p7, %p10685_p6 }
  0x18   :  { %p10688_p9 = pnand %p10687_p8, %p10681_p5 }
  0x1a   :  { %10691 = shalt.err (!%p10688_p9)
}
  0x1b   :  { %s10849_s21 = smov 128   ;;  %s10850_s22 = smov 8  }
  0x1c   :  { %68 = dma.hbm_to_vmem [thread:$0]  %s12864_s3, 256, %s63_s17, [#allocation11], %s10849_s21, %s10849_s21, %s10850_s22  }
  0x1d   :  { %s10700_s1 = scalar_lea.vmem %s27_s19, 1024  ;;  %p10705_p11 = scmp.lt.s32.totalorder %s27_s19, %s27_s19 }
  0x1e   :  { %p10701_p10 = scmp.ne.s32.totalorder %s27_s19, %s10700_s1  ;;  %p10706_p12 = scmp.lt.s32.totalorder %s10700_s1, %s10700_s1 }
  0x20   :  { %p10707_p13 = por %p10706_p12, %p10705_p11 }
  0x22   :  { %p10708_p0 = pnand %p10707_p13, %p10701_p10 }
  0x24   :  { %10711 = shalt.err (!%p10708_p0)
}
  0x25   :  { %32 = dma.hbm_to_vmem [thread:$0]  %s12861_s0, 1024, %s27_s19, [#allocation5], %s10849_s21, %s10849_s21, %s10850_s22  }
  0x26   :  { %s10851_s27 = smov [#allocation9]  }
  0x27   :  { %s50_s28 = sshll.u32 %s10851_s27, 4  ;;  %s51_s28 = int_to_ptr.vmem [resolvable:$true] %s50_s28 }
  0x28   :  { %s10720_s29 = scalar_lea.vmem %s51_s28, 128  ;;  %p10725_p2 = scmp.lt.s32.totalorder %s51_s28, %s51_s28 }
  0x29   :  { %p10721_p1 = scmp.ne.s32.totalorder %s51_s28, %s10720_s29  ;;  %p10726_p3 = scmp.lt.s32.totalorder %s10720_s29, %s10720_s29 }
  0x2b   :  { %p10727_p4 = por %p10726_p3, %p10725_p2 }
  0x2d   :  { %p10728_p5 = pnand %p10727_p4, %p10721_p1 }
  0x2f   :  { %10731 = shalt.err (!%p10728_p5)
}
  0x30   :  { %s10852_s3 = smov 64   ;;  %s10853_s30 = smov 4  }
  0x31   :  { %56 = dma.hbm_to_vmem [thread:$0]  %s12863_s2, 128, %s51_s28, [#allocation8], %s10852_s3, %s10852_s3, %s10853_s30  }
  0x32   :  { %s10854_s12 = smov [#allocation12]   ;;  %s10855_s14 = smov [#allocation13]  }
  0x33   :  { %s74_s13 = sshll.u32 %s10854_s12, 4  ;;  %s86_s0 = sshll.u32 %s10855_s14, 4  ;;  %s75_s13 = int_to_ptr.vmem [resolvable:$true] %s74_s13  ;;  %s87_s0 = int_to_ptr.vmem [resolvable:$true] %s86_s0 }
  0x34   :  { %s10740_s15 = scalar_lea.vmem %s75_s13, 256  ;;  %p10745_p7 = scmp.lt.s32.totalorder %s75_s13, %s75_s13 }
  0x35   :  { %p10741_p6 = scmp.ne.s32.totalorder %s75_s13, %s10740_s15  ;;  %p10746_p8 = scmp.lt.s32.totalorder %s10740_s15, %s10740_s15 }
  0x37   :  { %p10747_p9 = por %p10746_p8, %p10745_p7 }
  0x39   :  { %p10748_p10 = pnand %p10747_p9, %p10741_p6 }
  0x3b   :  { %10751 = shalt.err (!%p10748_p10)
}
  0x3c   :  { %80 = dma.hbm_to_vmem [thread:$0]  %s12865_s4, 256, %s75_s13, [#allocation11], %s10849_s21, %s10849_s21, %s10850_s22  }
  0x3d   :  { %s10760_s2 = scalar_lea.vmem %s87_s0, 1024  ;;  %p10765_p12 = scmp.lt.s32.totalorder %s87_s0, %s87_s0 }
  0x3e   :  { %p10761_p11 = scmp.ne.s32.totalorder %s87_s0, %s10760_s2  ;;  %p10766_p13 = scmp.lt.s32.totalorder %s10760_s2, %s10760_s2 }
  0x40   :  { %p10767_p0 = por %p10766_p13, %p10765_p12 }
  0x42   :  { %p10768_p1 = pnand %p10767_p0, %p10761_p11 }
  0x44   :  { %10771 = shalt.err (!%p10768_p1)
}
  0x45   :  { %92 = dma.hbm_to_vmem [thread:$0]  %s12866_s5, 1024, %s87_s0, [#allocation14], %s10852_s3, %s10852_s3, %s10853_s30  }
  0x46   :  { %10832 = dma.done.wait [#allocation5], 1024  }
  0x47   :  { %10833 = vsyncadd [#allocation5], 4294966272 }
  0x48   :  { %10834 = dma.done.wait [#allocation8], 16512  }
  0x49   :  { %10835 = vsyncadd [#allocation8], 4294950784 }
  0x4a   :  { %10836 = dma.done.wait [#allocation11], 512  }
  0x4b   :  { %10837 = vsyncadd [#allocation11], 4294966784 }
  0x4c   :  { %10838 = dma.done.wait [#allocation14], 1024  }
  0x4d   :  { %10839 = vsyncadd [#allocation14], 4294966272  ;;  %v10938_v0 = vld [vmem:[#allocation7 + $0xe4] ss:$16 sps:$4 sm:$0xff]   ;;  %v10940_v1 = vld [vmem:[#allocation7 + $0xe0] ss:$16 sps:$4 sm:$0xff]  }
  0x4e   :  { %529 = vmatprep.subr.bf16.mxu0 %v10938_v0  ;;  %v10943_v2 = vld [vmem:[#allocation7 + $0xc4] ss:$16 sps:$4 sm:$0xff]   ;;  %v10946_v3 = vld [vmem:[#allocation7 + $0xc0] ss:$16 sps:$4 sm:$0xff]   ;;  %v10951_v5 = vld [vmem:[#allocation7 + $0xec] ss:$16 sps:$4 sm:$0xff]  }
  0x4f   :  { %530 = vmatpush1.bf16.msra.mxu0 %v10940_v1  ;;  %v10949_v4 = vld [vmem:[#allocation7 + $0xa4] ss:$16 sps:$4 sm:$0xff]   ;;  %v10953_v6 = vld [vmem:[#allocation7 + $0xe8] ss:$16 sps:$4 sm:$0xff]   ;;  %v10956_v7 = vld [vmem:[#allocation7 + $0xa0] ss:$16 sps:$4 sm:$0xff]   ;;  %570 = vmatprep.subr.bf16.mxu1 %v10951_v5 }
  0x50   :  { %531 = vmatprep.subr.bf16.mxu0 %v10943_v2  ;;  %v10960_v8 = vld [vmem:[#allocation7 + $0x84] ss:$16 sps:$4 sm:$0xff]   ;;  %571 = vmatpush1.bf16.msra.mxu1 %v10953_v6  ;;  %v10963_v9 = vld [vmem:[#allocation7 + $0xcc] ss:$16 sps:$4 sm:$0xff]   ;;  %v10965_v10 = vld [vmem:[#allocation7 + $0xc8] ss:$16 sps:$4 sm:$0xff]  }
  0x51   :  { %572 = vmatprep.subr.bf16.mxu1 %v10963_v9  ;;  %v10969_v11 = vld [vmem:[#allocation7 + $0x80] ss:$16 sps:$4 sm:$0xff]   ;;  %v10971_v12 = vld [vmem:[#allocation7 + $0x64] ss:$16 sps:$4 sm:$0xff]   ;;  %v10973_v13 = vld [vmem:[#allocation7 + $0xac] ss:$16 sps:$4 sm:$0xff]  }
  0x52   :  { %v10977_v14 = vld [vmem:[#allocation7 + $0xa8] ss:$16 sps:$4 sm:$0xff]   ;;  %v10980_v15 = vld [vmem:[#allocation7 + $0x8c] ss:$16 sps:$4 sm:$0xff]   ;;  %v10983_v16 = vld [vmem:[#allocation7 + $0x60] ss:$16 sps:$4 sm:$0xff]  }
  0x53   :  { %532 = vmatpush1.bf16.msra.mxu0 %v10946_v3  ;;  %v10986_v17 = vld [vmem:[#allocation7 + $0x44] ss:$16 sps:$4 sm:$0xff]   ;;  %v10989_v18 = vld [vmem:[#allocation7 + $0x88] ss:$16 sps:$4 sm:$0xff]   ;;  %v10992_v19 = vld [vmem:[#allocation7 + $0x6c] ss:$16 sps:$4 sm:$0xff]  }
  0x54   :  { %533 = vmatprep.subr.bf16.mxu0 %v10949_v4  ;;  %573 = vmatpush1.bf16.msra.mxu1 %v10965_v10  ;;  %v10995_v20 = vld [vmem:[#allocation7 + $0x40] ss:$16 sps:$4 sm:$0xff]   ;;  %v10997_v21 = vld [vmem:[#allocation7 + $0x24] ss:$16 sps:$4 sm:$0xff]   ;;  %v11001_v22 = vld [vmem:[#allocation7 + $0x68] ss:$16 sps:$4 sm:$0xff]  }
  0x55   :  { %574 = vmatprep.subr.bf16.mxu1 %v10973_v13  ;;  %v11004_v23 = vld [vmem:[#allocation7 + $0x4c] ss:$16 sps:$4 sm:$0xff]   ;;  %v11007_v24 = vld [vmem:[#allocation7 + $0x20] ss:$16 sps:$4 sm:$0xff]   ;;  %v11010_v25 = vld [vmem:[#allocation7 + $0x4] ss:$16 sps:$4 sm:$0xff]  }
  0x56   :  { %v11013_v26 = vld [vmem:[#allocation7 + $0x48] ss:$16 sps:$4 sm:$0xff]   ;;  %v11016_v27 = vld [vmem:[#allocation7 + $0x2c] ss:$16 sps:$4 sm:$0xff]   ;;  %v11019_v28 = vld [vmem:[#allocation7] ss:$16 sps:$4 sm:$0xff]  }
  0x57   :  { %534 = vmatpush1.bf16.msra.mxu0 %v10956_v7  ;;  %v11021_v29 = vld [vmem:[#allocation7 + $0x1e4] ss:$16 sps:$4 sm:$0xff]   ;;  %v11025_v30 = vld [vmem:[#allocation7 + $0x28] ss:$16 sps:$4 sm:$0xff]   ;;  %v11028_v31 = vld [vmem:[#allocation7 + $0xc] ss:$16 sps:$4 sm:$0xff]  }
  0x58   :  { %535 = vmatprep.subr.bf16.mxu0 %v10960_v8  ;;  %575 = vmatpush1.bf16.msra.mxu1 %v10977_v14  ;;  %v11031_v32 = vld [vmem:[#allocation7 + $0x1e0] ss:$16 sps:$4 sm:$0xff]   ;;  %v11034_v33 = vld [vmem:[#allocation7 + $0x1c4] ss:$16 sps:$4 sm:$0xff]   ;;  %v11037_v34 = vld [vmem:[#allocation7 + $0x8] ss:$16 sps:$4 sm:$0xff]  }
  0x59   :  { %576 = vmatprep.subr.bf16.mxu1 %v10980_v15  ;;  %v11040_v35 = vld [vmem:[#allocation7 + $0x1ec] ss:$16 sps:$4 sm:$0xff]   ;;  %v11043_v36 = vld [vmem:[#allocation7 + $0x1c0] ss:$16 sps:$4 sm:$0xff]   ;;  %v11045_v37 = vld [vmem:[#allocation7 + $0x1a4] ss:$16 sps:$4 sm:$0xff]  }
  0x5a   :  { %v11049_v38 = vld [vmem:[#allocation7 + $0x1e8] ss:$16 sps:$4 sm:$0xff]   ;;  %v11052_v39 = vld [vmem:[#allocation7 + $0x1cc] ss:$16 sps:$4 sm:$0xff]   ;;  %v11055_v41 = vld [vmem:[#allocation7 + $0x1a0] ss:$16 sps:$4 sm:$0xff]  }
  0x5b   :  { %536 = vmatpush1.bf16.msra.mxu0 %v10969_v11  ;;  %v114_v40 = vld [vmem:[#allocation10] sm:$0xff]  ;;  %v11058_v43 = vld [vmem:[#allocation7 + $0x184] ss:$16 sps:$4 sm:$0xff]   ;;  %v11063_v45 = vld [vmem:[#allocation7 + $0x180] ss:$16 sps:$4 sm:$0xff]   ;;  %vm10857_vm0 = vmmov 0  }
  0x5c   :  { %537 = vmatprep.subr.bf16.mxu0 %v10971_v12  ;;  %577 = vmatpush1.bf16.msra.mxu1 %v10989_v18  ;;  %v122_v42 = vpack.c.bf16 %v114_v40, %v114_v40  ;;  %v11061_v44 = vld [vmem:[#allocation7 + $0x1c8] ss:$16 sps:$4 sm:$0xff]   ;;  %v11066_v46 = vld [vmem:[#allocation7 + $0x1ac] ss:$16 sps:$4 sm:$0xff]   ;;  %v11068_v47 = vld [vmem:[#allocation7 + $0x164] ss:$16 sps:$4 sm:$0xff]  }
  0x5d   :  { %578 = vmatprep.subr.bf16.mxu1 %v10992_v19  ;;  %v11071_v48 = vld [vmem:[#allocation7 + $0x1a8] ss:$16 sps:$4 sm:$0xff]   ;;  %v11073_v49 = vld [vmem:[#allocation7 + $0x18c] ss:$16 sps:$4 sm:$0xff]   ;;  %v11077_v50 = vld [vmem:[#allocation7 + $0x160] ss:$16 sps:$4 sm:$0xff]  }
  0x5e   :  { %561 = vmatprep.mubr.bf16.mxu0 %v122_v42  ;;  %602 = vmatprep.mubr.bf16.mxu1 %v122_v42  ;;  %v11080_v51 = vld [vmem:[#allocation7 + $0x144] ss:$16 sps:$4 sm:$0xff]   ;;  %v11082_v52 = vld [vmem:[#allocation7 + $0x188] ss:$16 sps:$4 sm:$0xff]   ;;  %v11085_v53 = vld [vmem:[#allocation7 + $0x16c] ss:$16 sps:$4 sm:$0xff]  }
  0x5f   :  { %538 = vmatpush1.bf16.msra.mxu0 %v10983_v16  ;;  %v11089_v54 = vld [vmem:[#allocation7 + $0x140] ss:$16 sps:$4 sm:$0xff]   ;;  %v11092_v55 = vld [vmem:[#allocation7 + $0x124] ss:$16 sps:$4 sm:$0xff]   ;;  %v11094_v56 = vld [vmem:[#allocation7 + $0x168] ss:$16 sps:$4 sm:$0xff]  }
  0x60   :  { %539 = vmatprep.subr.bf16.mxu0 %v10986_v17  ;;  %579 = vmatpush1.bf16.msra.mxu1 %v11001_v22  ;;  %13062 = vst [vmem:[#allocation25_spill] sm:$0xff] %v11089_v54  ;;  %13063 = vst [vmem:[#allocation26_spill] sm:$0xff] %v11092_v55  ;;  %v11097_v57 = vld [vmem:[#allocation7 + $0x14c] ss:$16 sps:$4 sm:$0xff]   ;;  %v11101_v58 = vld [vmem:[#allocation7 + $0x120] ss:$16 sps:$4 sm:$0xff]  }
  0x61   :  { %580 = vmatprep.subr.bf16.mxu1 %v11004_v23  ;;  %v11104_v59 = vld [vmem:[#allocation7 + $0x104] ss:$16 sps:$4 sm:$0xff]   ;;  %v11106_v60 = vld [vmem:[#allocation7 + $0x148] ss:$16 sps:$4 sm:$0xff]   ;;  %v11109_v61 = vld [vmem:[#allocation7 + $0x12c] ss:$16 sps:$4 sm:$0xff]  }
  0x62   :  { %v11113_v62 = vld [vmem:[#allocation7 + $0x100] ss:$16 sps:$4 sm:$0xff]   ;;  %v11116_v40 = vld [vmem:[#allocation7 + $0x128] ss:$16 sps:$4 sm:$0xff]   ;;  %v11119_v42 = vld [vmem:[#allocation7 + $0x10c] ss:$16 sps:$4 sm:$0xff]  }
  0x63   :  { %540 = vmatpush1.bf16.msra.mxu0 %v10995_v20  ;;  %v116_v63 = vld [vmem:[#allocation4] sm:$0xff]  ;;  %s10858_s4 = smov [#allocation16]  }
  0x64   :  { %541 = vmatprep.subr.bf16.mxu0 %v10997_v21  ;;  %581 = vmatpush1.bf16.msra.mxu1 %v11013_v26  ;;  %s8588_s5 = sshll.u32 %s10858_s4, 4  ;;  %s8589_s5 = int_to_ptr.vmem [resolvable:$true] %s8588_s5 }
  0x65   :  { %582 = vmatprep.subr.bf16.mxu1 %v11016_v27  ;;  %s10772_s20 = scalar_lea.vmem %s8589_s5, 256  ;;  %p10777_p3 = scmp.lt.s32.totalorder %s8589_s5, %s8589_s5 }
  0x66   :  { %p10773_p2 = scmp.ne.s32.totalorder %s8589_s5, %s10772_s20  ;;  %p10778_p4 = scmp.lt.s32.totalorder %s10772_s20, %s10772_s20 }
  0x67   :  { %542 = vmatpush1.bf16.msra.mxu0 %v11007_v24 }
  0x68   :  { %543 = vmatprep.subr.bf16.mxu0 %v11010_v25  ;;  %583 = vmatpush1.bf16.msra.mxu1 %v11025_v30  ;;  %p10779_p5 = por %p10778_p4, %p10777_p3 }
  0x69   :  { %584 = vmatprep.subr.bf16.mxu1 %v11028_v31 }
  0x6a   :  { %p10780_p6 = pnand %p10779_p5, %p10773_p2 }
  0x6b   :  { %544 = vmatpush1.bf16.msra.mxu0 %v11019_v28 }
  0x6c   :  { %545 = vmatprep.subr.bf16.mxu0 %v11021_v29  ;;  %585 = vmatpush1.bf16.msra.mxu1 %v11037_v34 }
  0x6d   :  { %586 = vmatprep.subr.bf16.mxu1 %v11040_v35 }
  0x6f   :  { %546 = vmatpush2.bf16.msra.mxu0 %v11031_v32 }
  0x70   :  { %547 = vmatprep.subr.bf16.mxu0 %v11034_v33  ;;  %587 = vmatpush2.bf16.msra.mxu1 %v11049_v38 }
  0x71   :  { %588 = vmatprep.subr.bf16.mxu1 %v11052_v39 }
  0x73   :  { %548 = vmatpush2.bf16.msra.mxu0 %v11043_v36 }
  0x74   :  { %549 = vmatprep.subr.bf16.mxu0 %v11045_v37  ;;  %589 = vmatpush2.bf16.msra.mxu1 %v11061_v44 }
  0x75   :  { %590 = vmatprep.subr.bf16.mxu1 %v11066_v46 }
  0x77   :  { %550 = vmatpush2.bf16.msra.mxu0 %v11055_v41 }
  0x78   :  { %551 = vmatprep.subr.bf16.mxu0 %v11058_v43  ;;  %591 = vmatpush2.bf16.msra.mxu1 %v11071_v48 }
  0x79   :  { %592 = vmatprep.subr.bf16.mxu1 %v11073_v49 }
  0x7b   :  { %552 = vmatpush2.bf16.msra.mxu0 %v11063_v45 }
  0x7c   :  { %553 = vmatprep.subr.bf16.mxu0 %v11068_v47  ;;  %593 = vmatpush2.bf16.msra.mxu1 %v11082_v52 }
  0x7d   :  { %594 = vmatprep.subr.bf16.mxu1 %v11085_v53 }
  0x7f   :  { %554 = vmatpush2.bf16.msra.mxu0 %v11077_v50 }
  0x80   :  { %555 = vmatprep.subr.bf16.mxu0 %v11080_v51  ;;  %595 = vmatpush2.bf16.msra.mxu1 %v11094_v56 }
  0x81   :  { %596 = vmatprep.subr.bf16.mxu1 %v11097_v57 }
  0x83   :  { %556 = vmatpush2.bf16.msra.mxu0 %v11089_v54  ;;  %v11124_v54 = vld [vmem:[#allocation7 + $0x108] ss:$16 sps:$4 sm:$0xff]  }
  0x84   :  { %557 = vmatprep.subr.bf16.mxu0 %v11092_v55  ;;  %597 = vmatpush2.bf16.msra.mxu1 %v11106_v60  ;;  %v121_v55 = vpack.c.bf16 %v116_v63, %v116_v63  ;;  %v10603_v63 = vld [vmem:[#allocation7 + $0xac] ss:$16 sps:$4 sm:$0xff]  }
  0x85   :  { %598 = vmatprep.subr.bf16.mxu1 %v11109_v61 }
  0x87   :  { %558 = vmatpush2.bf16.msra.mxu0 %v11101_v58 }
  0x88   :  { %559 = vmatprep.subr.bf16.mxu0 %v11104_v59  ;;  %599 = vmatpush2.bf16.msra.mxu1 %v11116_v40 }
  0x89   :  { %600 = vmatprep.subr.bf16.mxu1 %v11119_v42 }
  0x8b   :  { %560 = vmatpush2.bf16.msra.mxu0 %v11113_v62 }
  0x8c   :  { %1050 = vmatprep.subr.bf16.mxu0 %v10938_v0  ;;  %601 = vmatpush2.bf16.msra.mxu1 %v11124_v54  ;;  %v13064_v0 = vld [vmem:[#allocation25_spill] sm:$0xff] }
  0x8d   :  { %1091 = vmatprep.subr.bf16.mxu1 %v10951_v5 }
  0x8e   :  { %562 = vmatmul.mubr.bf16.vlgmr.msra.gmra.mxu0 %v121_v55 }
  0x8f   :  { %1051 = vmatpush1.bf16.msra.mxu0 %v10940_v1  ;;  %603 = vmatmul.mubr.bf16.vlgmr.msra.gmra.mxu1 %v121_v55  ;;  %v13065_v1 = vld [vmem:[#allocation26_spill] sm:$0xff] }
  0x90   :  { %1052 = vmatprep.subr.bf16.mxu0 %v10943_v2  ;;  %1092 = vmatpush1.bf16.msra.mxu1 %v10953_v6  ;;  %v10594_v2 = vld [vmem:[#allocation7 + $0xe4] ss:$16 sps:$4 sm:$0xff]   ;;  %v10599_v55 = vld [vmem:[#allocation7 + $0xcc] ss:$16 sps:$4 sm:$0xff]  }
  0x91   :  { %1093 = vmatprep.subr.bf16.mxu1 %v10963_v9 }
  0x93   :  { %1053 = vmatpush1.bf16.msra.mxu0 %v10946_v3  ;;  %v10595_v3 = vld [vmem:[#allocation7 + $0xec] ss:$16 sps:$4 sm:$0xff]  }
  0x94   :  { %1054 = vmatprep.subr.bf16.mxu0 %v10949_v4  ;;  %1094 = vmatpush1.bf16.msra.mxu1 %v10965_v10  ;;  %v189_v4 = vlaneseq }
  0x95   :  { %1095 = vmatprep.subr.bf16.mxu1 %v10973_v13 }
  0x96   :  { %v190_v5 = vshrl.u32 %v189_v4, 7  ;;  %v10608_v4 = vld [vmem:[#allocation7 + $0x80] ss:$16 sps:$4 sm:$0xff]  }
  0x97   :  { %1055 = vmatpush1.bf16.msra.mxu0 %v10956_v7  ;;  %v187_v7 = vld [vmem:[#allocation9] sm:$0xf] }
  0x98   :  { %1056 = vmatprep.subr.bf16.mxu0 %v10960_v8  ;;  %1096 = vmatpush1.bf16.msra.mxu1 %v10977_v14  ;;  %v11194_v6 = vsub.s32 0, %v190_v5  ;;  %v11196_v8 = vsub.s32 1, %v190_v5 }
  0x99   :  { %1097 = vmatprep.subr.bf16.mxu1 %v10980_v15 }
  0x9a   :  { %13066 = vst [vmem:[#allocation25_spill] sm:$0xff] %v11194_v6  ;;  %13067 = vst [vmem:[#allocation26_spill] sm:$0xff] %v11196_v8  ;;  %v192_v9 = vrot.slane %v187_v7, %v11194_v6  ;;  %v196_v10 = vrot.slane %v187_v7, %v11196_v8 }
  0x9b   :  { %1057 = vmatpush1.bf16.msra.mxu0 %v10969_v11 }
  0x9c   :  { %1058 = vmatprep.subr.bf16.mxu0 %v10971_v12  ;;  %1098 = vmatpush1.bf16.msra.mxu1 %v10989_v18 }
  0x9d   :  { %1099 = vmatprep.subr.bf16.mxu1 %v10992_v19 }
  0x9f   :  { %1059 = vmatpush1.bf16.msra.mxu0 %v10983_v16 }
  0xa0   :  { %1060 = vmatprep.subr.bf16.mxu0 %v10986_v17  ;;  %1100 = vmatpush1.bf16.msra.mxu1 %v11001_v22  ;;  %v11200_v17 = vsub.s32 3, %v190_v5 }
  0xa1   :  { %1101 = vmatprep.subr.bf16.mxu1 %v11004_v23 }
  0xa2   :  { %13068 = vst [vmem:[#allocation27_spill] sm:$0xff] %v11200_v17  ;;  %v204_v23 = vrot.slane %v187_v7, %v11200_v17 }
  0xa3   :  { %1061 = vmatpush1.bf16.msra.mxu0 %v10995_v20 }
  0xa4   :  { %1062 = vmatprep.subr.bf16.mxu0 %v10997_v21  ;;  %1102 = vmatpush1.bf16.msra.mxu1 %v11013_v26  ;;  %v11202_v21 = vsub.s32 2, %v190_v5  ;;  %v10609_v5 = vld [vmem:[#allocation7 + $0x88] ss:$16 sps:$4 sm:$0xff]  }
  0xa5   :  { %1103 = vmatprep.subr.bf16.mxu1 %v11016_v27 }
  0xa6   :  { %13069 = vst [vmem:[#allocation28_spill] sm:$0xff] %v11202_v21 }
  0xa7   :  { %1063 = vmatpush1.bf16.msra.mxu0 %v11007_v24 }
  0xa8   :  { %1064 = vmatprep.subr.bf16.mxu0 %v11010_v25  ;;  %1104 = vmatpush1.bf16.msra.mxu1 %v11025_v30  ;;  %v200_v25 = vrot.slane %v187_v7, %v11202_v21  ;;  %v10610_v7 = vld [vmem:[#allocation7 + $0x64] ss:$16 sps:$4 sm:$0xff]  }
  0xa9   :  { %1105 = vmatprep.subr.bf16.mxu1 %v11028_v31 }
  0xab   :  { %1065 = vmatpush1.bf16.msra.mxu0 %v11019_v28 }
  0xac   :  { %1066 = vmatprep.subr.bf16.mxu0 %v11021_v29  ;;  %1106 = vmatpush1.bf16.msra.mxu1 %v11037_v34 }
  0xad   :  { %1107 = vmatprep.subr.bf16.mxu1 %v11040_v35 }
  0xaf   :  { %1067 = vmatpush2.bf16.msra.mxu0 %v11031_v32 }
  0xb0   :  { %1068 = vmatprep.subr.bf16.mxu0 %v11034_v33  ;;  %1108 = vmatpush2.bf16.msra.mxu1 %v11049_v38 }
  0xb1   :  { %1109 = vmatprep.subr.bf16.mxu1 %v11052_v39 }
  0xb3   :  { %1069 = vmatpush2.bf16.msra.mxu0 %v11043_v36 }
  0xb4   :  { %1070 = vmatprep.subr.bf16.mxu0 %v11045_v37  ;;  %1110 = vmatpush2.bf16.msra.mxu1 %v11061_v44  ;;  %v115_v37 = vld [vmem:[#allocation12] sm:$0xff] }
  0xb5   :  { %1111 = vmatprep.subr.bf16.mxu1 %v11066_v46  ;;  %v637_v46 = vld [vmem:[#allocation4 + $0x8] sm:$0xff] }
  0xb7   :  { %1071 = vmatpush2.bf16.msra.mxu0 %v11055_v41 }
  0xb8   :  { %1072 = vmatprep.subr.bf16.mxu0 %v11058_v43  ;;  %1112 = vmatpush2.bf16.msra.mxu1 %v11071_v48 }
  0xb9   :  { %1113 = vmatprep.subr.bf16.mxu1 %v11073_v49  ;;  %v642_v49 = vpack.c.bf16 %v637_v46, %v637_v46  ;;  %v10643_v46 = vld [vmem:[#allocation7 + $0x16c] ss:$16 sps:$4 sm:$0xff]  }
  0xbb   :  { %1073 = vmatpush2.bf16.msra.mxu0 %v11063_v45 }
  0xbc   :  { %1074 = vmatprep.subr.bf16.mxu0 %v11068_v47  ;;  %1114 = vmatpush2.bf16.msra.mxu1 %v11082_v52  ;;  %v10597_v52 = vld [vmem:[#allocation7 + $0xe8] ss:$16 sps:$4 sm:$0xff]  }
  0xbd   :  { %1115 = vmatprep.subr.bf16.mxu1 %v11085_v53  ;;  %v10598_v53 = vld [vmem:[#allocation7 + $0xc4] ss:$16 sps:$4 sm:$0xff]  }
  0xbf   :  { %1075 = vmatpush2.bf16.msra.mxu0 %v11077_v50 }
  0xc0   :  { %1076 = vmatprep.subr.bf16.mxu0 %v11080_v51  ;;  %1116 = vmatpush2.bf16.msra.mxu1 %v11094_v56  ;;  %v10596_v51 = vld [vmem:[#allocation7 + $0xe0] ss:$16 sps:$4 sm:$0xff]  }
  0xc1   :  { %1117 = vmatprep.subr.bf16.mxu1 %v11097_v57  ;;  %v10600_v56 = vld [vmem:[#allocation7 + $0xc0] ss:$16 sps:$4 sm:$0xff]   ;;  %v10601_v57 = vld [vmem:[#allocation7 + $0xc8] ss:$16 sps:$4 sm:$0xff]  }
  0xc3   :  { %1077 = vmatpush2.bf16.msra.mxu0 %v13064_v0  ;;  %v10604_v0 = vld [vmem:[#allocation7 + $0xa0] ss:$16 sps:$4 sm:$0xff]  }
  0xc4   :  { %1078 = vmatprep.subr.bf16.mxu0 %v13065_v1  ;;  %1118 = vmatpush2.bf16.msra.mxu1 %v11106_v60  ;;  %v10605_v1 = vld [vmem:[#allocation7 + $0xa8] ss:$16 sps:$4 sm:$0xff]  }
  0xc5   :  { %1119 = vmatprep.subr.bf16.mxu1 %v11109_v61 }
  0xc7   :  { %1079 = vmatpush2.bf16.msra.mxu0 %v11101_v58  ;;  %v10602_v58 = vld [vmem:[#allocation7 + $0xa4] ss:$16 sps:$4 sm:$0xff]  }
  0xc8   :  { %1080 = vmatprep.subr.bf16.mxu0 %v11104_v59  ;;  %1120 = vmatpush2.bf16.msra.mxu1 %v11116_v40 }
  0xc9   :  { %1121 = vmatprep.subr.bf16.mxu1 %v11119_v42 }
  0xcb   :  { %1081 = vmatpush2.bf16.msra.mxu0 %v11113_v62 }
  0xcc   :  { %1572 = vmatprep.subr.bf16.mxu0 %v10594_v2  ;;  %1122 = vmatpush2.bf16.msra.mxu1 %v11124_v54  ;;  %v10606_v2 = vld [vmem:[#allocation7 + $0x84] ss:$16 sps:$4 sm:$0xff]  }
  0xcd   :  { %1613 = vmatprep.subr.bf16.mxu1 %v10595_v3  ;;  %v10607_v3 = vld [vmem:[#allocation7 + $0x8c] ss:$16 sps:$4 sm:$0xff]  }
 0x14e   :  { %v563_v11 = vpop.f32.mrf.mxu0 }
 0x14f   :  { %v564_v12 = vadd.f32 %v563_v11, %v192_v9  ;;  %v604_v19 = vpop.f32.mrf.mxu1  ;;  %v10611_v9 = vld [vmem:[#allocation7 + $0x6c] ss:$16 sps:$4 sm:$0xff]   ;;  %v10613_v11 = vld [vmem:[#allocation7 + $0x68] ss:$16 sps:$4 sm:$0xff]  }
 0x150   :  { %v565_v13 = vpop.f32.mrf.mxu0  ;;  %v605_v28 = vadd.f32 %v604_v19, %v200_v25  ;;  %v10620_v19 = vld [vmem:[#allocation7 + $0x20] ss:$16 sps:$4 sm:$0xff]   ;;  %v10625_v25 = vld [vmem:[#allocation7 + $0x8] ss:$16 sps:$4 sm:$0xff]  }
 0x151   :  { %v8686_v14 = vmul.f32 -1.442695, %v564_v12  ;;  %v566_v15 = vadd.f32 %v565_v13, %v196_v10  ;;  %v606_v22 = vpop.f32.mrf.mxu1  ;;  %v10612_v10 = vld [vmem:[#allocation7 + $0x60] ss:$16 sps:$4 sm:$0xff]   ;;  %v10614_v12 = vld [vmem:[#allocation7 + $0x44] ss:$16 sps:$4 sm:$0xff]  }
 0x152   :  { %v567_v16 = vpop.f32.mrf.mxu0  ;;  %v607_v27 = vadd.f32 %v606_v22, %v204_v23  ;;  %v10615_v13 = vld [vmem:[#allocation7 + $0x4c] ss:$16 sps:$4 sm:$0xff]   ;;  %v10622_v22 = vld [vmem:[#allocation7 + $0x4] ss:$16 sps:$4 sm:$0xff]  }
 0x153   :  { %10334 = vpow2.f32 %v8686_v14  ;;  %v8687_v18 = vmul.f32 -1.442695, %v566_v15  ;;  %v608_v24 = vpop.f32.mrf.mxu1  ;;  %v10616_v14 = vld [vmem:[#allocation7 + $0x40] ss:$16 sps:$4 sm:$0xff]   ;;  %v10617_v15 = vld [vmem:[#allocation7 + $0x48] ss:$16 sps:$4 sm:$0xff]  }
 0x154   :  { %v568_v20 = vpop.f32.mrf.mxu0  ;;  %v8688_v29 = vmul.f32 -1.442695, %v607_v27  ;;  %v10618_v16 = vld [vmem:[#allocation7 + $0x24] ss:$16 sps:$4 sm:$0xff]   ;;  %v10623_v23 = vld [vmem:[#allocation7 + $0xc] ss:$16 sps:$4 sm:$0xff]  }
 0x155   :  { %10336 = vpow2.f32 %v8687_v18  ;;  %v609_v26 = vpop.f32.mrf.mxu1  ;;  %v10619_v18 = vld [vmem:[#allocation7 + $0x2c] ss:$16 sps:$4 sm:$0xff]   ;;  %v10621_v20 = vld [vmem:[#allocation7 + $0x28] ss:$16 sps:$4 sm:$0xff]   ;;  %v10624_v24 = vld [vmem:[#allocation7] ss:$16 sps:$4 sm:$0xff]  }
 0x156   :  { %10338 = vtanh.f32 %v605_v28  ;;  %v10626_v26 = vld [vmem:[#allocation7 + $0x1e4] ss:$16 sps:$4 sm:$0xff]   ;;  %v10627_v27 = vld [vmem:[#allocation7 + $0x1ec] ss:$16 sps:$4 sm:$0xff]   ;;  %v10628_v28 = vld [vmem:[#allocation7 + $0x1e0] ss:$16 sps:$4 sm:$0xff]  }
 0x157   :  { %10340 = vpow2.f32 %v8688_v29  ;;  %v10629_v29 = vld [vmem:[#allocation7 + $0x1e8] ss:$16 sps:$4 sm:$0xff]  }
 0x160   :  { %v10335_v30 = vpop.eup %10334 }
 0x161   :  { %v614_v31 = vadd.f32 1.0, %v10335_v30  ;;  %v10630_v30 = vld [vmem:[#allocation7 + $0x1c4] ss:$16 sps:$4 sm:$0xff]  }
 0x162   :  { %v10337_v32 = vpop.eup %10336 }
 0x163   :  { %10342 = vrcp.f32 %v614_v31  ;;  %v620_v33 = vadd.f32 1.0, %v10337_v32  ;;  %v10339_v34 = vpop.eup %10338  ;;  %v10631_v31 = vld [vmem:[#allocation7 + $0x1cc] ss:$16 sps:$4 sm:$0xff]   ;;  %v10632_v32 = vld [vmem:[#allocation7 + $0x1c0] ss:$16 sps:$4 sm:$0xff]  }
 0x164   :  { %v10341_v35 = vpop.eup %10340 }
 0x165   :  { %10344 = vrcp.f32 %v620_v33  ;;  %v627_v39 = vadd.f32 1.0, %v10341_v35  ;;  %v10633_v33 = vld [vmem:[#allocation7 + $0x1c8] ss:$16 sps:$4 sm:$0xff]   ;;  %v10635_v35 = vld [vmem:[#allocation7 + $0x1ac] ss:$16 sps:$4 sm:$0xff]  }
 0x167   :  { %10346 = vrcp.f32 %v627_v39  ;;  %v10639_v39 = vld [vmem:[#allocation7 + $0x18c] ss:$16 sps:$4 sm:$0xff]  }
 0x170   :  { %v10343_v36 = vpop.eup %10342 }
 0x171   :  { %v631_v43 = vmul.f32 %v10343_v36, %v10339_v34  ;;  %v10634_v34 = vld [vmem:[#allocation7 + $0x1a4] ss:$16 sps:$4 sm:$0xff]   ;;  %v10636_v36 = vld [vmem:[#allocation7 + $0x1a0] ss:$16 sps:$4 sm:$0xff]  }
 0x172   :  { %v10345_v38 = vpop.eup %10344 }
 0x173   :  { %v630_v41 = vmul.f32 %v10345_v38, %v115_v37  ;;  %v10637_v37 = vld [vmem:[#allocation7 + $0x1a8] ss:$16 sps:$4 sm:$0xff]   ;;  %v10638_v38 = vld [vmem:[#allocation7 + $0x184] ss:$16 sps:$4 sm:$0xff]  }
 0x174   :  { %v10347_v45 = vpop.eup %10346 }
 0x175   :  { %v11206_v44 = vadd.f32 %v631_v43, %v630_v41  ;;  %v10640_v41 = vld [vmem:[#allocation7 + $0x180] ss:$16 sps:$4 sm:$0xff]   ;;  %v10641_v43 = vld [vmem:[#allocation7 + $0x188] ss:$16 sps:$4 sm:$0xff]  }
 0x177   :  { %10348 = vtanh.f32 %v11206_v44 }
 0x184   :  { %v10349_v47 = vpop.eup %10348 }
 0x185   :  { %v634_v48 = vmul.f32 %v10349_v47, %v10347_v45  ;;  %v10642_v45 = vld [vmem:[#allocation7 + $0x164] ss:$16 sps:$4 sm:$0xff]   ;;  %v10644_v47 = vld [vmem:[#allocation7 + $0x160] ss:$16 sps:$4 sm:$0xff]  }
 0x187   :  { %v11209_v50 = vpack.c.bf16 %v634_v48, %v634_v48  ;;  %v10645_v48 = vld [vmem:[#allocation7 + $0x168] ss:$16 sps:$4 sm:$0xff]  }
 0x189   :  { %13070 = vst [vmem:[#allocation29_spill] sm:$0xff] %v11209_v50  ;;  %1082 = vmatprep.mubr.bf16.mxu0 %v11209_v50  ;;  %1123 = vmatprep.mubr.bf16.mxu1 %v11209_v50  ;;  %v11406_v50 = vld [vmem:[#allocation7 + $0x14c] ss:$16 sps:$4 sm:$0xff]  }
 0x18a   :  { %1083 = vmatmul.mubr.bf16.vlgmr.msra.gmra.mxu0 %v642_v49  ;;  %1124 = vmatmul.mubr.bf16.vlgmr.msra.gmra.mxu1 %v642_v49  ;;  %v10646_v49 = vld [vmem:[#allocation7 + $0x144] ss:$16 sps:$4 sm:$0xff]   ;;  %13090 = vst [vmem:[#allocation49_spill] sm:$0xff] %v11406_v50 }
 0x18b   :  { %1573 = vmatpush1.bf16.msra.mxu0 %v10596_v51  ;;  %1614 = vmatpush1.bf16.msra.mxu1 %v10597_v52  ;;  %v10647_v51 = vld [vmem:[#allocation7 + $0x14c] ss:$16 sps:$4 sm:$0xff]   ;;  %v10648_v52 = vld [vmem:[#allocation7 + $0x140] ss:$16 sps:$4 sm:$0xff]  }
 0x18c   :  { %1574 = vmatprep.subr.bf16.mxu0 %v10598_v53  ;;  %1615 = vmatprep.subr.bf16.mxu1 %v10599_v55  ;;  %v10649_v53 = vld [vmem:[#allocation7 + $0x124] ss:$16 sps:$4 sm:$0xff]   ;;  %v10650_v55 = vld [vmem:[#allocation7 + $0x120] ss:$16 sps:$4 sm:$0xff]  }
 0x18f   :  { %1575 = vmatpush1.bf16.msra.mxu0 %v10600_v56  ;;  %1616 = vmatpush1.bf16.msra.mxu1 %v10601_v57  ;;  %v11220_v56 = vld [vmem:[#allocation7 + $0xe4] ss:$16 sps:$4 sm:$0xff]  }
 0x190   :  { %1576 = vmatprep.subr.bf16.mxu0 %v10602_v58  ;;  %1617 = vmatprep.subr.bf16.mxu1 %v10603_v63  ;;  %13071 = vst [vmem:[#allocation30_spill] sm:$0xff] %v11220_v56 }
 0x193   :  { %1577 = vmatpush1.bf16.msra.mxu0 %v10604_v0  ;;  %1618 = vmatpush1.bf16.msra.mxu1 %v10605_v1 }
 0x194   :  { %1578 = vmatprep.subr.bf16.mxu0 %v10606_v2  ;;  %1619 = vmatprep.subr.bf16.mxu1 %v10607_v3 }
 0x197   :  { %1579 = vmatpush1.bf16.msra.mxu0 %v10608_v4  ;;  %1620 = vmatpush1.bf16.msra.mxu1 %v10609_v5 }
 0x198   :  { %1580 = vmatprep.subr.bf16.mxu0 %v10610_v7  ;;  %1621 = vmatprep.subr.bf16.mxu1 %v10611_v9 }
 0x19b   :  { %1581 = vmatpush1.bf16.msra.mxu0 %v10612_v10  ;;  %1622 = vmatpush1.bf16.msra.mxu1 %v10613_v11 }
 0x19c   :  { %1582 = vmatprep.subr.bf16.mxu0 %v10614_v12  ;;  %1623 = vmatprep.subr.bf16.mxu1 %v10615_v13 }
 0x19f   :  { %1583 = vmatpush1.bf16.msra.mxu0 %v10616_v14  ;;  %1624 = vmatpush1.bf16.msra.mxu1 %v10617_v15 }
 0x1a0   :  { %1584 = vmatprep.subr.bf16.mxu0 %v10618_v16  ;;  %1625 = vmatprep.subr.bf16.mxu1 %v10619_v18 }
 0x1a3   :  { %1585 = vmatpush1.bf16.msra.mxu0 %v10620_v19  ;;  %1626 = vmatpush1.bf16.msra.mxu1 %v10621_v20 }
 0x1a4   :  { %1586 = vmatprep.subr.bf16.mxu0 %v10622_v22  ;;  %1627 = vmatprep.subr.bf16.mxu1 %v10623_v23 }
 0x1a7   :  { %1587 = vmatpush1.bf16.msra.mxu0 %v10624_v24  ;;  %1628 = vmatpush1.bf16.msra.mxu1 %v10625_v25 }
 0x1a8   :  { %1588 = vmatprep.subr.bf16.mxu0 %v10626_v26  ;;  %1629 = vmatprep.subr.bf16.mxu1 %v10627_v27  ;;  %v1159_v27 = vld [vmem:[#allocation4 + $0x10] sm:$0xff] }
 0x1ab   :  { %1589 = vmatpush2.bf16.msra.mxu0 %v10628_v28  ;;  %1630 = vmatpush2.bf16.msra.mxu1 %v10629_v29 }
 0x1ac   :  { %1590 = vmatprep.subr.bf16.mxu0 %v10630_v30  ;;  %1631 = vmatprep.subr.bf16.mxu1 %v10631_v31  ;;  %v1164_v30 = vpack.c.bf16 %v1159_v27, %v1159_v27  ;;  %v11388_v27 = vld [vmem:[#allocation7 + $0x188] ss:$16 sps:$4 sm:$0xff]  }
 0x1ad   :  { %13085 = vst [vmem:[#allocation44_spill] sm:$0xff] %v11388_v27 }
 0x1af   :  { %1591 = vmatpush2.bf16.msra.mxu0 %v10632_v32  ;;  %1632 = vmatpush2.bf16.msra.mxu1 %v10633_v33  ;;  %v11233_v32 = vld [vmem:[#allocation7 + $0xe0] ss:$16 sps:$4 sm:$0xff]  }
 0x1b0   :  { %1592 = vmatprep.subr.bf16.mxu0 %v10634_v34  ;;  %1633 = vmatprep.subr.bf16.mxu1 %v10635_v35  ;;  %v11240_v33 = vld [vmem:[#allocation7 + $0xc0] ss:$16 sps:$4 sm:$0xff]   ;;  %v11244_v34 = vld [vmem:[#allocation7 + $0xa4] ss:$16 sps:$4 sm:$0xff]  }
 0x1b1   :  { %v11246_v35 = vld [vmem:[#allocation7 + $0xa0] ss:$16 sps:$4 sm:$0xff]  }
 0x1b3   :  { %1593 = vmatpush2.bf16.msra.mxu0 %v10636_v36  ;;  %1634 = vmatpush2.bf16.msra.mxu1 %v10637_v37  ;;  %v11250_v36 = vld [vmem:[#allocation7 + $0x84] ss:$16 sps:$4 sm:$0xff]   ;;  %v11252_v37 = vld [vmem:[#allocation7 + $0xec] ss:$16 sps:$4 sm:$0xff]  }
 0x1b4   :  { %1594 = vmatprep.subr.bf16.mxu0 %v10638_v38  ;;  %1635 = vmatprep.subr.bf16.mxu1 %v10639_v39  ;;  %13073 = vst [vmem:[#allocation32_spill] sm:$0xff] %v11252_v37  ;;  %v11254_v38 = vld [vmem:[#allocation7 + $0x80] ss:$16 sps:$4 sm:$0xff]   ;;  %v11256_v39 = vld [vmem:[#allocation7 + $0xe8] ss:$16 sps:$4 sm:$0xff]  }
 0x1b7   :  { %1595 = vmatpush2.bf16.msra.mxu0 %v10640_v41  ;;  %1636 = vmatpush2.bf16.msra.mxu1 %v10641_v43  ;;  %v11262_v41 = vld [vmem:[#allocation7 + $0x64] ss:$16 sps:$4 sm:$0xff]   ;;  %v11264_v43 = vld [vmem:[#allocation7 + $0xcc] ss:$16 sps:$4 sm:$0xff]  }
 0x1b8   :  { %1596 = vmatprep.subr.bf16.mxu0 %v10642_v45  ;;  %1637 = vmatprep.subr.bf16.mxu1 %v10643_v46  ;;  %v11266_v45 = vld [vmem:[#allocation7 + $0x60] ss:$16 sps:$4 sm:$0xff]   ;;  %v11268_v46 = vld [vmem:[#allocation7 + $0xc8] ss:$16 sps:$4 sm:$0xff]  }
 0x1bb   :  { %1597 = vmatpush2.bf16.msra.mxu0 %v10644_v47  ;;  %1638 = vmatpush2.bf16.msra.mxu1 %v10645_v48  ;;  %v11274_v47 = vld [vmem:[#allocation7 + $0x44] ss:$16 sps:$4 sm:$0xff]   ;;  %v11276_v48 = vld [vmem:[#allocation7 + $0xac] ss:$16 sps:$4 sm:$0xff]  }
 0x1bc   :  { %1598 = vmatprep.subr.bf16.mxu0 %v10646_v49  ;;  %1639 = vmatprep.subr.bf16.mxu1 %v10647_v51  ;;  %v11278_v49 = vld [vmem:[#allocation7 + $0x40] ss:$16 sps:$4 sm:$0xff]   ;;  %v11280_v51 = vld [vmem:[#allocation7 + $0xa8] ss:$16 sps:$4 sm:$0xff]  }
 0x1bf   :  { %1599 = vmatpush2.bf16.msra.mxu0 %v10648_v52  ;;  %1640 = vmatpush2.bf16.msra.mxu1 %v11106_v60  ;;  %v708_v60 = vld [vmem:[#allocation9] sm:$0xf]  ;;  %v11286_v52 = vld [vmem:[#allocation7 + $0x24] ss:$16 sps:$4 sm:$0xff]  }
 0x1c0   :  { %1600 = vmatprep.subr.bf16.mxu0 %v10649_v53  ;;  %1641 = vmatprep.subr.bf16.mxu1 %v11109_v61  ;;  %v713_v57 = vrot.slane %v708_v60, %v11194_v6  ;;  %v717_v61 = vrot.slane %v708_v60, %v11196_v8  ;;  %v725_v5 = vrot.slane %v708_v60, %v11200_v17  ;;  %v11288_v53 = vld [vmem:[#allocation7 + $0x8c] ss:$16 sps:$4 sm:$0xff]  }
 0x1c1   :  { %v721_v7 = vrot.slane %v708_v60, %v11202_v21  ;;  %v11292_v60 = vld [vmem:[#allocation7 + $0x88] ss:$16 sps:$4 sm:$0xff]  }
 0x1c3   :  { %1601 = vmatpush2.bf16.msra.mxu0 %v10650_v55  ;;  %1642 = vmatpush2.bf16.msra.mxu1 %v11116_v40  ;;  %v11290_v55 = vld [vmem:[#allocation7 + $0x20] ss:$16 sps:$4 sm:$0xff]  }
 0x1c4   :  { %1602 = vmatprep.subr.bf16.mxu0 %v11104_v59  ;;  %1643 = vmatprep.subr.bf16.mxu1 %v11119_v42 }
 0x1c7   :  { %1603 = vmatpush2.bf16.msra.mxu0 %v11113_v62  ;;  %1644 = vmatpush2.bf16.msra.mxu1 %v11124_v54 }
 0x1c8   :  { %2094 = vmatprep.subr.bf16.mxu0 %v11220_v56  ;;  %2135 = vmatprep.subr.bf16.mxu1 %v11252_v37 }
 0x24a   :  { %v1084_v58 = vpop.f32.mrf.mxu0  ;;  %v1125_v63 = vpop.f32.mrf.mxu1 }
 0x24b   :  { %v1085_v40 = vadd.f32 %v1084_v58, %v713_v57  ;;  %v1126_v10 = vadd.f32 %v1125_v63, %v721_v7  ;;  %v11298_v57 = vld [vmem:[#allocation7 + $0x4] ss:$16 sps:$4 sm:$0xff]   ;;  %v11302_v58 = vld [vmem:[#allocation7] ss:$16 sps:$4 sm:$0xff]   ;;  %v11304_v63 = vld [vmem:[#allocation7 + $0x68] ss:$16 sps:$4 sm:$0xff]  }
 0x24c   :  { %v1086_v0 = vpop.f32.mrf.mxu0  ;;  %v1127_v59 = vpop.f32.mrf.mxu1  ;;  %v11340_v7 = vld [vmem:[#allocation7 + $0x8] ss:$16 sps:$4 sm:$0xff]  }
 0x24d   :  { %v8753_v1 = vmul.f32 -1.442695, %v1085_v40  ;;  %v1087_v42 = vadd.f32 %v1086_v0, %v717_v61  ;;  %v1128_v9 = vadd.f32 %v1127_v59, %v725_v5  ;;  %v11300_v61 = vld [vmem:[#allocation7 + $0x6c] ss:$16 sps:$4 sm:$0xff]   ;;  %v11310_v40 = vld [vmem:[#allocation7 + $0x1e4] ss:$16 sps:$4 sm:$0xff]  }
 0x24e   :  { %v1088_v2 = vpop.f32.mrf.mxu0  ;;  %v1129_v62 = vpop.f32.mrf.mxu1  ;;  %v11312_v0 = vld [vmem:[#allocation7 + $0x4c] ss:$16 sps:$4 sm:$0xff]   ;;  %v11314_v59 = vld [vmem:[#allocation7 + $0x1e0] ss:$16 sps:$4 sm:$0xff]  }
 0x24f   :  { %10350 = vpow2.f32 %v8753_v1  ;;  %v8754_v54 = vmul.f32 -1.442695, %v1087_v42  ;;  %v8755_v11 = vmul.f32 -1.442695, %v1128_v9  ;;  %v11316_v1 = vld [vmem:[#allocation7 + $0x48] ss:$16 sps:$4 sm:$0xff]  }
 0x250   :  { %v1089_v3 = vpop.f32.mrf.mxu0  ;;  %v1130_v4 = vpop.f32.mrf.mxu1  ;;  %v11322_v42 = vld [vmem:[#allocation7 + $0x1c4] ss:$16 sps:$4 sm:$0xff]   ;;  %v11324_v2 = vld [vmem:[#allocation7 + $0x2c] ss:$16 sps:$4 sm:$0xff]   ;;  %v11326_v62 = vld [vmem:[#allocation7 + $0x1c0] ss:$16 sps:$4 sm:$0xff]  }
 0x251   :  { %10352 = vpow2.f32 %v8754_v54  ;;  %v11328_v54 = vld [vmem:[#allocation7 + $0x28] ss:$16 sps:$4 sm:$0xff]   ;;  %v11334_v3 = vld [vmem:[#allocation7 + $0x1a4] ss:$16 sps:$4 sm:$0xff]   ;;  %v11336_v4 = vld [vmem:[#allocation7 + $0xc] ss:$16 sps:$4 sm:$0xff]  }
 0x252   :  { %10354 = vtanh.f32 %v1126_v10  ;;  %v11338_v5 = vld [vmem:[#allocation7 + $0x1a0] ss:$16 sps:$4 sm:$0xff]   ;;  %v11346_v9 = vld [vmem:[#allocation7 + $0x184] ss:$16 sps:$4 sm:$0xff]   ;;  %v11348_v10 = vld [vmem:[#allocation7 + $0x1ec] ss:$16 sps:$4 sm:$0xff]  }
 0x253   :  { %10356 = vpow2.f32 %v8755_v11  ;;  %13074 = vst [vmem:[#allocation33_spill] sm:$0xff] %v11338_v5  ;;  %13075 = vst [vmem:[#allocation34_spill] sm:$0xff] %v11346_v9  ;;  %v11350_v11 = vld [vmem:[#allocation7 + $0x180] ss:$16 sps:$4 sm:$0xff]  }
 0x254   :  { %13076 = vst [vmem:[#allocation35_spill] sm:$0xff] %v11350_v11 }
 0x25c   :  { %v10351_v12 = vpop.eup %10350 }
 0x25d   :  { %v1135_v13 = vadd.f32 1.0, %v10351_v12  ;;  %v11352_v12 = vld [vmem:[#allocation7 + $0x1e8] ss:$16 sps:$4 sm:$0xff]  }
 0x25e   :  { %v10353_v14 = vpop.eup %10352 }
 0x25f   :  { %10358 = vrcp.f32 %v1135_v13  ;;  %v1141_v15 = vadd.f32 1.0, %v10353_v14  ;;  %v10355_v16 = vpop.eup %10354  ;;  %v11358_v13 = vld [vmem:[#allocation7 + $0x160] ss:$16 sps:$4 sm:$0xff]   ;;  %v11360_v14 = vld [vmem:[#allocation7 + $0x164] ss:$16 sps:$4 sm:$0xff]  }
 0x260   :  { %v10357_v18 = vpop.eup %10356  ;;  %13077 = vst [vmem:[#allocation36_spill] sm:$0xff] %v11358_v13  ;;  %13078 = vst [vmem:[#allocation37_spill] sm:$0xff] %v11360_v14 }
 0x261   :  { %10360 = vrcp.f32 %v1141_v15  ;;  %v1148_v22 = vadd.f32 1.0, %v10357_v18  ;;  %v11362_v15 = vld [vmem:[#allocation7 + $0x1c8] ss:$16 sps:$4 sm:$0xff]   ;;  %v11366_v18 = vld [vmem:[#allocation7 + $0x144] ss:$16 sps:$4 sm:$0xff]  }
 0x262   :  { %13079 = vst [vmem:[#allocation38_spill] sm:$0xff] %v11366_v18 }
 0x263   :  { %10362 = vrcp.f32 %v1148_v22  ;;  %v11376_v22 = vld [vmem:[#allocation7 + $0x1a8] ss:$16 sps:$4 sm:$0xff]  }
 0x264   :  { %13081 = vst [vmem:[#allocation40_spill] sm:$0xff] %v11376_v22 }
 0x26c   :  { %v10359_v19 = vpop.eup %10358 }
 0x26d   :  { %v1152_v24 = vmul.f32 %v10359_v19, %v10355_v16  ;;  %v11364_v16 = vld [vmem:[#allocation7 + $0x1cc] ss:$16 sps:$4 sm:$0xff]  }
 0x26e   :  { %v10361_v20 = vpop.eup %10360  ;;  %v11369_v19 = vld [vmem:[#allocation7 + $0x1ac] ss:$16 sps:$4 sm:$0xff]  }
 0x26f   :  { %v1151_v23 = vmul.f32 %v10361_v20, %v11206_v44  ;;  %v11238_v44 = vld [vmem:[#allocation7 + $0xc4] ss:$16 sps:$4 sm:$0xff]   ;;  %v11374_v20 = vld [vmem:[#allocation7 + $0x140] ss:$16 sps:$4 sm:$0xff]  }
 0x270   :  { %v10363_v26 = vpop.eup %10362  ;;  %13080 = vst [vmem:[#allocation39_spill] sm:$0xff] %v11374_v20 }
 0x271   :  { %v11228_v25 = vadd.f32 %v1152_v24, %v1151_v23  ;;  %v11380_v23 = vld [vmem:[#allocation7 + $0x124] ss:$16 sps:$4 sm:$0xff]   ;;  %v11382_v24 = vld [vmem:[#allocation7 + $0x18c] ss:$16 sps:$4 sm:$0xff]  }
 0x272   :  { %13082 = vst [vmem:[#allocation41_spill] sm:$0xff] %v11380_v23  ;;  %13083 = vst [vmem:[#allocation42_spill] sm:$0xff] %v11382_v24 }
 0x273   :  { %10364 = vtanh.f32 %v11228_v25 }
 0x280   :  { %v10365_v28 = vpop.eup %10364 }
 0x281   :  { %v1155_v29 = vmul.f32 %v10365_v28, %v10363_v26  ;;  %v11386_v26 = vld [vmem:[#allocation7 + $0x120] ss:$16 sps:$4 sm:$0xff]   ;;  %v11392_v28 = vld [vmem:[#allocation7 + $0x104] ss:$16 sps:$4 sm:$0xff]  }
 0x282   :  { %13084 = vst [vmem:[#allocation43_spill] sm:$0xff] %v11386_v26  ;;  %13086 = vst [vmem:[#allocation45_spill] sm:$0xff] %v11392_v28 }
 0x283   :  { %v11231_v31 = vpack.c.bf16 %v1155_v29, %v1155_v29  ;;  %v11394_v29 = vld [vmem:[#allocation7 + $0x16c] ss:$16 sps:$4 sm:$0xff]  }
 0x284   :  { %13087 = vst [vmem:[#allocation46_spill] sm:$0xff] %v11394_v29 }
 0x285   :  { %13072 = vst [vmem:[#allocation31_spill] sm:$0xff] %v11231_v31  ;;  %1604 = vmatprep.mubr.bf16.mxu0 %v11231_v31  ;;  %1645 = vmatprep.mubr.bf16.mxu1 %v11231_v31  ;;  %v11400_v31 = vld [vmem:[#allocation7 + $0x168] ss:$16 sps:$4 sm:$0xff]  }
 0x286   :  { %1605 = vmatmul.mubr.bf16.vlgmr.msra.gmra.mxu0 %v1164_v30  ;;  %1646 = vmatmul.mubr.bf16.vlgmr.msra.gmra.mxu1 %v1164_v30  ;;  %v11398_v30 = vld [vmem:[#allocation7 + $0x100] ss:$16 sps:$4 sm:$0xff]   ;;  %13089 = vst [vmem:[#allocation48_spill] sm:$0xff] %v11400_v31 }
 0x287   :  { %2095 = vmatpush1.bf16.msra.mxu0 %v11233_v32  ;;  %2136 = vmatpush1.bf16.msra.mxu1 %v11256_v39  ;;  %13088 = vst [vmem:[#allocation47_spill] sm:$0xff] %v11398_v30 }
 0x288   :  { %2096 = vmatprep.subr.bf16.mxu0 %v11238_v44  ;;  %2137 = vmatprep.subr.bf16.mxu1 %v11264_v43 }
 0x28b   :  { %2097 = vmatpush1.bf16.msra.mxu0 %v11240_v33  ;;  %2138 = vmatpush1.bf16.msra.mxu1 %v11268_v46 }
 0x28c   :  { %2098 = vmatprep.subr.bf16.mxu0 %v11244_v34  ;;  %2139 = vmatprep.subr.bf16.mxu1 %v11276_v48 }
 0x28f   :  { %2099 = vmatpush1.bf16.msra.mxu0 %v11246_v35  ;;  %2140 = vmatpush1.bf16.msra.mxu1 %v11280_v51 }
 0x290   :  { %2100 = vmatprep.subr.bf16.mxu0 %v11250_v36  ;;  %2141 = vmatprep.subr.bf16.mxu1 %v11288_v53 }
 0x293   :  { %2101 = vmatpush1.bf16.msra.mxu0 %v11254_v38  ;;  %2142 = vmatpush1.bf16.msra.mxu1 %v11292_v60 }
 0x294   :  { %2102 = vmatprep.subr.bf16.mxu0 %v11262_v41  ;;  %2143 = vmatprep.subr.bf16.mxu1 %v11300_v61 }
 0x297   :  { %2103 = vmatpush1.bf16.msra.mxu0 %v11266_v45  ;;  %2144 = vmatpush1.bf16.msra.mxu1 %v11304_v63 }
 0x298   :  { %2104 = vmatprep.subr.bf16.mxu0 %v11274_v47  ;;  %2145 = vmatprep.subr.bf16.mxu1 %v11312_v0 }
 0x29b   :  { %2105 = vmatpush1.bf16.msra.mxu0 %v11278_v49  ;;  %2146 = vmatpush1.bf16.msra.mxu1 %v11316_v1 }
 0x29c   :  { %2106 = vmatprep.subr.bf16.mxu0 %v11286_v52  ;;  %2147 = vmatprep.subr.bf16.mxu1 %v11324_v2 }
 0x29f   :  { %2107 = vmatpush1.bf16.msra.mxu0 %v11290_v55  ;;  %2148 = vmatpush1.bf16.msra.mxu1 %v11328_v54 }
 0x2a0   :  { %2108 = vmatprep.subr.bf16.mxu0 %v11298_v57  ;;  %2149 = vmatprep.subr.bf16.mxu1 %v11336_v4 }
 0x2a3   :  { %2109 = vmatpush1.bf16.msra.mxu0 %v11302_v58  ;;  %2150 = vmatpush1.bf16.msra.mxu1 %v11340_v7 }
 0x2a4   :  { %2110 = vmatprep.subr.bf16.mxu0 %v11310_v40  ;;  %2151 = vmatprep.subr.bf16.mxu1 %v11348_v10 }
 0x2a7   :  { %2111 = vmatpush2.bf16.msra.mxu0 %v11314_v59  ;;  %2152 = vmatpush2.bf16.msra.mxu1 %v11352_v12 }
 0x2a8   :  { %2112 = vmatprep.subr.bf16.mxu0 %v11322_v42  ;;  %2153 = vmatprep.subr.bf16.mxu1 %v11364_v16 }
 0x2ab   :  { %2113 = vmatpush2.bf16.msra.mxu0 %v11326_v62  ;;  %2154 = vmatpush2.bf16.msra.mxu1 %v11362_v15 }
 0x2ac   :  { %2114 = vmatprep.subr.bf16.mxu0 %v11334_v3  ;;  %2155 = vmatprep.subr.bf16.mxu1 %v11369_v19 }
 0x2af   :  { %2115 = vmatpush2.bf16.msra.mxu0 %v11338_v5  ;;  %2156 = vmatpush2.bf16.msra.mxu1 %v11376_v22 }
 0x2b0   :  { %2116 = vmatprep.subr.bf16.mxu0 %v11346_v9  ;;  %2157 = vmatprep.subr.bf16.mxu1 %v11382_v24 }
 0x2b3   :  { %2117 = vmatpush2.bf16.msra.mxu0 %v11350_v11  ;;  %2158 = vmatpush2.bf16.msra.mxu1 %v11388_v27 }
 0x2b4   :  { %2118 = vmatprep.subr.bf16.mxu0 %v11360_v14  ;;  %2159 = vmatprep.subr.bf16.mxu1 %v11394_v29 }
 0x2b7   :  { %2119 = vmatpush2.bf16.msra.mxu0 %v11358_v13  ;;  %2160 = vmatpush2.bf16.msra.mxu1 %v11400_v31 }
 0x2b8   :  { %2120 = vmatprep.subr.bf16.mxu0 %v11366_v18  ;;  %2161 = vmatprep.subr.bf16.mxu1 %v11406_v50 }
 0x2bb   :  { %2121 = vmatpush2.bf16.msra.mxu0 %v11374_v20  ;;  %v11415_v20 = vld [vmem:[#allocation7 + $0x128] ss:$16 sps:$4 sm:$0xff]  }
 0x2bc   :  { %2122 = vmatprep.subr.bf16.mxu0 %v11380_v23  ;;  %v11409_v23 = vld [vmem:[#allocation7 + $0x148] ss:$16 sps:$4 sm:$0xff]   ;;  %13093 = vst [vmem:[#allocation52_spill] sm:$0xff] %v11415_v20 }
 0x2bd   :  { %13091 = vst [vmem:[#allocation50_spill] sm:$0xff] %v11409_v23  ;;  %2162 = vmatpush2.bf16.msra.mxu1 %v11409_v23 }
 0x2bf   :  { %2123 = vmatpush2.bf16.msra.mxu0 %v11386_v26  ;;  %v11412_v26 = vld [vmem:[#allocation7 + $0x12c] ss:$16 sps:$4 sm:$0xff]  }
 0x2c0   :  { %2124 = vmatprep.subr.bf16.mxu0 %v11392_v28  ;;  %13092 = vst [vmem:[#allocation51_spill] sm:$0xff] %v11412_v26  ;;  %2163 = vmatprep.subr.bf16.mxu1 %v11412_v26  ;;  %v11418_v28 = vld [vmem:[#allocation7 + $0x10c] ss:$16 sps:$4 sm:$0xff]  }
 0x2c1   :  { %13094 = vst [vmem:[#allocation53_spill] sm:$0xff] %v11418_v28  ;;  %2164 = vmatpush2.bf16.msra.mxu1 %v11415_v20 }
 0x2c2   :  { %2165 = vmatprep.subr.bf16.mxu1 %v11418_v28 }
 0x2c3   :  { %2125 = vmatpush2.bf16.msra.mxu0 %v11398_v30  ;;  %v11421_v30 = vld [vmem:[#allocation7 + $0x108] ss:$16 sps:$4 sm:$0xff]  }
 0x2c4   :  { %2616 = vmatprep.subr.bf16.mxu0 %v11220_v56  ;;  %13095 = vst [vmem:[#allocation54_spill] sm:$0xff] %v11421_v30  ;;  %v1230_v56 = vld [vmem:[#allocation9] sm:$0xf] }
 0x2c5   :  { %2166 = vmatpush2.bf16.msra.mxu1 %v11421_v30  ;;  %v1235_v50 = vrot.slane %v1230_v56, %v11194_v6  ;;  %v1239_v23 = vrot.slane %v1230_v56, %v11196_v8  ;;  %v1243_v6 = vrot.slane %v1230_v56, %v11202_v21 }
 0x2c6   :  { %2657 = vmatprep.subr.bf16.mxu1 %v11252_v37  ;;  %v1247_v37 = vrot.slane %v1230_v56, %v11200_v17 }
 0x346   :  { %v1606_v18 = vpop.f32.mrf.mxu0  ;;  %v1647_v31 = vpop.f32.mrf.mxu1 }
 0x347   :  { %v1607_v26 = vadd.f32 %v1606_v18, %v1235_v50  ;;  %v1648_v8 = vadd.f32 %v1647_v31, %v1243_v6 }
 0x348   :  { %v1608_v13 = vpop.f32.mrf.mxu0  ;;  %v1649_v29 = vpop.f32.mrf.mxu1 }
 0x349   :  { %v8820_v14 = vmul.f32 -1.442695, %v1607_v26  ;;  %v1609_v20 = vadd.f32 %v1608_v13, %v1239_v23  ;;  %v1650_v9 = vadd.f32 %v1649_v29, %v1247_v37  ;;  %v13100_v29 = vld [vmem:[#allocation42_spill] sm:$0xff] }
 0x34a   :  { %v1610_v27 = vpop.f32.mrf.mxu0  ;;  %v1651_v11 = vpop.f32.mrf.mxu1 }
 0x34b   :  { %10366 = vpow2.f32 %v8820_v14  ;;  %v8821_v28 = vmul.f32 -1.442695, %v1609_v20  ;;  %v8822_v22 = vmul.f32 -1.442695, %v1650_v9 }
 0x34c   :  { %v1611_v24 = vpop.f32.mrf.mxu0  ;;  %v1652_v30 = vpop.f32.mrf.mxu1 }
 0x34d   :  { %10368 = vpow2.f32 %v8821_v28  ;;  %v13099_v28 = vld [vmem:[#allocation34_spill] sm:$0xff]  ;;  %v13101_v30 = vld [vmem:[#allocation35_spill] sm:$0xff] }
 0x34e   :  { %10370 = vtanh.f32 %v1648_v8  ;;  %v1681_v8 = vld [vmem:[#allocation4 + $0x18] sm:$0xff] }
 0x34f   :  { %10372 = vpow2.f32 %v8822_v22  ;;  %v13098_v22 = vld [vmem:[#allocation40_spill] sm:$0xff] }
 0x358   :  { %v10367_v5 = vpop.eup %10366 }
 0x359   :  { %v1657_v50 = vadd.f32 1.0, %v10367_v5  ;;  %v1686_v5 = vpack.c.bf16 %v1681_v8, %v1681_v8  ;;  %v13113_v8 = vld [vmem:[#allocation43_spill] sm:$0xff] }
 0x35a   :  { %v10369_v18 = vpop.eup %10368 }
 0x35b   :  { %10374 = vrcp.f32 %v1657_v50  ;;  %v1663_v13 = vadd.f32 1.0, %v10369_v18  ;;  %v10371_v11 = vpop.eup %10370  ;;  %v13102_v50 = vld [vmem:[#allocation44_spill] sm:$0xff]  ;;  %v13103_v18 = vld [vmem:[#allocation37_spill] sm:$0xff] }
 0x35c   :  { %v10373_v14 = vpop.eup %10372 }
 0x35d   :  { %10376 = vrcp.f32 %v1663_v13  ;;  %v1670_v24 = vadd.f32 1.0, %v10373_v14  ;;  %v13104_v13 = vld [vmem:[#allocation46_spill] sm:$0xff]  ;;  %v13106_v14 = vld [vmem:[#allocation48_spill] sm:$0xff] }
 0x35f   :  { %10378 = vrcp.f32 %v1670_v24  ;;  %v13109_v24 = vld [vmem:[#allocation39_spill] sm:$0xff] }
 0x368   :  { %v10375_v20 = vpop.eup %10374 }
 0x369   :  { %v1674_v27 = vmul.f32 %v10375_v20, %v10371_v11  ;;  %v13105_v11 = vld [vmem:[#allocation36_spill] sm:$0xff]  ;;  %v13107_v20 = vld [vmem:[#allocation38_spill] sm:$0xff] }
 0x36a   :  { %v10377_v23 = vpop.eup %10376 }
 0x36b   :  { %v1673_v26 = vmul.f32 %v10377_v23, %v11228_v25  ;;  %v13097_v25 = vld [vmem:[#allocation33_spill] sm:$0xff] }
 0x36c   :  { %v10379_v6 = vpop.eup %10378  ;;  %v13108_v23 = vld [vmem:[#allocation49_spill] sm:$0xff] }
 0x36d   :  { %v11431_v56 = vadd.f32 %v1674_v27, %v1673_v26  ;;  %v13110_v26 = vld [vmem:[#allocation50_spill] sm:$0xff]  ;;  %v13111_v27 = vld [vmem:[#allocation41_spill] sm:$0xff] }
 0x36f   :  { %10380 = vtanh.f32 %v11431_v56 }
 0x37c   :  { %v10381_v31 = vpop.eup %10380 }
 0x37d   :  { %v1677_v37 = vmul.f32 %v10381_v31, %v10379_v6  ;;  %v13112_v6 = vld [vmem:[#allocation51_spill] sm:$0xff]  ;;  %v13114_v31 = vld [vmem:[#allocation52_spill] sm:$0xff] }
 0x37f   :  { %v11434_v9 = vpack.c.bf16 %v1677_v37, %v1677_v37  ;;  %v13115_v37 = vld [vmem:[#allocation45_spill] sm:$0xff] }
 0x381   :  { %13096 = vst [vmem:[#allocation55_spill] sm:$0xff] %v11434_v9  ;;  %2126 = vmatprep.mubr.bf16.mxu0 %v11434_v9  ;;  %2167 = vmatprep.mubr.bf16.mxu1 %v11434_v9  ;;  %v13117_v9 = vld [vmem:[#allocation47_spill] sm:$0xff] }
 0x382   :  { %2127 = vmatmul.mubr.bf16.vlgmr.msra.gmra.mxu0 %v1686_v5  ;;  %2168 = vmatmul.mubr.bf16.vlgmr.msra.gmra.mxu1 %v1686_v5  ;;  %v13116_v5 = vld [vmem:[#allocation53_spill] sm:$0xff] }
 0x383   :  { %2617 = vmatpush1.bf16.msra.mxu0 %v11233_v32  ;;  %2658 = vmatpush1.bf16.msra.mxu1 %v11256_v39 }
 0x384   :  { %2618 = vmatprep.subr.bf16.mxu0 %v11238_v44  ;;  %2659 = vmatprep.subr.bf16.mxu1 %v11264_v43 }
 0x387   :  { %2619 = vmatpush1.bf16.msra.mxu0 %v11240_v33  ;;  %2660 = vmatpush1.bf16.msra.mxu1 %v11268_v46 }
 0x388   :  { %2620 = vmatprep.subr.bf16.mxu0 %v11244_v34  ;;  %2661 = vmatprep.subr.bf16.mxu1 %v11276_v48 }
 0x38b   :  { %2621 = vmatpush1.bf16.msra.mxu0 %v11246_v35  ;;  %2662 = vmatpush1.bf16.msra.mxu1 %v11280_v51 }
 0x38c   :  { %2622 = vmatprep.subr.bf16.mxu0 %v11250_v36  ;;  %2663 = vmatprep.subr.bf16.mxu1 %v11288_v53 }
 0x38f   :  { %2623 = vmatpush1.bf16.msra.mxu0 %v11254_v38  ;;  %2664 = vmatpush1.bf16.msra.mxu1 %v11292_v60 }
 0x390   :  { %2624 = vmatprep.subr.bf16.mxu0 %v11262_v41  ;;  %2665 = vmatprep.subr.bf16.mxu1 %v11300_v61 }
 0x393   :  { %2625 = vmatpush1.bf16.msra.mxu0 %v11266_v45  ;;  %2666 = vmatpush1.bf16.msra.mxu1 %v11304_v63 }
 0x394   :  { %2626 = vmatprep.subr.bf16.mxu0 %v11274_v47  ;;  %2667 = vmatprep.subr.bf16.mxu1 %v11312_v0 }
 0x397   :  { %2627 = vmatpush1.bf16.msra.mxu0 %v11278_v49  ;;  %2668 = vmatpush1.bf16.msra.mxu1 %v11316_v1 }
 0x398   :  { %2628 = vmatprep.subr.bf16.mxu0 %v11286_v52  ;;  %2669 = vmatprep.subr.bf16.mxu1 %v11324_v2 }
 0x39b   :  { %2629 = vmatpush1.bf16.msra.mxu0 %v11290_v55  ;;  %2670 = vmatpush1.bf16.msra.mxu1 %v11328_v54 }
 0x39c   :  { %2630 = vmatprep.subr.bf16.mxu0 %v11298_v57  ;;  %2671 = vmatprep.subr.bf16.mxu1 %v11336_v4 }
 0x39f   :  { %2631 = vmatpush1.bf16.msra.mxu0 %v11302_v58  ;;  %2672 = vmatpush1.bf16.msra.mxu1 %v11340_v7 }
 0x3a0   :  { %2632 = vmatprep.subr.bf16.mxu0 %v11310_v40  ;;  %2673 = vmatprep.subr.bf16.mxu1 %v11348_v10 }
 0x3a3   :  { %2633 = vmatpush2.bf16.msra.mxu0 %v11314_v59  ;;  %2674 = vmatpush2.bf16.msra.mxu1 %v11352_v12 }
 0x3a4   :  { %2634 = vmatprep.subr.bf16.mxu0 %v11322_v42  ;;  %2675 = vmatprep.subr.bf16.mxu1 %v11364_v16 }
 0x3a7   :  { %2635 = vmatpush2.bf16.msra.mxu0 %v11326_v62  ;;  %2676 = vmatpush2.bf16.msra.mxu1 %v11362_v15 }
 0x3a8   :  { %2636 = vmatprep.subr.bf16.mxu0 %v11334_v3  ;;  %2677 = vmatprep.subr.bf16.mxu1 %v11369_v19 }
 0x3ab   :  { %2637 = vmatpush2.bf16.msra.mxu0 %v13097_v25  ;;  %2678 = vmatpush2.bf16.msra.mxu1 %v13098_v22 }
 0x3ac   :  { %2638 = vmatprep.subr.bf16.mxu0 %v13099_v28  ;;  %2679 = vmatprep.subr.bf16.mxu1 %v13100_v29 }
 0x3af   :  { %2639 = vmatpush2.bf16.msra.mxu0 %v13101_v30  ;;  %2680 = vmatpush2.bf16.msra.mxu1 %v13102_v50 }
 0x3b0   :  { %2640 = vmatprep.subr.bf16.mxu0 %v13103_v18  ;;  %2681 = vmatprep.subr.bf16.mxu1 %v13104_v13 }
 0x3b3   :  { %2641 = vmatpush2.bf16.msra.mxu0 %v13105_v11  ;;  %2682 = vmatpush2.bf16.msra.mxu1 %v13106_v14 }
 0x3b4   :  { %2642 = vmatprep.subr.bf16.mxu0 %v13107_v20  ;;  %2683 = vmatprep.subr.bf16.mxu1 %v13108_v23  ;;  %v13118_v20 = vld [vmem:[#allocation54_spill] sm:$0xff] }
 0x3b5   :  { %v13119_v23 = vld [vmem:[#allocation30_spill] sm:$0xff] }
 0x3b7   :  { %2643 = vmatpush2.bf16.msra.mxu0 %v13109_v24  ;;  %2684 = vmatpush2.bf16.msra.mxu1 %v13110_v26  ;;  %v13120_v24 = vld [vmem:[#allocation32_spill] sm:$0xff]  ;;  %v1752_v26 = vld [vmem:[#allocation9] sm:$0xf] }
 0x3b8   :  { %2644 = vmatprep.subr.bf16.mxu0 %v13111_v27  ;;  %2685 = vmatprep.subr.bf16.mxu1 %v13112_v6  ;;  %v13121_v27 = vld [vmem:[#allocation25_spill] sm:$0xff]  ;;  %v13122_v6 = vld [vmem:[#allocation26_spill] sm:$0xff] }
 0x3b9   :  { %v1757_v14 = vrot.slane %v1752_v26, %v13121_v27  ;;  %v1761_v11 = vrot.slane %v1752_v26, %v13122_v6  ;;  %v1765_v27 = vrot.slane %v1752_v26, %v11202_v21 }
 0x3bb   :  { %2645 = vmatpush2.bf16.msra.mxu0 %v13113_v8  ;;  %2686 = vmatpush2.bf16.msra.mxu1 %v13114_v31 }
 0x3bc   :  { %2646 = vmatprep.subr.bf16.mxu0 %v13115_v37  ;;  %2687 = vmatprep.subr.bf16.mxu1 %v13116_v5 }
 0x3bf   :  { %2647 = vmatpush2.bf16.msra.mxu0 %v13117_v9  ;;  %2688 = vmatpush2.bf16.msra.mxu1 %v13118_v20 }
 0x3c0   :  { %3138 = vmatprep.subr.bf16.mxu0 %v13119_v23  ;;  %3179 = vmatprep.subr.bf16.mxu1 %v13120_v24  ;;  %v1769_v24 = vrot.slane %v1752_v26, %v11200_v17 }
 0x442   :  { %v2128_v8 = vpop.f32.mrf.mxu0  ;;  %v2169_v13 = vpop.f32.mrf.mxu1 }
 0x443   :  { %v2129_v31 = vadd.f32 %v2128_v8, %v1757_v14  ;;  %v2170_v6 = vadd.f32 %v2169_v13, %v1765_v27 }
 0x444   :  { %v2130_v18 = vpop.f32.mrf.mxu0  ;;  %v2171_v37 = vpop.f32.mrf.mxu1 }
 0x445   :  { %v8887_v50 = vmul.f32 -1.442695, %v2129_v31  ;;  %v2131_v5 = vadd.f32 %v2130_v18, %v1761_v11  ;;  %v2172_v28 = vadd.f32 %v2171_v37, %v1769_v24 }
 0x446   :  { %v2132_v30 = vpop.f32.mrf.mxu0  ;;  %v2173_v9 = vpop.f32.mrf.mxu1 }
 0x447   :  { %10382 = vpow2.f32 %v8887_v50  ;;  %v8888_v20 = vmul.f32 -1.442695, %v2131_v5  ;;  %v8889_v22 = vmul.f32 -1.442695, %v2172_v28  ;;  %v2203_v28 = vld [vmem:[#allocation4 + $0x20] sm:$0xff] }
 0x448   :  { %v2133_v29 = vpop.f32.mrf.mxu0  ;;  %v2174_v23 = vpop.f32.mrf.mxu1  ;;  %v2208_v27 = vpack.c.bf16 %v2203_v28, %v2203_v28 }
 0x449   :  { %10384 = vpow2.f32 %v8888_v20 }
 0x44a   :  { %10386 = vtanh.f32 %v2170_v6 }
 0x44b   :  { %10388 = vpow2.f32 %v8889_v22 }
 0x454   :  { %v10383_v25 = vpop.eup %10382 }
 0x455   :  { %v2179_v14 = vadd.f32 1.0, %v10383_v25 }
 0x456   :  { %v10385_v8 = vpop.eup %10384 }
 0x457   :  { %10390 = vrcp.f32 %v2179_v14  ;;  %v2185_v30 = vadd.f32 1.0, %v10385_v8  ;;  %v10387_v9 = vpop.eup %10386 }
 0x458   :  { %v10389_v50 = vpop.eup %10388 }
 0x459   :  { %10392 = vrcp.f32 %v2185_v30  ;;  %v2192_v11 = vadd.f32 1.0, %v10389_v50 }
 0x45b   :  { %10394 = vrcp.f32 %v2192_v11 }
 0x464   :  { %v10391_v29 = vpop.eup %10390 }
 0x465   :  { %v2196_v31 = vmul.f32 %v10391_v29, %v10387_v9 }
 0x466   :  { %v10393_v18 = vpop.eup %10392 }
 0x467   :  { %v2195_v20 = vmul.f32 %v10393_v18, %v11431_v56 }
 0x468   :  { %v10395_v25 = vpop.eup %10394 }
 0x469   :  { %v11507_v26 = vadd.f32 %v2196_v31, %v2195_v20 }
 0x46b   :  { %10396 = vtanh.f32 %v11507_v26 }
 0x478   :  { %v10397_v13 = vpop.eup %10396 }
 0x479   :  { %v2199_v22 = vmul.f32 %v10397_v13, %v10395_v25 }
 0x47b   :  { %v11510_v6 = vpack.c.bf16 %v2199_v22, %v2199_v22  ;;  %v2725_v22 = vld [vmem:[#allocation4 + $0x28] sm:$0xff] }
 0x47d   :  { %13123 = vst [vmem:[#allocation30_spill] sm:$0xff] %v11510_v6  ;;  %2648 = vmatprep.mubr.bf16.mxu0 %v11510_v6  ;;  %2689 = vmatprep.mubr.bf16.mxu1 %v11510_v6  ;;  %v11762_v6 = vld [vmem:[#allocation7 + $0x14c] ss:$16 sps:$4 sm:$0xff]  }
 0x47e   :  { %2649 = vmatmul.mubr.bf16.vlgmr.msra.gmra.mxu0 %v2208_v27  ;;  %2690 = vmatmul.mubr.bf16.vlgmr.msra.gmra.mxu1 %v2208_v27 }
 0x47f   :  { %3139 = vmatpush1.bf16.msra.mxu0 %v11233_v32  ;;  %3180 = vmatpush1.bf16.msra.mxu1 %v11256_v39  ;;  %v13124_v32 = vld [vmem:[#allocation33_spill] sm:$0xff]  ;;  %v13131_v39 = vld [vmem:[#allocation46_spill] sm:$0xff] }
 0x480   :  { %3140 = vmatprep.subr.bf16.mxu0 %v11238_v44  ;;  %3181 = vmatprep.subr.bf16.mxu1 %v11264_v43  ;;  %v13125_v44 = vld [vmem:[#allocation40_spill] sm:$0xff] }
 0x481   :  { %v13133_v43 = vld [vmem:[#allocation48_spill] sm:$0xff] }
 0x483   :  { %3141 = vmatpush1.bf16.msra.mxu0 %v11240_v33  ;;  %3182 = vmatpush1.bf16.msra.mxu1 %v11268_v46  ;;  %v13126_v33 = vld [vmem:[#allocation34_spill] sm:$0xff]  ;;  %v13135_v46 = vld [vmem:[#allocation49_spill] sm:$0xff] }
 0x484   :  { %3142 = vmatprep.subr.bf16.mxu0 %v11244_v34  ;;  %3183 = vmatprep.subr.bf16.mxu1 %v11276_v48  ;;  %v13127_v34 = vld [vmem:[#allocation42_spill] sm:$0xff] }
 0x485   :  { %v13137_v48 = vld [vmem:[#allocation50_spill] sm:$0xff] }
 0x487   :  { %3143 = vmatpush1.bf16.msra.mxu0 %v11246_v35  ;;  %3184 = vmatpush1.bf16.msra.mxu1 %v11280_v51  ;;  %v13128_v35 = vld [vmem:[#allocation35_spill] sm:$0xff] }
 0x488   :  { %3144 = vmatprep.subr.bf16.mxu0 %v11250_v36  ;;  %3185 = vmatprep.subr.bf16.mxu1 %v11288_v53  ;;  %v13129_v36 = vld [vmem:[#allocation44_spill] sm:$0xff]  ;;  %v13139_v51 = vld [vmem:[#allocation51_spill] sm:$0xff] }
 0x489   :  { %v13141_v53 = vld [vmem:[#allocation52_spill] sm:$0xff] }
 0x48b   :  { %3145 = vmatpush1.bf16.msra.mxu0 %v11254_v38  ;;  %3186 = vmatpush1.bf16.msra.mxu1 %v11292_v60  ;;  %v13130_v38 = vld [vmem:[#allocation37_spill] sm:$0xff] }
 0x48c   :  { %3146 = vmatprep.subr.bf16.mxu0 %v11262_v41  ;;  %3187 = vmatprep.subr.bf16.mxu1 %v11300_v61  ;;  %v13132_v41 = vld [vmem:[#allocation36_spill] sm:$0xff]  ;;  %v13143_v60 = vld [vmem:[#allocation53_spill] sm:$0xff]  ;;  %v13145_v61 = vld [vmem:[#allocation54_spill] sm:$0xff] }
 0x48f   :  { %3147 = vmatpush1.bf16.msra.mxu0 %v11266_v45  ;;  %3188 = vmatpush1.bf16.msra.mxu1 %v11304_v63  ;;  %v13134_v45 = vld [vmem:[#allocation38_spill] sm:$0xff]  ;;  %v2274_v63 = vld [vmem:[#allocation9] sm:$0xf] }
 0x490   :  { %3148 = vmatprep.subr.bf16.mxu0 %v11274_v47  ;;  %3189 = vmatprep.subr.bf16.mxu1 %v11312_v0  ;;  %v13136_v47 = vld [vmem:[#allocation39_spill] sm:$0xff]  ;;  %v2291_v56 = vrot.slane %v2274_v63, %v11200_v17  ;;  %v2287_v37 = vrot.slane %v2274_v63, %v11202_v21 }
 0x493   :  { %3149 = vmatpush1.bf16.msra.mxu0 %v11278_v49  ;;  %3190 = vmatpush1.bf16.msra.mxu1 %v11316_v1  ;;  %v13138_v49 = vld [vmem:[#allocation41_spill] sm:$0xff] }
 0x494   :  { %3150 = vmatprep.subr.bf16.mxu0 %v11286_v52  ;;  %3191 = vmatprep.subr.bf16.mxu1 %v11324_v2  ;;  %v13140_v52 = vld [vmem:[#allocation43_spill] sm:$0xff] }
 0x495   :  { %13165 = vst [vmem:[#allocation43_spill] sm:$0xff] %v11762_v6 }
 0x497   :  { %3151 = vmatpush1.bf16.msra.mxu0 %v11290_v55  ;;  %3192 = vmatpush1.bf16.msra.mxu1 %v11328_v54  ;;  %v13142_v55 = vld [vmem:[#allocation45_spill] sm:$0xff] }
 0x498   :  { %3152 = vmatprep.subr.bf16.mxu0 %v11298_v57  ;;  %3193 = vmatprep.subr.bf16.mxu1 %v11336_v4  ;;  %v13144_v57 = vld [vmem:[#allocation47_spill] sm:$0xff] }
 0x49b   :  { %3153 = vmatpush1.bf16.msra.mxu0 %v11302_v58  ;;  %3194 = vmatpush1.bf16.msra.mxu1 %v11340_v7  ;;  %v11576_v58 = vld [vmem:[#allocation7 + $0xe4] ss:$16 sps:$4 sm:$0xff]  }
 0x49c   :  { %3154 = vmatprep.subr.bf16.mxu0 %v11310_v40  ;;  %3195 = vmatprep.subr.bf16.mxu1 %v11348_v10  ;;  %v13146_v40 = vld [vmem:[#allocation25_spill] sm:$0xff] }
 0x49d   :  { %v2279_v0 = vrot.slane %v2274_v63, %v13146_v40 }
 0x49f   :  { %3155 = vmatpush2.bf16.msra.mxu0 %v11314_v59  ;;  %3196 = vmatpush2.bf16.msra.mxu1 %v11352_v12  ;;  %v13147_v59 = vld [vmem:[#allocation26_spill] sm:$0xff] }
 0x4a0   :  { %3156 = vmatprep.subr.bf16.mxu0 %v11322_v42  ;;  %3197 = vmatprep.subr.bf16.mxu1 %v11364_v16  ;;  %v2283_v1 = vrot.slane %v2274_v63, %v13147_v59  ;;  %v11648_v63 = vld [vmem:[#allocation7 + $0x88] ss:$16 sps:$4 sm:$0xff]  }
 0x4a3   :  { %3157 = vmatpush2.bf16.msra.mxu0 %v11326_v62  ;;  %3198 = vmatpush2.bf16.msra.mxu1 %v11362_v15 }
 0x4a4   :  { %3158 = vmatprep.subr.bf16.mxu0 %v11334_v3  ;;  %3199 = vmatprep.subr.bf16.mxu1 %v11369_v19 }
 0x4a7   :  { %3159 = vmatpush2.bf16.msra.mxu0 %v13124_v32  ;;  %3200 = vmatpush2.bf16.msra.mxu1 %v13125_v44  ;;  %v2730_v44 = vpack.c.bf16 %v2725_v22, %v2725_v22  ;;  %v11744_v22 = vld [vmem:[#allocation7 + $0x188] ss:$16 sps:$4 sm:$0xff]  }
 0x4a8   :  { %3160 = vmatprep.subr.bf16.mxu0 %v13126_v33  ;;  %3201 = vmatprep.subr.bf16.mxu1 %v13127_v34  ;;  %v11589_v34 = vld [vmem:[#allocation7 + $0xe0] ss:$16 sps:$4 sm:$0xff]   ;;  %13160 = vst [vmem:[#allocation49_spill] sm:$0xff] %v11744_v22 }
 0x4ab   :  { %3161 = vmatpush2.bf16.msra.mxu0 %v13128_v35  ;;  %3202 = vmatpush2.bf16.msra.mxu1 %v13129_v36  ;;  %v11596_v35 = vld [vmem:[#allocation7 + $0xc0] ss:$16 sps:$4 sm:$0xff]   ;;  %v11600_v36 = vld [vmem:[#allocation7 + $0xa4] ss:$16 sps:$4 sm:$0xff]  }
 0x4ac   :  { %3162 = vmatprep.subr.bf16.mxu0 %v13130_v38  ;;  %3203 = vmatprep.subr.bf16.mxu1 %v13131_v39  ;;  %v11602_v38 = vld [vmem:[#allocation7 + $0xa0] ss:$16 sps:$4 sm:$0xff]   ;;  %v11606_v39 = vld [vmem:[#allocation7 + $0x84] ss:$16 sps:$4 sm:$0xff]  }
 0x4af   :  { %3163 = vmatpush2.bf16.msra.mxu0 %v13132_v41  ;;  %3204 = vmatpush2.bf16.msra.mxu1 %v13133_v43  ;;  %v11608_v41 = vld [vmem:[#allocation7 + $0xec] ss:$16 sps:$4 sm:$0xff]   ;;  %v11610_v43 = vld [vmem:[#allocation7 + $0x80] ss:$16 sps:$4 sm:$0xff]  }
 0x4b0   :  { %3164 = vmatprep.subr.bf16.mxu0 %v13134_v45  ;;  %3205 = vmatprep.subr.bf16.mxu1 %v13135_v46  ;;  %v11612_v45 = vld [vmem:[#allocation7 + $0xe8] ss:$16 sps:$4 sm:$0xff]   ;;  %v11618_v46 = vld [vmem:[#allocation7 + $0x64] ss:$16 sps:$4 sm:$0xff]  }
 0x4b3   :  { %3165 = vmatpush2.bf16.msra.mxu0 %v13136_v47  ;;  %3206 = vmatpush2.bf16.msra.mxu1 %v13137_v48  ;;  %v11620_v47 = vld [vmem:[#allocation7 + $0xcc] ss:$16 sps:$4 sm:$0xff]   ;;  %v11622_v48 = vld [vmem:[#allocation7 + $0x60] ss:$16 sps:$4 sm:$0xff]  }
 0x4b4   :  { %3166 = vmatprep.subr.bf16.mxu0 %v13138_v49  ;;  %3207 = vmatprep.subr.bf16.mxu1 %v13139_v51  ;;  %v11624_v49 = vld [vmem:[#allocation7 + $0xc8] ss:$16 sps:$4 sm:$0xff]   ;;  %v11630_v51 = vld [vmem:[#allocation7 + $0x44] ss:$16 sps:$4 sm:$0xff]  }
 0x4b7   :  { %3167 = vmatpush2.bf16.msra.mxu0 %v13140_v52  ;;  %3208 = vmatpush2.bf16.msra.mxu1 %v13141_v53  ;;  %v11632_v52 = vld [vmem:[#allocation7 + $0xac] ss:$16 sps:$4 sm:$0xff]   ;;  %v11634_v53 = vld [vmem:[#allocation7 + $0x40] ss:$16 sps:$4 sm:$0xff]  }
 0x4b8   :  { %3168 = vmatprep.subr.bf16.mxu0 %v13142_v55  ;;  %3209 = vmatprep.subr.bf16.mxu1 %v13143_v60  ;;  %v11636_v55 = vld [vmem:[#allocation7 + $0xa8] ss:$16 sps:$4 sm:$0xff]   ;;  %v11642_v60 = vld [vmem:[#allocation7 + $0x24] ss:$16 sps:$4 sm:$0xff]  }
 0x4bb   :  { %3169 = vmatpush2.bf16.msra.mxu0 %v13144_v57  ;;  %3210 = vmatpush2.bf16.msra.mxu1 %v13145_v61  ;;  %v11644_v57 = vld [vmem:[#allocation7 + $0x8c] ss:$16 sps:$4 sm:$0xff]   ;;  %v11646_v61 = vld [vmem:[#allocation7 + $0x20] ss:$16 sps:$4 sm:$0xff]  }
 0x4bc   :  { %3660 = vmatprep.subr.bf16.mxu0 %v11576_v58  ;;  %3701 = vmatprep.subr.bf16.mxu1 %v11608_v41 }
 0x53e   :  { %v2650_v42 = vpop.f32.mrf.mxu0  ;;  %v2691_v2 = vpop.f32.mrf.mxu1 }
 0x53f   :  { %v2651_v62 = vadd.f32 %v2650_v42, %v2279_v0  ;;  %v2692_v23 = vadd.f32 %v2691_v2, %v2287_v37  ;;  %v11654_v0 = vld [vmem:[#allocation7 + $0x4] ss:$16 sps:$4 sm:$0xff]   ;;  %v11658_v42 = vld [vmem:[#allocation7] ss:$16 sps:$4 sm:$0xff]   ;;  %v11660_v2 = vld [vmem:[#allocation7 + $0x68] ss:$16 sps:$4 sm:$0xff]  }
 0x540   :  { %v2652_v54 = vpop.f32.mrf.mxu0  ;;  %v2693_v3 = vpop.f32.mrf.mxu1  ;;  %v11696_v37 = vld [vmem:[#allocation7 + $0x8] ss:$16 sps:$4 sm:$0xff]  }
 0x541   :  { %v8954_v4 = vmul.f32 -1.442695, %v2651_v62  ;;  %v2653_v7 = vadd.f32 %v2652_v54, %v2283_v1  ;;  %v2694_v5 = vadd.f32 %v2693_v3, %v2291_v56  ;;  %v11656_v1 = vld [vmem:[#allocation7 + $0x6c] ss:$16 sps:$4 sm:$0xff]   ;;  %v11666_v62 = vld [vmem:[#allocation7 + $0x1e4] ss:$16 sps:$4 sm:$0xff]  }
 0x542   :  { %v2654_v10 = vpop.f32.mrf.mxu0  ;;  %v2695_v12 = vpop.f32.mrf.mxu1  ;;  %v11668_v54 = vld [vmem:[#allocation7 + $0x4c] ss:$16 sps:$4 sm:$0xff]   ;;  %v11670_v3 = vld [vmem:[#allocation7 + $0x1e0] ss:$16 sps:$4 sm:$0xff]  }
 0x543   :  { %10398 = vpow2.f32 %v8954_v4  ;;  %v8955_v15 = vmul.f32 -1.442695, %v2653_v7  ;;  %v8956_v24 = vmul.f32 -1.442695, %v2694_v5  ;;  %v11672_v4 = vld [vmem:[#allocation7 + $0x48] ss:$16 sps:$4 sm:$0xff]  }
 0x544   :  { %v2655_v16 = vpop.f32.mrf.mxu0  ;;  %v2696_v19 = vpop.f32.mrf.mxu1  ;;  %v11678_v7 = vld [vmem:[#allocation7 + $0x1c4] ss:$16 sps:$4 sm:$0xff]   ;;  %v11680_v10 = vld [vmem:[#allocation7 + $0x2c] ss:$16 sps:$4 sm:$0xff]   ;;  %v11682_v12 = vld [vmem:[#allocation7 + $0x1c0] ss:$16 sps:$4 sm:$0xff]  }
 0x545   :  { %10400 = vpow2.f32 %v8955_v15  ;;  %v11684_v15 = vld [vmem:[#allocation7 + $0x28] ss:$16 sps:$4 sm:$0xff]   ;;  %v11690_v16 = vld [vmem:[#allocation7 + $0x1a4] ss:$16 sps:$4 sm:$0xff]   ;;  %v11692_v19 = vld [vmem:[#allocation7 + $0xc] ss:$16 sps:$4 sm:$0xff]  }
 0x546   :  { %10402 = vtanh.f32 %v2692_v23  ;;  %v11694_v56 = vld [vmem:[#allocation7 + $0x1a0] ss:$16 sps:$4 sm:$0xff]   ;;  %v11702_v5 = vld [vmem:[#allocation7 + $0x184] ss:$16 sps:$4 sm:$0xff]   ;;  %v11704_v23 = vld [vmem:[#allocation7 + $0x1ec] ss:$16 sps:$4 sm:$0xff]  }
 0x547   :  { %10404 = vpow2.f32 %v8956_v24  ;;  %13149 = vst [vmem:[#allocation33_spill] sm:$0xff] %v11694_v56  ;;  %13150 = vst [vmem:[#allocation40_spill] sm:$0xff] %v11702_v5  ;;  %v11706_v24 = vld [vmem:[#allocation7 + $0x180] ss:$16 sps:$4 sm:$0xff]  }
 0x548   :  { %13151 = vst [vmem:[#allocation34_spill] sm:$0xff] %v11706_v24 }
 0x550   :  { %v10399_v14 = vpop.eup %10398 }
 0x551   :  { %v2701_v8 = vadd.f32 1.0, %v10399_v14  ;;  %v11708_v14 = vld [vmem:[#allocation7 + $0x1e8] ss:$16 sps:$4 sm:$0xff]  }
 0x552   :  { %v10401_v30 = vpop.eup %10400 }
 0x553   :  { %10406 = vrcp.f32 %v2701_v8  ;;  %v2707_v9 = vadd.f32 1.0, %v10401_v30  ;;  %v10403_v50 = vpop.eup %10402  ;;  %v11714_v8 = vld [vmem:[#allocation7 + $0x160] ss:$16 sps:$4 sm:$0xff]   ;;  %v11716_v30 = vld [vmem:[#allocation7 + $0x164] ss:$16 sps:$4 sm:$0xff]  }
 0x554   :  { %v10405_v29 = vpop.eup %10404  ;;  %13152 = vst [vmem:[#allocation42_spill] sm:$0xff] %v11714_v8  ;;  %13153 = vst [vmem:[#allocation35_spill] sm:$0xff] %v11716_v30 }
 0x555   :  { %10408 = vrcp.f32 %v2707_v9  ;;  %v2714_v20 = vadd.f32 1.0, %v10405_v29  ;;  %v11718_v9 = vld [vmem:[#allocation7 + $0x1c8] ss:$16 sps:$4 sm:$0xff]   ;;  %v11722_v29 = vld [vmem:[#allocation7 + $0x144] ss:$16 sps:$4 sm:$0xff]  }
 0x556   :  { %13154 = vst [vmem:[#allocation44_spill] sm:$0xff] %v11722_v29 }
 0x557   :  { %10410 = vrcp.f32 %v2714_v20  ;;  %v11732_v20 = vld [vmem:[#allocation7 + $0x1a8] ss:$16 sps:$4 sm:$0xff]  }
 0x558   :  { %13156 = vst [vmem:[#allocation46_spill] sm:$0xff] %v11732_v20 }
 0x560   :  { %v10407_v18 = vpop.eup %10406 }
 0x561   :  { %v2718_v25 = vmul.f32 %v10407_v18, %v10403_v50  ;;  %v11720_v50 = vld [vmem:[#allocation7 + $0x1cc] ss:$16 sps:$4 sm:$0xff]  }
 0x562   :  { %v10409_v11 = vpop.eup %10408  ;;  %v11725_v18 = vld [vmem:[#allocation7 + $0x1ac] ss:$16 sps:$4 sm:$0xff]  }
 0x563   :  { %v2717_v31 = vmul.f32 %v10409_v11, %v11507_v26  ;;  %v11594_v26 = vld [vmem:[#allocation7 + $0xc4] ss:$16 sps:$4 sm:$0xff]   ;;  %v11730_v11 = vld [vmem:[#allocation7 + $0x140] ss:$16 sps:$4 sm:$0xff]  }
 0x564   :  { %v10411_v13 = vpop.eup %10410  ;;  %13155 = vst [vmem:[#allocation37_spill] sm:$0xff] %v11730_v11 }
 0x565   :  { %v11584_v28 = vadd.f32 %v2718_v25, %v2717_v31  ;;  %v11736_v31 = vld [vmem:[#allocation7 + $0x124] ss:$16 sps:$4 sm:$0xff]   ;;  %v11738_v25 = vld [vmem:[#allocation7 + $0x18c] ss:$16 sps:$4 sm:$0xff]  }
 0x566   :  { %13157 = vst [vmem:[#allocation36_spill] sm:$0xff] %v11736_v31  ;;  %13158 = vst [vmem:[#allocation48_spill] sm:$0xff] %v11738_v25 }
 0x567   :  { %10412 = vtanh.f32 %v11584_v28 }
 0x574   :  { %v10413_v27 = vpop.eup %10412 }
 0x575   :  { %v2721_v32 = vmul.f32 %v10413_v27, %v10411_v13  ;;  %v11742_v13 = vld [vmem:[#allocation7 + $0x120] ss:$16 sps:$4 sm:$0xff]   ;;  %v11748_v27 = vld [vmem:[#allocation7 + $0x104] ss:$16 sps:$4 sm:$0xff]  }
 0x576   :  { %13159 = vst [vmem:[#allocation38_spill] sm:$0xff] %v11742_v13  ;;  %13161 = vst [vmem:[#allocation39_spill] sm:$0xff] %v11748_v27 }
 0x577   :  { %v11587_v33 = vpack.c.bf16 %v2721_v32, %v2721_v32  ;;  %v11750_v32 = vld [vmem:[#allocation7 + $0x16c] ss:$16 sps:$4 sm:$0xff]  }
 0x578   :  { %13162 = vst [vmem:[#allocation50_spill] sm:$0xff] %v11750_v32 }
 0x579   :  { %13148 = vst [vmem:[#allocation32_spill] sm:$0xff] %v11587_v33  ;;  %3170 = vmatprep.mubr.bf16.mxu0 %v11587_v33  ;;  %3211 = vmatprep.mubr.bf16.mxu1 %v11587_v33  ;;  %v11756_v33 = vld [vmem:[#allocation7 + $0x168] ss:$16 sps:$4 sm:$0xff]  }
 0x57a   :  { %3171 = vmatmul.mubr.bf16.vlgmr.msra.gmra.mxu0 %v2730_v44  ;;  %3212 = vmatmul.mubr.bf16.vlgmr.msra.gmra.mxu1 %v2730_v44  ;;  %v11754_v44 = vld [vmem:[#allocation7 + $0x100] ss:$16 sps:$4 sm:$0xff]   ;;  %13164 = vst [vmem:[#allocation51_spill] sm:$0xff] %v11756_v33 }
 0x57b   :  { %3661 = vmatpush1.bf16.msra.mxu0 %v11589_v34  ;;  %3702 = vmatpush1.bf16.msra.mxu1 %v11612_v45  ;;  %13163 = vst [vmem:[#allocation41_spill] sm:$0xff] %v11754_v44 }
 0x57c   :  { %3662 = vmatprep.subr.bf16.mxu0 %v11594_v26  ;;  %3703 = vmatprep.subr.bf16.mxu1 %v11620_v47 }
 0x57f   :  { %3663 = vmatpush1.bf16.msra.mxu0 %v11596_v35  ;;  %3704 = vmatpush1.bf16.msra.mxu1 %v11624_v49 }
 0x580   :  { %3664 = vmatprep.subr.bf16.mxu0 %v11600_v36  ;;  %3705 = vmatprep.subr.bf16.mxu1 %v11632_v52 }
 0x583   :  { %3665 = vmatpush1.bf16.msra.mxu0 %v11602_v38  ;;  %3706 = vmatpush1.bf16.msra.mxu1 %v11636_v55 }
 0x584   :  { %3666 = vmatprep.subr.bf16.mxu0 %v11606_v39  ;;  %3707 = vmatprep.subr.bf16.mxu1 %v11644_v57 }
 0x587   :  { %3667 = vmatpush1.bf16.msra.mxu0 %v11610_v43  ;;  %3708 = vmatpush1.bf16.msra.mxu1 %v11648_v63 }
 0x588   :  { %3668 = vmatprep.subr.bf16.mxu0 %v11618_v46  ;;  %3709 = vmatprep.subr.bf16.mxu1 %v11656_v1 }
 0x58b   :  { %3669 = vmatpush1.bf16.msra.mxu0 %v11622_v48  ;;  %3710 = vmatpush1.bf16.msra.mxu1 %v11660_v2 }
 0x58c   :  { %3670 = vmatprep.subr.bf16.mxu0 %v11630_v51  ;;  %3711 = vmatprep.subr.bf16.mxu1 %v11668_v54 }
 0x58f   :  { %3671 = vmatpush1.bf16.msra.mxu0 %v11634_v53  ;;  %3712 = vmatpush1.bf16.msra.mxu1 %v11672_v4 }
 0x590   :  { %3672 = vmatprep.subr.bf16.mxu0 %v11642_v60  ;;  %3713 = vmatprep.subr.bf16.mxu1 %v11680_v10 }
 0x593   :  { %3673 = vmatpush1.bf16.msra.mxu0 %v11646_v61  ;;  %3714 = vmatpush1.bf16.msra.mxu1 %v11684_v15 }
 0x594   :  { %3674 = vmatprep.subr.bf16.mxu0 %v11654_v0  ;;  %3715 = vmatprep.subr.bf16.mxu1 %v11692_v19 }
 0x597   :  { %3675 = vmatpush1.bf16.msra.mxu0 %v11658_v42  ;;  %3716 = vmatpush1.bf16.msra.mxu1 %v11696_v37 }
 0x598   :  { %3676 = vmatprep.subr.bf16.mxu0 %v11666_v62  ;;  %3717 = vmatprep.subr.bf16.mxu1 %v11704_v23 }
 0x59b   :  { %3677 = vmatpush2.bf16.msra.mxu0 %v11670_v3  ;;  %3718 = vmatpush2.bf16.msra.mxu1 %v11708_v14 }
 0x59c   :  { %3678 = vmatprep.subr.bf16.mxu0 %v11678_v7  ;;  %3719 = vmatprep.subr.bf16.mxu1 %v11720_v50 }
 0x59f   :  { %3679 = vmatpush2.bf16.msra.mxu0 %v11682_v12  ;;  %3720 = vmatpush2.bf16.msra.mxu1 %v11718_v9 }
 0x5a0   :  { %3680 = vmatprep.subr.bf16.mxu0 %v11690_v16  ;;  %3721 = vmatprep.subr.bf16.mxu1 %v11725_v18 }
 0x5a3   :  { %3681 = vmatpush2.bf16.msra.mxu0 %v11694_v56  ;;  %3722 = vmatpush2.bf16.msra.mxu1 %v11732_v20 }
 0x5a4   :  { %3682 = vmatprep.subr.bf16.mxu0 %v11702_v5  ;;  %3723 = vmatprep.subr.bf16.mxu1 %v11738_v25 }
 0x5a7   :  { %3683 = vmatpush2.bf16.msra.mxu0 %v11706_v24  ;;  %3724 = vmatpush2.bf16.msra.mxu1 %v11744_v22 }
 0x5a8   :  { %3684 = vmatprep.subr.bf16.mxu0 %v11716_v30  ;;  %3725 = vmatprep.subr.bf16.mxu1 %v11750_v32 }
 0x5ab   :  { %3685 = vmatpush2.bf16.msra.mxu0 %v11714_v8  ;;  %3726 = vmatpush2.bf16.msra.mxu1 %v11756_v33 }
 0x5ac   :  { %3686 = vmatprep.subr.bf16.mxu0 %v11722_v29  ;;  %3727 = vmatprep.subr.bf16.mxu1 %v11762_v6 }
 0x5af   :  { %3687 = vmatpush2.bf16.msra.mxu0 %v11730_v11  ;;  %v11771_v11 = vld [vmem:[#allocation7 + $0x128] ss:$16 sps:$4 sm:$0xff]  }
 0x5b0   :  { %3688 = vmatprep.subr.bf16.mxu0 %v11736_v31  ;;  %v11765_v31 = vld [vmem:[#allocation7 + $0x148] ss:$16 sps:$4 sm:$0xff]   ;;  %13168 = vst [vmem:[#allocation53_spill] sm:$0xff] %v11771_v11 }
 0x5b1   :  { %13166 = vst [vmem:[#allocation52_spill] sm:$0xff] %v11765_v31  ;;  %3728 = vmatpush2.bf16.msra.mxu1 %v11765_v31 }
 0x5b3   :  { %3689 = vmatpush2.bf16.msra.mxu0 %v11742_v13  ;;  %v11768_v13 = vld [vmem:[#allocation7 + $0x12c] ss:$16 sps:$4 sm:$0xff]  }
 0x5b4   :  { %3690 = vmatprep.subr.bf16.mxu0 %v11748_v27  ;;  %13167 = vst [vmem:[#allocation45_spill] sm:$0xff] %v11768_v13  ;;  %3729 = vmatprep.subr.bf16.mxu1 %v11768_v13  ;;  %v11774_v27 = vld [vmem:[#allocation7 + $0x10c] ss:$16 sps:$4 sm:$0xff]  }
 0x5b5   :  { %13169 = vst [vmem:[#allocation47_spill] sm:$0xff] %v11774_v27  ;;  %3730 = vmatpush2.bf16.msra.mxu1 %v11771_v11 }
 0x5b6   :  { %3731 = vmatprep.subr.bf16.mxu1 %v11774_v27 }
 0x5b7   :  { %3691 = vmatpush2.bf16.msra.mxu0 %v11754_v44  ;;  %v11777_v44 = vld [vmem:[#allocation7 + $0x108] ss:$16 sps:$4 sm:$0xff]  }
 0x5b8   :  { %4182 = vmatprep.subr.bf16.mxu0 %v11576_v58  ;;  %13170 = vst [vmem:[#allocation54_spill] sm:$0xff] %v11777_v44  ;;  %v2796_v58 = vld [vmem:[#allocation9] sm:$0xf] }
 0x5b9   :  { %3732 = vmatpush2.bf16.msra.mxu1 %v11777_v44  ;;  %v2801_v6 = vrot.slane %v2796_v58, %v13146_v40  ;;  %v2805_v31 = vrot.slane %v2796_v58, %v13147_v59  ;;  %v2809_v40 = vrot.slane %v2796_v58, %v11202_v21 }
 0x5ba   :  { %4223 = vmatprep.subr.bf16.mxu1 %v11608_v41  ;;  %v2813_v41 = vrot.slane %v2796_v58, %v11200_v17 }
 0x63a   :  { %v3172_v29 = vpop.f32.mrf.mxu0  ;;  %v3213_v33 = vpop.f32.mrf.mxu1 }
 0x63b   :  { %v3173_v13 = vadd.f32 %v3172_v29, %v2801_v6  ;;  %v3214_v59 = vadd.f32 %v3213_v33, %v2809_v40 }
 0x63c   :  { %v3174_v8 = vpop.f32.mrf.mxu0  ;;  %v3215_v32 = vpop.f32.mrf.mxu1 }
 0x63d   :  { %v9021_v30 = vmul.f32 -1.442695, %v3173_v13  ;;  %v3175_v11 = vadd.f32 %v3174_v8, %v2805_v31  ;;  %v3216_v5 = vadd.f32 %v3215_v32, %v2813_v41 }
 0x63e   :  { %v3176_v22 = vpop.f32.mrf.mxu0  ;;  %v3217_v24 = vpop.f32.mrf.mxu1 }
 0x63f   :  { %10414 = vpow2.f32 %v9021_v30  ;;  %v9022_v27 = vmul.f32 -1.442695, %v3175_v11  ;;  %v9023_v20 = vmul.f32 -1.442695, %v3216_v5 }
 0x640   :  { %v3177_v25 = vpop.f32.mrf.mxu0  ;;  %v3218_v44 = vpop.f32.mrf.mxu1 }
 0x641   :  { %10416 = vpow2.f32 %v9022_v27 }
 0x642   :  { %10418 = vtanh.f32 %v3214_v59  ;;  %v3247_v59 = vld [vmem:[#allocation4 + $0x30] sm:$0xff] }
 0x643   :  { %10420 = vpow2.f32 %v9023_v20  ;;  %v3252_v5 = vpack.c.bf16 %v3247_v59, %v3247_v59 }
 0x64c   :  { %v10415_v56 = vpop.eup %10414 }
 0x64d   :  { %v3223_v6 = vadd.f32 1.0, %v10415_v56 }
 0x64e   :  { %v10417_v29 = vpop.eup %10416 }
 0x64f   :  { %10422 = vrcp.f32 %v3223_v6  ;;  %v3229_v8 = vadd.f32 1.0, %v10417_v29  ;;  %v10419_v24 = vpop.eup %10418 }
 0x650   :  { %v10421_v30 = vpop.eup %10420 }
 0x651   :  { %10424 = vrcp.f32 %v3229_v8  ;;  %v3236_v25 = vadd.f32 1.0, %v10421_v30 }
 0x653   :  { %10426 = vrcp.f32 %v3236_v25 }
 0x65c   :  { %v10423_v11 = vpop.eup %10422 }
 0x65d   :  { %v3240_v22 = vmul.f32 %v10423_v11, %v10419_v24 }
 0x65e   :  { %v10425_v31 = vpop.eup %10424 }
 0x65f   :  { %v3239_v13 = vmul.f32 %v10425_v31, %v11584_v28  ;;  %v13172_v28 = vld [vmem:[#allocation33_spill] sm:$0xff] }
 0x660   :  { %v10427_v40 = vpop.eup %10426 }
 0x661   :  { %v11787_v27 = vadd.f32 %v3240_v22, %v3239_v13 }
 0x663   :  { %10428 = vtanh.f32 %v11787_v27 }
 0x670   :  { %v10429_v33 = vpop.eup %10428 }
 0x671   :  { %v3243_v56 = vmul.f32 %v10429_v33, %v10427_v40 }
 0x673   :  { %v11790_v20 = vpack.c.bf16 %v3243_v56, %v3243_v56 }
 0x675   :  { %13171 = vst [vmem:[#allocation56_spill] sm:$0xff] %v11790_v20  ;;  %3692 = vmatprep.mubr.bf16.mxu0 %v11790_v20  ;;  %3733 = vmatprep.mubr.bf16.mxu1 %v11790_v20  ;;  %v12040_v20 = vld [vmem:[#allocation7 + $0x320] ss:$16 sps:$4 sm:$0xff]  }
 0x676   :  { %3693 = vmatmul.mubr.bf16.vlgmr.msra.gmra.mxu0 %v3252_v5  ;;  %3734 = vmatmul.mubr.bf16.vlgmr.msra.gmra.mxu1 %v3252_v5  ;;  %v3769_v5 = vld [vmem:[#allocation4 + $0x38] sm:$0xff] }
 0x677   :  { %4183 = vmatpush1.bf16.msra.mxu0 %v11589_v34  ;;  %4224 = vmatpush1.bf16.msra.mxu1 %v11612_v45  ;;  %v13173_v34 = vld [vmem:[#allocation46_spill] sm:$0xff] }
 0x678   :  { %4184 = vmatprep.subr.bf16.mxu0 %v11594_v26  ;;  %4225 = vmatprep.subr.bf16.mxu1 %v11620_v47  ;;  %v13174_v26 = vld [vmem:[#allocation40_spill] sm:$0xff]  ;;  %v13180_v45 = vld [vmem:[#allocation42_spill] sm:$0xff] }
 0x679   :  { %v13182_v47 = vld [vmem:[#allocation44_spill] sm:$0xff] }
 0x67b   :  { %4185 = vmatpush1.bf16.msra.mxu0 %v11596_v35  ;;  %4226 = vmatpush1.bf16.msra.mxu1 %v11624_v49  ;;  %v13175_v35 = vld [vmem:[#allocation48_spill] sm:$0xff]  ;;  %v13184_v49 = vld [vmem:[#allocation37_spill] sm:$0xff] }
 0x67c   :  { %4186 = vmatprep.subr.bf16.mxu0 %v11600_v36  ;;  %4227 = vmatprep.subr.bf16.mxu1 %v11632_v52  ;;  %v13176_v36 = vld [vmem:[#allocation34_spill] sm:$0xff]  ;;  %v13186_v52 = vld [vmem:[#allocation36_spill] sm:$0xff] }
 0x67f   :  { %4187 = vmatpush1.bf16.msra.mxu0 %v11602_v38  ;;  %4228 = vmatpush1.bf16.msra.mxu1 %v11636_v55  ;;  %v13177_v38 = vld [vmem:[#allocation49_spill] sm:$0xff]  ;;  %v13188_v55 = vld [vmem:[#allocation38_spill] sm:$0xff] }
 0x680   :  { %4188 = vmatprep.subr.bf16.mxu0 %v11606_v39  ;;  %4229 = vmatprep.subr.bf16.mxu1 %v11644_v57  ;;  %v13178_v39 = vld [vmem:[#allocation35_spill] sm:$0xff] }
 0x681   :  { %v13190_v57 = vld [vmem:[#allocation39_spill] sm:$0xff] }
 0x683   :  { %4189 = vmatpush1.bf16.msra.mxu0 %v11610_v43  ;;  %4230 = vmatpush1.bf16.msra.mxu1 %v11648_v63  ;;  %v13179_v43 = vld [vmem:[#allocation50_spill] sm:$0xff]  ;;  %v13192_v63 = vld [vmem:[#allocation41_spill] sm:$0xff] }
 0x684   :  { %4190 = vmatprep.subr.bf16.mxu0 %v11618_v46  ;;  %4231 = vmatprep.subr.bf16.mxu1 %v11656_v1  ;;  %v13181_v46 = vld [vmem:[#allocation51_spill] sm:$0xff] }
 0x685   :  { %v11856_v1 = vld [vmem:[#allocation7 + $0x2e4] ss:$16 sps:$4 sm:$0xff]  }
 0x687   :  { %4191 = vmatpush1.bf16.msra.mxu0 %v11622_v48  ;;  %4232 = vmatpush1.bf16.msra.mxu1 %v11660_v2  ;;  %v13183_v48 = vld [vmem:[#allocation43_spill] sm:$0xff] }
 0x688   :  { %4192 = vmatprep.subr.bf16.mxu0 %v11630_v51  ;;  %4233 = vmatprep.subr.bf16.mxu1 %v11668_v54  ;;  %v13185_v51 = vld [vmem:[#allocation52_spill] sm:$0xff]  ;;  %v3318_v2 = vld [vmem:[#allocation9] sm:$0xf] }
 0x689   :  { %v3335_v32 = vrot.slane %v3318_v2, %v11200_v17  ;;  %v3331_v44 = vrot.slane %v3318_v2, %v11202_v21  ;;  %v12046_v21 = vld [vmem:[#allocation7 + $0x304] ss:$16 sps:$4 sm:$0xff]   ;;  %v12048_v17 = vld [vmem:[#allocation7 + $0x30c] ss:$16 sps:$4 sm:$0xff]  }
 0x68a   :  { %13218 = vst [vmem:[#allocation57_spill] sm:$0xff] %v12048_v17 }
 0x68b   :  { %4193 = vmatpush1.bf16.msra.mxu0 %v11634_v53  ;;  %4234 = vmatpush1.bf16.msra.mxu1 %v11672_v4  ;;  %v13187_v53 = vld [vmem:[#allocation45_spill] sm:$0xff] }
 0x68c   :  { %4194 = vmatprep.subr.bf16.mxu0 %v11642_v60  ;;  %4235 = vmatprep.subr.bf16.mxu1 %v11680_v10  ;;  %v13189_v60 = vld [vmem:[#allocation53_spill] sm:$0xff] }
 0x68f   :  { %4195 = vmatpush1.bf16.msra.mxu0 %v11646_v61  ;;  %4236 = vmatpush1.bf16.msra.mxu1 %v11684_v15  ;;  %v13191_v61 = vld [vmem:[#allocation47_spill] sm:$0xff] }
 0x690   :  { %4196 = vmatprep.subr.bf16.mxu0 %v11654_v0  ;;  %4237 = vmatprep.subr.bf16.mxu1 %v11692_v19  ;;  %v13193_v0 = vld [vmem:[#allocation54_spill] sm:$0xff]  ;;  %13215 = vst [vmem:[#allocation47_spill] sm:$0xff] %v12040_v20 }
 0x691   :  { %13217 = vst [vmem:[#allocation54_spill] sm:$0xff] %v12046_v21 }
 0x693   :  { %4197 = vmatpush1.bf16.msra.mxu0 %v11658_v42  ;;  %4238 = vmatpush1.bf16.msra.mxu1 %v11696_v37  ;;  %v11858_v42 = vld [vmem:[#allocation7 + $0x2ec] ss:$16 sps:$4 sm:$0xff]  }
 0x694   :  { %4198 = vmatprep.subr.bf16.mxu0 %v11666_v62  ;;  %4239 = vmatprep.subr.bf16.mxu1 %v11704_v23  ;;  %v13194_v62 = vld [vmem:[#allocation25_spill] sm:$0xff] }
 0x695   :  { %v3323_v54 = vrot.slane %v3318_v2, %v13194_v62  ;;  %v12054_v62 = vld [vmem:[#allocation7 + $0x308] ss:$16 sps:$4 sm:$0xff]  }
 0x696   :  { %13220 = vst [vmem:[#allocation59_spill] sm:$0xff] %v12054_v62 }
 0x697   :  { %4199 = vmatpush2.bf16.msra.mxu0 %v11670_v3  ;;  %4240 = vmatpush2.bf16.msra.mxu1 %v11708_v14  ;;  %v13195_v3 = vld [vmem:[#allocation26_spill] sm:$0xff] }
 0x698   :  { %4200 = vmatprep.subr.bf16.mxu0 %v11678_v7  ;;  %4241 = vmatprep.subr.bf16.mxu1 %v11720_v50  ;;  %v3327_v4 = vrot.slane %v3318_v2, %v13195_v3  ;;  %v11922_v2 = vld [vmem:[#allocation7 + $0x268] ss:$16 sps:$4 sm:$0xff]   ;;  %v12052_v3 = vld [vmem:[#allocation7 + $0x300] ss:$16 sps:$4 sm:$0xff]  }
 0x699   :  { %13219 = vst [vmem:[#allocation58_spill] sm:$0xff] %v12052_v3 }
 0x69b   :  { %4201 = vmatpush2.bf16.msra.mxu0 %v11682_v12  ;;  %4242 = vmatpush2.bf16.msra.mxu1 %v11718_v9 }
 0x69c   :  { %4202 = vmatprep.subr.bf16.mxu0 %v11690_v16  ;;  %4243 = vmatprep.subr.bf16.mxu1 %v11725_v18 }
 0x69f   :  { %4203 = vmatpush2.bf16.msra.mxu0 %v13172_v28  ;;  %4244 = vmatpush2.bf16.msra.mxu1 %v13173_v34 }
 0x6a0   :  { %4204 = vmatprep.subr.bf16.mxu0 %v13174_v26  ;;  %4245 = vmatprep.subr.bf16.mxu1 %v13175_v35  ;;  %v3774_v26 = vpack.c.bf16 %v3769_v5, %v3769_v5  ;;  %v4293_v35 = vld [vmem:[#allocation10 + $0x8] sm:$0xff]  ;;  %v12018_v5 = vld [vmem:[#allocation7 + $0x368] ss:$16 sps:$4 sm:$0xff]  }
 0x6a1   :  { %13208 = vst [vmem:[#allocation37_spill] sm:$0xff] %v12018_v5 }
 0x6a3   :  { %4205 = vmatpush2.bf16.msra.mxu0 %v13176_v36  ;;  %4246 = vmatpush2.bf16.msra.mxu1 %v13177_v38  ;;  %v11872_v38 = vld [vmem:[#allocation7 + $0x2e0] ss:$16 sps:$4 sm:$0xff]  }
 0x6a4   :  { %4206 = vmatprep.subr.bf16.mxu0 %v13178_v39  ;;  %4247 = vmatprep.subr.bf16.mxu1 %v13179_v43  ;;  %v11874_v39 = vld [vmem:[#allocation7 + $0x2e8] ss:$16 sps:$4 sm:$0xff]   ;;  %v11876_v43 = vld [vmem:[#allocation7 + $0x2c4] ss:$16 sps:$4 sm:$0xff]  }
 0x6a7   :  { %4207 = vmatpush2.bf16.msra.mxu0 %v13180_v45  ;;  %4248 = vmatpush2.bf16.msra.mxu1 %v13181_v46  ;;  %v4302_v45 = vpack.c.bf16 %v4293_v35, %v4293_v35  ;;  %v11884_v46 = vld [vmem:[#allocation7 + $0x2c0] ss:$16 sps:$4 sm:$0xff]   ;;  %v12030_v35 = vld [vmem:[#allocation7 + $0x348] ss:$16 sps:$4 sm:$0xff]  }
 0x6a8   :  { %4208 = vmatprep.subr.bf16.mxu0 %v13182_v47  ;;  %4249 = vmatprep.subr.bf16.mxu1 %v13183_v48  ;;  %v11886_v47 = vld [vmem:[#allocation7 + $0x2c8] ss:$16 sps:$4 sm:$0xff]   ;;  %v11890_v48 = vld [vmem:[#allocation7 + $0x2a4] ss:$16 sps:$4 sm:$0xff]   ;;  %13212 = vst [vmem:[#allocation38_spill] sm:$0xff] %v12030_v35 }
 0x6ab   :  { %4209 = vmatpush2.bf16.msra.mxu0 %v13184_v49  ;;  %4250 = vmatpush2.bf16.msra.mxu1 %v13185_v51  ;;  %v11892_v49 = vld [vmem:[#allocation7 + $0x2ac] ss:$16 sps:$4 sm:$0xff]   ;;  %v11896_v51 = vld [vmem:[#allocation7 + $0x2a0] ss:$16 sps:$4 sm:$0xff]  }
 0x6ac   :  { %4210 = vmatprep.subr.bf16.mxu0 %v13186_v52  ;;  %4251 = vmatprep.subr.bf16.mxu1 %v13187_v53  ;;  %v11898_v52 = vld [vmem:[#allocation7 + $0x2a8] ss:$16 sps:$4 sm:$0xff]   ;;  %v11902_v53 = vld [vmem:[#allocation7 + $0x284] ss:$16 sps:$4 sm:$0xff]  }
 0x6af   :  { %4211 = vmatpush2.bf16.msra.mxu0 %v13188_v55  ;;  %4252 = vmatpush2.bf16.msra.mxu1 %v13189_v60  ;;  %v11904_v55 = vld [vmem:[#allocation7 + $0x28c] ss:$16 sps:$4 sm:$0xff]   ;;  %v11908_v60 = vld [vmem:[#allocation7 + $0x280] ss:$16 sps:$4 sm:$0xff]  }
 0x6b0   :  { %4212 = vmatprep.subr.bf16.mxu0 %v13190_v57  ;;  %4253 = vmatprep.subr.bf16.mxu1 %v13191_v61  ;;  %v11910_v57 = vld [vmem:[#allocation7 + $0x288] ss:$16 sps:$4 sm:$0xff]   ;;  %v11914_v61 = vld [vmem:[#allocation7 + $0x264] ss:$16 sps:$4 sm:$0xff]  }
 0x6b3   :  { %4213 = vmatpush2.bf16.msra.mxu0 %v13192_v63  ;;  %4254 = vmatpush2.bf16.msra.mxu1 %v13193_v0  ;;  %v11916_v63 = vld [vmem:[#allocation7 + $0x26c] ss:$16 sps:$4 sm:$0xff]   ;;  %v11920_v0 = vld [vmem:[#allocation7 + $0x260] ss:$16 sps:$4 sm:$0xff]  }
 0x6b4   :  { %4711 = vmatprep.subr.bf16.mxu0 %v11856_v1  ;;  %4752 = vmatprep.subr.bf16.mxu1 %v11858_v42 }
 0x736   :  { %v3694_v7 = vpop.f32.mrf.mxu0  ;;  %v3735_v10 = vpop.f32.mrf.mxu1 }
 0x737   :  { %v3695_v12 = vadd.f32 %v3694_v7, %v3323_v54  ;;  %v3736_v41 = vadd.f32 %v3735_v10, %v3331_v44  ;;  %v11926_v54 = vld [vmem:[#allocation7 + $0x244] ss:$16 sps:$4 sm:$0xff]   ;;  %v11932_v7 = vld [vmem:[#allocation7 + $0x240] ss:$16 sps:$4 sm:$0xff]   ;;  %v11934_v10 = vld [vmem:[#allocation7 + $0x248] ss:$16 sps:$4 sm:$0xff]  }
 0x738   :  { %v3696_v15 = vpop.f32.mrf.mxu0  ;;  %v3737_v16 = vpop.f32.mrf.mxu1  ;;  %v11970_v44 = vld [vmem:[#allocation7 + $0x3e8] ss:$16 sps:$4 sm:$0xff]  }
 0x739   :  { %v9088_v19 = vmul.f32 -1.442695, %v3695_v12  ;;  %v3697_v37 = vadd.f32 %v3696_v15, %v3327_v4  ;;  %v3738_v58 = vadd.f32 %v3737_v16, %v3335_v32  ;;  %v11928_v4 = vld [vmem:[#allocation7 + $0x24c] ss:$16 sps:$4 sm:$0xff]   ;;  %v11938_v12 = vld [vmem:[#allocation7 + $0x224] ss:$16 sps:$4 sm:$0xff]  }
 0x73a   :  { %v3698_v23 = vpop.f32.mrf.mxu0  ;;  %v3739_v14 = vpop.f32.mrf.mxu1  ;;  %v11940_v15 = vld [vmem:[#allocation7 + $0x22c] ss:$16 sps:$4 sm:$0xff]   ;;  %v11944_v16 = vld [vmem:[#allocation7 + $0x220] ss:$16 sps:$4 sm:$0xff]  }
 0x73b   :  { %10430 = vpow2.f32 %v9088_v19  ;;  %v9089_v9 = vmul.f32 -1.442695, %v3697_v37  ;;  %v9090_v6 = vmul.f32 -1.442695, %v3738_v58  ;;  %v11946_v19 = vld [vmem:[#allocation7 + $0x228] ss:$16 sps:$4 sm:$0xff]  }
 0x73c   :  { %v3699_v50 = vpop.f32.mrf.mxu0  ;;  %v3740_v18 = vpop.f32.mrf.mxu1  ;;  %v11950_v37 = vld [vmem:[#allocation7 + $0x204] ss:$16 sps:$4 sm:$0xff]   ;;  %v11952_v23 = vld [vmem:[#allocation7 + $0x20c] ss:$16 sps:$4 sm:$0xff]   ;;  %v11956_v14 = vld [vmem:[#allocation7 + $0x200] ss:$16 sps:$4 sm:$0xff]  }
 0x73d   :  { %10432 = vpow2.f32 %v9089_v9  ;;  %v11958_v9 = vld [vmem:[#allocation7 + $0x208] ss:$16 sps:$4 sm:$0xff]   ;;  %v11962_v50 = vld [vmem:[#allocation7 + $0x3e4] ss:$16 sps:$4 sm:$0xff]   ;;  %v11964_v18 = vld [vmem:[#allocation7 + $0x3ec] ss:$16 sps:$4 sm:$0xff]  }
 0x73e   :  { %10434 = vtanh.f32 %v3736_v41  ;;  %v11968_v32 = vld [vmem:[#allocation7 + $0x3e0] ss:$16 sps:$4 sm:$0xff]   ;;  %v11974_v58 = vld [vmem:[#allocation7 + $0x3c4] ss:$16 sps:$4 sm:$0xff]   ;;  %v11976_v41 = vld [vmem:[#allocation7 + $0x3cc] ss:$16 sps:$4 sm:$0xff]  }
 0x73f   :  { %10436 = vpow2.f32 %v9090_v6  ;;  %v11980_v6 = vld [vmem:[#allocation7 + $0x3c0] ss:$16 sps:$4 sm:$0xff]  }
 0x748   :  { %v10431_v29 = vpop.eup %10430 }
 0x749   :  { %v3745_v8 = vadd.f32 1.0, %v10431_v29  ;;  %v11982_v29 = vld [vmem:[#allocation7 + $0x3c8] ss:$16 sps:$4 sm:$0xff]  }
 0x74a   :  { %v10433_v24 = vpop.eup %10432 }
 0x74b   :  { %10438 = vrcp.f32 %v3745_v8  ;;  %v3751_v30 = vadd.f32 1.0, %v10433_v24  ;;  %v10435_v11 = vpop.eup %10434  ;;  %v11986_v8 = vld [vmem:[#allocation7 + $0x3a4] ss:$16 sps:$4 sm:$0xff]   ;;  %v11988_v24 = vld [vmem:[#allocation7 + $0x3ac] ss:$16 sps:$4 sm:$0xff]  }
 0x74c   :  { %v10437_v31 = vpop.eup %10436  ;;  %13198 = vst [vmem:[#allocation40_spill] sm:$0xff] %v11988_v24 }
 0x74d   :  { %10440 = vrcp.f32 %v3751_v30  ;;  %v3758_v22 = vadd.f32 1.0, %v10437_v31  ;;  %v11992_v30 = vld [vmem:[#allocation7 + $0x3a0] ss:$16 sps:$4 sm:$0xff]   ;;  %v11998_v31 = vld [vmem:[#allocation7 + $0x384] ss:$16 sps:$4 sm:$0xff]  }
 0x74e   :  { %13199 = vst [vmem:[#allocation48_spill] sm:$0xff] %v11992_v30  ;;  %13201 = vst [vmem:[#allocation49_spill] sm:$0xff] %v11998_v31 }
 0x74f   :  { %10442 = vrcp.f32 %v3758_v22  ;;  %v12006_v22 = vld [vmem:[#allocation7 + $0x388] ss:$16 sps:$4 sm:$0xff]  }
 0x750   :  { %13204 = vst [vmem:[#allocation42_spill] sm:$0xff] %v12006_v22 }
 0x758   :  { %v10439_v25 = vpop.eup %10438 }
 0x759   :  { %v3762_v59 = vmul.f32 %v10439_v25, %v10435_v11  ;;  %v11994_v11 = vld [vmem:[#allocation7 + $0x3a8] ss:$16 sps:$4 sm:$0xff]   ;;  %v12000_v25 = vld [vmem:[#allocation7 + $0x38c] ss:$16 sps:$4 sm:$0xff]  }
 0x75a   :  { %v10441_v13 = vpop.eup %10440  ;;  %13200 = vst [vmem:[#allocation34_spill] sm:$0xff] %v11994_v11  ;;  %13202 = vst [vmem:[#allocation35_spill] sm:$0xff] %v12000_v25 }
 0x75b   :  { %v3761_v40 = vmul.f32 %v10441_v13, %v11787_v27  ;;  %v11878_v27 = vld [vmem:[#allocation7 + $0x2cc] ss:$16 sps:$4 sm:$0xff]   ;;  %v12004_v13 = vld [vmem:[#allocation7 + $0x380] ss:$16 sps:$4 sm:$0xff]  }
 0x75c   :  { %v10443_v56 = vpop.eup %10442  ;;  %13203 = vst [vmem:[#allocation50_spill] sm:$0xff] %v12004_v13 }
 0x75d   :  { %v11867_v33 = vadd.f32 %v3762_v59, %v3761_v40  ;;  %v12010_v40 = vld [vmem:[#allocation7 + $0x364] ss:$16 sps:$4 sm:$0xff]   ;;  %v12012_v59 = vld [vmem:[#allocation7 + $0x36c] ss:$16 sps:$4 sm:$0xff]  }
 0x75e   :  { %13205 = vst [vmem:[#allocation51_spill] sm:$0xff] %v12010_v40  ;;  %13206 = vst [vmem:[#allocation44_spill] sm:$0xff] %v12012_v59 }
 0x75f   :  { %13196 = vst [vmem:[#allocation33_spill] sm:$0xff] %v11867_v33  ;;  %10444 = vtanh.f32 %v11867_v33  ;;  %v12042_v33 = vld [vmem:[#allocation7 + $0x328] ss:$16 sps:$4 sm:$0xff]  }
 0x760   :  { %13216 = vst [vmem:[#allocation41_spill] sm:$0xff] %v12042_v33 }
 0x76c   :  { %v10445_v28 = vpop.eup %10444 }
 0x76d   :  { %v3765_v34 = vmul.f32 %v10445_v28, %v10443_v56  ;;  %v12016_v56 = vld [vmem:[#allocation7 + $0x360] ss:$16 sps:$4 sm:$0xff]   ;;  %v12022_v28 = vld [vmem:[#allocation7 + $0x344] ss:$16 sps:$4 sm:$0xff]  }
 0x76e   :  { %13207 = vst [vmem:[#allocation43_spill] sm:$0xff] %v12016_v56  ;;  %13209 = vst [vmem:[#allocation52_spill] sm:$0xff] %v12022_v28 }
 0x76f   :  { %v11870_v36 = vpack.c.bf16 %v3765_v34, %v3765_v34  ;;  %v12024_v34 = vld [vmem:[#allocation7 + $0x34c] ss:$16 sps:$4 sm:$0xff]  }
 0x770   :  { %13210 = vst [vmem:[#allocation36_spill] sm:$0xff] %v12024_v34 }
 0x771   :  { %13197 = vst [vmem:[#allocation46_spill] sm:$0xff] %v11870_v36  ;;  %4214 = vmatprep.mubr.bf16.mxu0 %v11870_v36  ;;  %4255 = vmatprep.mubr.bf16.mxu1 %v11870_v36  ;;  %v12036_v36 = vld [vmem:[#allocation7 + $0x32c] ss:$16 sps:$4 sm:$0xff]  }
 0x772   :  { %4215 = vmatmul.mubr.bf16.vlgmr.msra.gmra.mxu0 %v3774_v26  ;;  %4256 = vmatmul.mubr.bf16.vlgmr.msra.gmra.mxu1 %v3774_v26  ;;  %v12028_v26 = vld [vmem:[#allocation7 + $0x340] ss:$16 sps:$4 sm:$0xff]   ;;  %13214 = vst [vmem:[#allocation39_spill] sm:$0xff] %v12036_v36 }
 0x773   :  { %4712 = vmatpush1.bf16.msra.mxu0 %v11872_v38  ;;  %4753 = vmatpush1.bf16.msra.mxu1 %v11874_v39  ;;  %13211 = vst [vmem:[#allocation45_spill] sm:$0xff] %v12028_v26 }
 0x774   :  { %4713 = vmatprep.subr.bf16.mxu0 %v11876_v43  ;;  %4754 = vmatprep.subr.bf16.mxu1 %v11878_v27 }
 0x775   :  { %4743 = vmatprep.mubr.bf16.mxu0 %v4302_v45  ;;  %4784 = vmatprep.mubr.bf16.mxu1 %v4302_v45  ;;  %v12034_v45 = vld [vmem:[#allocation7 + $0x324] ss:$16 sps:$4 sm:$0xff]  }
 0x776   :  { %13213 = vst [vmem:[#allocation53_spill] sm:$0xff] %v12034_v45 }
 0x777   :  { %4714 = vmatpush1.bf16.msra.mxu0 %v11884_v46  ;;  %4755 = vmatpush1.bf16.msra.mxu1 %v11886_v47 }
 0x778   :  { %4715 = vmatprep.subr.bf16.mxu0 %v11890_v48  ;;  %4756 = vmatprep.subr.bf16.mxu1 %v11892_v49 }
 0x77b   :  { %4716 = vmatpush1.bf16.msra.mxu0 %v11896_v51  ;;  %4757 = vmatpush1.bf16.msra.mxu1 %v11898_v52 }
 0x77c   :  { %4717 = vmatprep.subr.bf16.mxu0 %v11902_v53  ;;  %4758 = vmatprep.subr.bf16.mxu1 %v11904_v55 }
 0x77f   :  { %4718 = vmatpush1.bf16.msra.mxu0 %v11908_v60  ;;  %4759 = vmatpush1.bf16.msra.mxu1 %v11910_v57 }
 0x780   :  { %4719 = vmatprep.subr.bf16.mxu0 %v11914_v61  ;;  %4760 = vmatprep.subr.bf16.mxu1 %v11916_v63 }
 0x783   :  { %4720 = vmatpush1.bf16.msra.mxu0 %v11920_v0  ;;  %4761 = vmatpush1.bf16.msra.mxu1 %v11922_v2 }
 0x784   :  { %4721 = vmatprep.subr.bf16.mxu0 %v11926_v54  ;;  %4762 = vmatprep.subr.bf16.mxu1 %v11928_v4 }
 0x787   :  { %4722 = vmatpush1.bf16.msra.mxu0 %v11932_v7  ;;  %4763 = vmatpush1.bf16.msra.mxu1 %v11934_v10 }
 0x788   :  { %4723 = vmatprep.subr.bf16.mxu0 %v11938_v12  ;;  %4764 = vmatprep.subr.bf16.mxu1 %v11940_v15 }
 0x78b   :  { %4724 = vmatpush1.bf16.msra.mxu0 %v11944_v16  ;;  %4765 = vmatpush1.bf16.msra.mxu1 %v11946_v19 }
 0x78c   :  { %4725 = vmatprep.subr.bf16.mxu0 %v11950_v37  ;;  %4766 = vmatprep.subr.bf16.mxu1 %v11952_v23 }
 0x78f   :  { %4726 = vmatpush1.bf16.msra.mxu0 %v11956_v14  ;;  %4767 = vmatpush1.bf16.msra.mxu1 %v11958_v9 }
 0x790   :  { %4727 = vmatprep.subr.bf16.mxu0 %v11962_v50  ;;  %4768 = vmatprep.subr.bf16.mxu1 %v11964_v18 }
 0x793   :  { %4728 = vmatpush2.bf16.msra.mxu0 %v11968_v32  ;;  %4769 = vmatpush2.bf16.msra.mxu1 %v11970_v44 }
 0x794   :  { %4729 = vmatprep.subr.bf16.mxu0 %v11974_v58  ;;  %4770 = vmatprep.subr.bf16.mxu1 %v11976_v41 }
 0x797   :  { %4730 = vmatpush2.bf16.msra.mxu0 %v11980_v6  ;;  %4771 = vmatpush2.bf16.msra.mxu1 %v11982_v29 }
 0x798   :  { %4731 = vmatprep.subr.bf16.mxu0 %v11986_v8  ;;  %4772 = vmatprep.subr.bf16.mxu1 %v11988_v24 }
 0x79b   :  { %4732 = vmatpush2.bf16.msra.mxu0 %v11992_v30  ;;  %4773 = vmatpush2.bf16.msra.mxu1 %v11994_v11 }
 0x79c   :  { %4733 = vmatprep.subr.bf16.mxu0 %v11998_v31  ;;  %4774 = vmatprep.subr.bf16.mxu1 %v12000_v25 }
 0x79f   :  { %4734 = vmatpush2.bf16.msra.mxu0 %v12004_v13  ;;  %4775 = vmatpush2.bf16.msra.mxu1 %v12006_v22 }
 0x7a0   :  { %4735 = vmatprep.subr.bf16.mxu0 %v12010_v40  ;;  %4776 = vmatprep.subr.bf16.mxu1 %v12012_v59 }
 0x7a3   :  { %4736 = vmatpush2.bf16.msra.mxu0 %v12016_v56  ;;  %4777 = vmatpush2.bf16.msra.mxu1 %v12018_v5 }
 0x7a4   :  { %4737 = vmatprep.subr.bf16.mxu0 %v12022_v28  ;;  %4778 = vmatprep.subr.bf16.mxu1 %v12024_v34 }
 0x7a7   :  { %4738 = vmatpush2.bf16.msra.mxu0 %v12028_v26  ;;  %4779 = vmatpush2.bf16.msra.mxu1 %v12030_v35 }
 0x7a8   :  { %4739 = vmatprep.subr.bf16.mxu0 %v12034_v45  ;;  %4780 = vmatprep.subr.bf16.mxu1 %v12036_v36  ;;  %v13221_v36 = vld [vmem:[#allocation29_spill] sm:$0xff] }
 0x7ab   :  { %4740 = vmatpush2.bf16.msra.mxu0 %v12040_v20  ;;  %4781 = vmatpush2.bf16.msra.mxu1 %v12042_v33 }
 0x7ac   :  { %4741 = vmatprep.subr.bf16.mxu0 %v12046_v21  ;;  %4782 = vmatprep.subr.bf16.mxu1 %v12048_v17 }
 0x7af   :  { %4742 = vmatpush2.bf16.msra.mxu0 %v12052_v3  ;;  %4783 = vmatpush2.bf16.msra.mxu1 %v12054_v62 }
 0x7b0   :  { %5230 = vmatprep.subr.bf16.mxu0 %v11856_v1  ;;  %5271 = vmatprep.subr.bf16.mxu1 %v11858_v42 }
 0x7b2   :  { %4744 = vmatmul.mubr.bf16.vlgmr.msra.gmra.mxu0 %v13221_v36  ;;  %4785 = vmatmul.mubr.bf16.vlgmr.msra.gmra.mxu1 %v13221_v36  ;;  %v13222_v36 = vld [vmem:[#allocation39_spill] sm:$0xff] }
 0x7b3   :  { %5231 = vmatpush1.bf16.msra.mxu0 %v11872_v38  ;;  %5272 = vmatpush1.bf16.msra.mxu1 %v11874_v39 }
 0x7b4   :  { %5232 = vmatprep.subr.bf16.mxu0 %v11876_v43  ;;  %5273 = vmatprep.subr.bf16.mxu1 %v11878_v27 }
 0x7b7   :  { %5233 = vmatpush1.bf16.msra.mxu0 %v11884_v46  ;;  %5274 = vmatpush1.bf16.msra.mxu1 %v11886_v47 }
 0x7b8   :  { %5234 = vmatprep.subr.bf16.mxu0 %v11890_v48  ;;  %5275 = vmatprep.subr.bf16.mxu1 %v11892_v49 }
 0x7bb   :  { %5235 = vmatpush1.bf16.msra.mxu0 %v11896_v51  ;;  %5276 = vmatpush1.bf16.msra.mxu1 %v11898_v52 }
 0x7bc   :  { %5236 = vmatprep.subr.bf16.mxu0 %v11902_v53  ;;  %5277 = vmatprep.subr.bf16.mxu1 %v11904_v55 }
 0x7bf   :  { %5237 = vmatpush1.bf16.msra.mxu0 %v11908_v60  ;;  %5278 = vmatpush1.bf16.msra.mxu1 %v11910_v57 }
 0x7c0   :  { %5238 = vmatprep.subr.bf16.mxu0 %v11914_v61  ;;  %5279 = vmatprep.subr.bf16.mxu1 %v11916_v63 }
 0x7c3   :  { %5239 = vmatpush1.bf16.msra.mxu0 %v11920_v0  ;;  %5280 = vmatpush1.bf16.msra.mxu1 %v11922_v2 }
 0x7c4   :  { %5240 = vmatprep.subr.bf16.mxu0 %v11926_v54  ;;  %5281 = vmatprep.subr.bf16.mxu1 %v11928_v4 }
 0x7c7   :  { %5241 = vmatpush1.bf16.msra.mxu0 %v11932_v7  ;;  %5282 = vmatpush1.bf16.msra.mxu1 %v11934_v10 }
 0x7c8   :  { %5242 = vmatprep.subr.bf16.mxu0 %v11938_v12  ;;  %5283 = vmatprep.subr.bf16.mxu1 %v11940_v15 }
 0x7cb   :  { %5243 = vmatpush1.bf16.msra.mxu0 %v11944_v16  ;;  %5284 = vmatpush1.bf16.msra.mxu1 %v11946_v19 }
 0x7cc   :  { %5244 = vmatprep.subr.bf16.mxu0 %v11950_v37  ;;  %5285 = vmatprep.subr.bf16.mxu1 %v11952_v23 }
 0x7cf   :  { %5245 = vmatpush1.bf16.msra.mxu0 %v11956_v14  ;;  %5286 = vmatpush1.bf16.msra.mxu1 %v11958_v9 }
 0x7d0   :  { %5246 = vmatprep.subr.bf16.mxu0 %v11962_v50  ;;  %5287 = vmatprep.subr.bf16.mxu1 %v11964_v18 }
 0x7d3   :  { %5247 = vmatpush2.bf16.msra.mxu0 %v11968_v32  ;;  %5288 = vmatpush2.bf16.msra.mxu1 %v11970_v44 }
 0x7d4   :  { %5248 = vmatprep.subr.bf16.mxu0 %v11974_v58  ;;  %5289 = vmatprep.subr.bf16.mxu1 %v11976_v41 }
 0x7d7   :  { %5249 = vmatpush2.bf16.msra.mxu0 %v11980_v6  ;;  %5290 = vmatpush2.bf16.msra.mxu1 %v11982_v29 }
 0x7d8   :  { %5250 = vmatprep.subr.bf16.mxu0 %v11986_v8  ;;  %5291 = vmatprep.subr.bf16.mxu1 %v11988_v24 }
 0x7db   :  { %5251 = vmatpush2.bf16.msra.mxu0 %v11992_v30  ;;  %5292 = vmatpush2.bf16.msra.mxu1 %v11994_v11 }
 0x7dc   :  { %5252 = vmatprep.subr.bf16.mxu0 %v11998_v31  ;;  %5293 = vmatprep.subr.bf16.mxu1 %v12000_v25 }
 0x7df   :  { %5253 = vmatpush2.bf16.msra.mxu0 %v12004_v13  ;;  %5294 = vmatpush2.bf16.msra.mxu1 %v12006_v22  ;;  %v13226_v13 = vld [vmem:[#allocation28_spill] sm:$0xff] }
 0x7e0   :  { %5254 = vmatprep.subr.bf16.mxu0 %v12010_v40  ;;  %5295 = vmatprep.subr.bf16.mxu1 %v12012_v59 }
 0x7e3   :  { %5255 = vmatpush2.bf16.msra.mxu0 %v12016_v56  ;;  %5296 = vmatpush2.bf16.msra.mxu1 %v12018_v5 }
 0x7e4   :  { %5256 = vmatprep.subr.bf16.mxu0 %v12022_v28  ;;  %5297 = vmatprep.subr.bf16.mxu1 %v12024_v34 }
 0x7e7   :  { %5257 = vmatpush2.bf16.msra.mxu0 %v12028_v26  ;;  %5298 = vmatpush2.bf16.msra.mxu1 %v12030_v35  ;;  %v3840_v35 = vld [vmem:[#allocation9] sm:$0xf] }
 0x7e8   :  { %5258 = vmatprep.subr.bf16.mxu0 %v12034_v45  ;;  %5299 = vmatprep.subr.bf16.mxu1 %v13222_v36  ;;  %v13223_v45 = vld [vmem:[#allocation25_spill] sm:$0xff]  ;;  %v13224_v36 = vld [vmem:[#allocation26_spill] sm:$0xff]  ;;  %v3853_v25 = vrot.slane %v3840_v35, %v13226_v13 }
 0x7e9   :  { %v3845_v26 = vrot.slane %v3840_v35, %v13223_v45  ;;  %v3849_v34 = vrot.slane %v3840_v35, %v13224_v36 }
 0x7eb   :  { %5259 = vmatpush2.bf16.msra.mxu0 %v12040_v20  ;;  %5300 = vmatpush2.bf16.msra.mxu1 %v12042_v33 }
 0x7ec   :  { %5260 = vmatprep.subr.bf16.mxu0 %v12046_v21  ;;  %5301 = vmatprep.subr.bf16.mxu1 %v12048_v17 }
 0x7ef   :  { %5261 = vmatpush2.bf16.msra.mxu0 %v12052_v3  ;;  %5302 = vmatpush2.bf16.msra.mxu1 %v12054_v62 }
 0x7f0   :  { %5749 = vmatprep.subr.bf16.mxu0 %v11856_v1  ;;  %5790 = vmatprep.subr.bf16.mxu1 %v11858_v42  ;;  %v13225_v42 = vld [vmem:[#allocation27_spill] sm:$0xff] }
 0x7f1   :  { %v3857_v22 = vrot.slane %v3840_v35, %v13225_v42 }
 0x832   :  { %v4216_v20 = vpop.f32.mrf.mxu0  ;;  %v4257_v28 = vpop.f32.mrf.mxu1 }
 0x833   :  { %v4217_v33 = vadd.f32 %v4216_v20, %v3845_v26  ;;  %v4258_v11 = vadd.f32 %v4257_v28, %v3853_v25 }
 0x834   :  { %v4218_v5 = vpop.f32.mrf.mxu0  ;;  %v4259_v21 = vpop.f32.mrf.mxu1 }
 0x835   :  { %v9155_v56 = vmul.f32 -1.442695, %v4217_v33  ;;  %v4219_v17 = vadd.f32 %v4218_v5, %v3849_v34  ;;  %v4260_v31 = vadd.f32 %v4259_v21, %v3857_v22 }
 0x836   :  { %v4220_v59 = vpop.f32.mrf.mxu0  ;;  %v4261_v3 = vpop.f32.mrf.mxu1 }
 0x837   :  { %10446 = vpow2.f32 %v9155_v56  ;;  %v9156_v62 = vmul.f32 -1.442695, %v4219_v17  ;;  %v9157_v30 = vmul.f32 -1.442695, %v4260_v31  ;;  %v13227_v56 = vld [vmem:[#allocation33_spill] sm:$0xff] }
 0x838   :  { %v4221_v40 = vpop.f32.mrf.mxu0  ;;  %v4262_v1 = vpop.f32.mrf.mxu1 }
 0x839   :  { %10448 = vpow2.f32 %v9156_v62 }
 0x83a   :  { %10450 = vtanh.f32 %v4258_v11 }
 0x83b   :  { %10452 = vpow2.f32 %v9157_v30  ;;  %v4369_v30 = vld [vmem:[#allocation9 + $0x4] sm:$0xf] }
 0x83c   :  { %v4374_v31 = vrot.slane %v4369_v30, %v13223_v45  ;;  %v4378_v25 = vrot.slane %v4369_v30, %v13224_v36 }
 0x844   :  { %v10447_v24 = vpop.eup %10446 }
 0x845   :  { %v4267_v20 = vadd.f32 1.0, %v10447_v24 }
 0x846   :  { %v10449_v26 = vpop.eup %10448 }
 0x847   :  { %10454 = vrcp.f32 %v4267_v20  ;;  %v4273_v33 = vadd.f32 1.0, %v10449_v26  ;;  %v10451_v3 = vpop.eup %10450 }
 0x848   :  { %v10453_v17 = vpop.eup %10452 }
 0x849   :  { %10456 = vrcp.f32 %v4273_v33  ;;  %v4280_v62 = vadd.f32 1.0, %v10453_v17 }
 0x84b   :  { %10458 = vrcp.f32 %v4280_v62 }
 0x854   :  { %v10455_v40 = vpop.eup %10454 }
 0x855   :  { %v4284_v34 = vmul.f32 %v10455_v40, %v10451_v3 }
 0x856   :  { %v10457_v59 = vpop.eup %10456 }
 0x857   :  { %v4283_v5 = vmul.f32 %v10457_v59, %v13227_v56 }
 0x858   :  { %v10459_v21 = vpop.eup %10458 }
 0x859   :  { %v4285_v35 = vadd.f32 %v4284_v34, %v4283_v5  ;;  %v4386_v5 = vrot.slane %v4369_v30, %v13225_v42 }
 0x85b   :  { %10460 = vtanh.f32 %v4285_v35  ;;  %4291 = vst [vmem:[#allocation18] sm:$0xff] %v4285_v35  ;;  %v4382_v35 = vrot.slane %v4369_v30, %v13226_v13 }
 0x868   :  { %v10461_v24 = vpop.eup %10460 }
 0x869   :  { %v4287_v11 = vmul.f32 %v10461_v24, %v10459_v21 }
 0x86b   :  { %4290 = vst [vmem:[#allocation16] sm:$0xff] %v4287_v11 }
 0x872   :  { %v4745_v22 = vpop.f32.mrf.mxu0  ;;  %v4786_v28 = vpop.f32.mrf.mxu1 }
 0x873   :  { %v4746_v1 = vadd.f32 %v4745_v22, %v4374_v31  ;;  %v4787_v11 = vadd.f32 %v4786_v28, %v4382_v35 }
 0x874   :  { %v4747_v20 = vpop.f32.mrf.mxu0  ;;  %v4788_v26 = vpop.f32.mrf.mxu1 }
 0x875   :  { %v9222_v33 = vmul.f32 -1.442695, %v4746_v1  ;;  %v4748_v3 = vadd.f32 %v4747_v20, %v4378_v25  ;;  %v4789_v34 = vadd.f32 %v4788_v26, %v4386_v5 }
 0x876   :  { %v4749_v17 = vpop.f32.mrf.mxu0  ;;  %v4790_v40 = vpop.f32.mrf.mxu1 }
 0x877   :  { %10462 = vpow2.f32 %v9222_v33  ;;  %v9223_v59 = vmul.f32 -1.442695, %v4748_v3  ;;  %v9224_v21 = vmul.f32 -1.442695, %v4789_v34  ;;  %v4295_v33 = vld [vmem:[#allocation12 + $0x8] sm:$0xff] }
 0x878   :  { %v4750_v62 = vpop.f32.mrf.mxu0  ;;  %v4791_v56 = vpop.f32.mrf.mxu1  ;;  %v13228_v34 = vld [vmem:[#allocation31_spill] sm:$0xff] }
 0x879   :  { %10464 = vpow2.f32 %v9223_v59 }
 0x87a   :  { %10466 = vpow2.f32 %v9224_v21 }
 0x884   :  { %v10463_v24 = vpop.eup %10462 }
 0x885   :  { %v4796_v31 = vadd.f32 1.0, %v10463_v24 }
 0x886   :  { %v10465_v22 = vpop.eup %10464 }
 0x887   :  { %10468 = vrcp.f32 %v4796_v31  ;;  %v4802_v25 = vadd.f32 1.0, %v10465_v22  ;;  %v10467_v1 = vpop.eup %10466 }
 0x888   :  { %10470 = vtanh.f32 %v4787_v11  ;;  %v4809_v40 = vadd.f32 1.0, %v10467_v1 }
 0x889   :  { %10472 = vrcp.f32 %v4802_v25 }
 0x88a   :  { %10474 = vrcp.f32 %v4809_v40 }
 0x894   :  { %v10469_v20 = vpop.eup %10468 }
 0x895   :  { %v10471_v3 = vpop.eup %10470 }
 0x896   :  { %v10473_v17 = vpop.eup %10472  ;;  %v4813_v59 = vmul.f32 %v10471_v3, %v10469_v20 }
 0x897   :  { %v4812_v26 = vmul.f32 %v10473_v17, %v4295_v33  ;;  %v10475_v30 = vpop.eup %10474 }
 0x899   :  { %v12137_v62 = vadd.f32 %v4813_v59, %v4812_v26 }
 0x89b   :  { %10476 = vtanh.f32 %v12137_v62 }
 0x8a8   :  { %v10477_v28 = vpop.eup %10476 }
 0x8a9   :  { %v4816_v56 = vmul.f32 %v10477_v28, %v10475_v30 }
 0x8ab   :  { %v4823_v5 = vpack.c.bf16 %v4816_v56, %v4816_v56 }
 0x8ad   :  { %5262 = vmatprep.mubr.bf16.mxu0 %v4823_v5  ;;  %5303 = vmatprep.mubr.bf16.mxu1 %v4823_v5 }
 0x8ae   :  { %5263 = vmatmul.mubr.bf16.vlgmr.msra.gmra.mxu0 %v13228_v34  ;;  %5304 = vmatmul.mubr.bf16.vlgmr.msra.gmra.mxu1 %v13228_v34 }
 0x8af   :  { %5750 = vmatpush1.bf16.msra.mxu0 %v11872_v38  ;;  %5791 = vmatpush1.bf16.msra.mxu1 %v11874_v39  ;;  %v13229_v38 = vld [vmem:[#allocation40_spill] sm:$0xff] }
 0x8b0   :  { %5751 = vmatprep.subr.bf16.mxu0 %v11876_v43  ;;  %5792 = vmatprep.subr.bf16.mxu1 %v11878_v27  ;;  %v13230_v39 = vld [vmem:[#allocation48_spill] sm:$0xff]  ;;  %v13231_v43 = vld [vmem:[#allocation34_spill] sm:$0xff]  ;;  %v13232_v27 = vld [vmem:[#allocation49_spill] sm:$0xff] }
 0x8b3   :  { %5752 = vmatpush1.bf16.msra.mxu0 %v11884_v46  ;;  %5793 = vmatpush1.bf16.msra.mxu1 %v11886_v47  ;;  %v13233_v46 = vld [vmem:[#allocation35_spill] sm:$0xff]  ;;  %v13234_v47 = vld [vmem:[#allocation50_spill] sm:$0xff] }
 0x8b4   :  { %5753 = vmatprep.subr.bf16.mxu0 %v11890_v48  ;;  %5794 = vmatprep.subr.bf16.mxu1 %v11892_v49  ;;  %v13235_v48 = vld [vmem:[#allocation42_spill] sm:$0xff]  ;;  %v13236_v49 = vld [vmem:[#allocation51_spill] sm:$0xff] }
 0x8b7   :  { %5754 = vmatpush1.bf16.msra.mxu0 %v11896_v51  ;;  %5795 = vmatpush1.bf16.msra.mxu1 %v11898_v52  ;;  %v13237_v51 = vld [vmem:[#allocation44_spill] sm:$0xff]  ;;  %v13238_v52 = vld [vmem:[#allocation43_spill] sm:$0xff] }
 0x8b8   :  { %5755 = vmatprep.subr.bf16.mxu0 %v11902_v53  ;;  %5796 = vmatprep.subr.bf16.mxu1 %v11904_v55  ;;  %v13239_v53 = vld [vmem:[#allocation37_spill] sm:$0xff]  ;;  %v13240_v55 = vld [vmem:[#allocation52_spill] sm:$0xff] }
 0x8bb   :  { %5756 = vmatpush1.bf16.msra.mxu0 %v11908_v60  ;;  %5797 = vmatpush1.bf16.msra.mxu1 %v11910_v57  ;;  %v13241_v60 = vld [vmem:[#allocation36_spill] sm:$0xff]  ;;  %v13242_v57 = vld [vmem:[#allocation45_spill] sm:$0xff] }
 0x8bc   :  { %5757 = vmatprep.subr.bf16.mxu0 %v11914_v61  ;;  %5798 = vmatprep.subr.bf16.mxu1 %v11916_v63  ;;  %v13243_v61 = vld [vmem:[#allocation38_spill] sm:$0xff]  ;;  %v13244_v63 = vld [vmem:[#allocation53_spill] sm:$0xff] }
 0x8bf   :  { %5758 = vmatpush1.bf16.msra.mxu0 %v11920_v0  ;;  %5799 = vmatpush1.bf16.msra.mxu1 %v11922_v2  ;;  %v13245_v0 = vld [vmem:[#allocation39_spill] sm:$0xff] }
 0x8c0   :  { %5759 = vmatprep.subr.bf16.mxu0 %v11926_v54  ;;  %5800 = vmatprep.subr.bf16.mxu1 %v11928_v4  ;;  %v13246_v2 = vld [vmem:[#allocation47_spill] sm:$0xff]  ;;  %v13247_v54 = vld [vmem:[#allocation41_spill] sm:$0xff]  ;;  %v13248_v4 = vld [vmem:[#allocation54_spill] sm:$0xff] }
 0x8c3   :  { %5760 = vmatpush1.bf16.msra.mxu0 %v11932_v7  ;;  %5801 = vmatpush1.bf16.msra.mxu1 %v11934_v10  ;;  %v13249_v7 = vld [vmem:[#allocation57_spill] sm:$0xff]  ;;  %v13250_v10 = vld [vmem:[#allocation58_spill] sm:$0xff] }
 0x8c4   :  { %5761 = vmatprep.subr.bf16.mxu0 %v11938_v12  ;;  %5802 = vmatprep.subr.bf16.mxu1 %v11940_v15  ;;  %v13251_v12 = vld [vmem:[#allocation59_spill] sm:$0xff] }
 0x8c5   :  { %v12204_v15 = vld [vmem:[#allocation7 + $0x2e4] ss:$16 sps:$4 sm:$0xff]  }
 0x8c6   :  { %13252 = vst [vmem:[#allocation29_spill] sm:$0xff] %v12204_v15 }
 0x8c7   :  { %5762 = vmatpush1.bf16.msra.mxu0 %v11944_v16  ;;  %5803 = vmatpush1.bf16.msra.mxu1 %v11946_v19  ;;  %v12206_v16 = vld [vmem:[#allocation7 + $0x2ec] ss:$16 sps:$4 sm:$0xff]   ;;  %v4888_v19 = vld [vmem:[#allocation9 + $0x4] sm:$0xf] }
 0x8c8   :  { %5763 = vmatprep.subr.bf16.mxu0 %v11950_v37  ;;  %5804 = vmatprep.subr.bf16.mxu1 %v11952_v23  ;;  %13253 = vst [vmem:[#allocation27_spill] sm:$0xff] %v12206_v16  ;;  %v4893_v37 = vrot.slane %v4888_v19, %v13223_v45  ;;  %v4897_v23 = vrot.slane %v4888_v19, %v13224_v36 }
 0x8c9   :  { %v4905_v21 = vrot.slane %v4888_v19, %v13225_v42  ;;  %v4901_v11 = vrot.slane %v4888_v19, %v13226_v13  ;;  %v12280_v19 = vld [vmem:[#allocation7 + $0x248] ss:$16 sps:$4 sm:$0xff]  }
 0x8cb   :  { %5764 = vmatpush1.bf16.msra.mxu0 %v11956_v14  ;;  %5805 = vmatpush1.bf16.msra.mxu1 %v11958_v9 }
 0x8cc   :  { %5765 = vmatprep.subr.bf16.mxu0 %v11962_v50  ;;  %5806 = vmatprep.subr.bf16.mxu1 %v11964_v18 }
 0x8cf   :  { %5766 = vmatpush2.bf16.msra.mxu0 %v11968_v32  ;;  %5807 = vmatpush2.bf16.msra.mxu1 %v11970_v44 }
 0x8d0   :  { %5767 = vmatprep.subr.bf16.mxu0 %v11974_v58  ;;  %5808 = vmatprep.subr.bf16.mxu1 %v11976_v41 }
 0x8d3   :  { %5768 = vmatpush2.bf16.msra.mxu0 %v11980_v6  ;;  %5809 = vmatpush2.bf16.msra.mxu1 %v11982_v29 }
 0x8d4   :  { %5769 = vmatprep.subr.bf16.mxu0 %v11986_v8  ;;  %5810 = vmatprep.subr.bf16.mxu1 %v13229_v38 }
 0x8d7   :  { %5770 = vmatpush2.bf16.msra.mxu0 %v13230_v39  ;;  %5811 = vmatpush2.bf16.msra.mxu1 %v13231_v43  ;;  %v12218_v43 = vld [vmem:[#allocation7 + $0x2e0] ss:$16 sps:$4 sm:$0xff]  }
 0x8d8   :  { %5771 = vmatprep.subr.bf16.mxu0 %v13232_v27  ;;  %5812 = vmatprep.subr.bf16.mxu1 %v13233_v46  ;;  %v12220_v27 = vld [vmem:[#allocation7 + $0x2e8] ss:$16 sps:$4 sm:$0xff]   ;;  %v13254_v46 = vld [vmem:[#allocation55_spill] sm:$0xff] }
 0x8db   :  { %5772 = vmatpush2.bf16.msra.mxu0 %v13234_v47  ;;  %5813 = vmatpush2.bf16.msra.mxu1 %v13235_v48  ;;  %v12228_v47 = vld [vmem:[#allocation7 + $0x2cc] ss:$16 sps:$4 sm:$0xff]   ;;  %v12230_v48 = vld [vmem:[#allocation7 + $0x2c0] ss:$16 sps:$4 sm:$0xff]  }
 0x8dc   :  { %5773 = vmatprep.subr.bf16.mxu0 %v13236_v49  ;;  %5814 = vmatprep.subr.bf16.mxu1 %v13237_v51  ;;  %v12232_v49 = vld [vmem:[#allocation7 + $0x2c8] ss:$16 sps:$4 sm:$0xff]   ;;  %v12238_v51 = vld [vmem:[#allocation7 + $0x2a4] ss:$16 sps:$4 sm:$0xff]  }
 0x8df   :  { %5774 = vmatpush2.bf16.msra.mxu0 %v13238_v52  ;;  %5815 = vmatpush2.bf16.msra.mxu1 %v13239_v53  ;;  %v12240_v52 = vld [vmem:[#allocation7 + $0x2ac] ss:$16 sps:$4 sm:$0xff]   ;;  %v12242_v53 = vld [vmem:[#allocation7 + $0x2a0] ss:$16 sps:$4 sm:$0xff]  }
 0x8e0   :  { %5775 = vmatprep.subr.bf16.mxu0 %v13240_v55  ;;  %5816 = vmatprep.subr.bf16.mxu1 %v13241_v60  ;;  %v12244_v55 = vld [vmem:[#allocation7 + $0x2a8] ss:$16 sps:$4 sm:$0xff]   ;;  %v12250_v60 = vld [vmem:[#allocation7 + $0x284] ss:$16 sps:$4 sm:$0xff]  }
 0x8e3   :  { %5776 = vmatpush2.bf16.msra.mxu0 %v13242_v57  ;;  %5817 = vmatpush2.bf16.msra.mxu1 %v13243_v61  ;;  %v12252_v57 = vld [vmem:[#allocation7 + $0x28c] ss:$16 sps:$4 sm:$0xff]   ;;  %v12254_v61 = vld [vmem:[#allocation7 + $0x280] ss:$16 sps:$4 sm:$0xff]  }
 0x8e4   :  { %5777 = vmatprep.subr.bf16.mxu0 %v13244_v63  ;;  %5818 = vmatprep.subr.bf16.mxu1 %v13245_v0  ;;  %v12256_v63 = vld [vmem:[#allocation7 + $0x288] ss:$16 sps:$4 sm:$0xff]   ;;  %v12262_v0 = vld [vmem:[#allocation7 + $0x264] ss:$16 sps:$4 sm:$0xff]  }
 0x8e7   :  { %5778 = vmatpush2.bf16.msra.mxu0 %v13246_v2  ;;  %5819 = vmatpush2.bf16.msra.mxu1 %v13247_v54  ;;  %v12264_v2 = vld [vmem:[#allocation7 + $0x26c] ss:$16 sps:$4 sm:$0xff]   ;;  %v12266_v54 = vld [vmem:[#allocation7 + $0x260] ss:$16 sps:$4 sm:$0xff]  }
 0x8e8   :  { %5779 = vmatprep.subr.bf16.mxu0 %v13248_v4  ;;  %5820 = vmatprep.subr.bf16.mxu1 %v13249_v7  ;;  %v12268_v4 = vld [vmem:[#allocation7 + $0x268] ss:$16 sps:$4 sm:$0xff]   ;;  %v12274_v7 = vld [vmem:[#allocation7 + $0x244] ss:$16 sps:$4 sm:$0xff]  }
 0x8eb   :  { %5780 = vmatpush2.bf16.msra.mxu0 %v13250_v10  ;;  %5821 = vmatpush2.bf16.msra.mxu1 %v13251_v12  ;;  %v12276_v10 = vld [vmem:[#allocation7 + $0x24c] ss:$16 sps:$4 sm:$0xff]   ;;  %v12278_v12 = vld [vmem:[#allocation7 + $0x240] ss:$16 sps:$4 sm:$0xff]  }
 0x8ec   :  { %6268 = vmatprep.subr.bf16.mxu0 %v12204_v15  ;;  %6309 = vmatprep.subr.bf16.mxu1 %v12206_v16 }
 0x96e   :  { %v5264_v14 = vpop.f32.mrf.mxu0  ;;  %v5305_v9 = vpop.f32.mrf.mxu1 }
 0x96f   :  { %v5265_v50 = vadd.f32 %v5264_v14, %v4893_v37  ;;  %v5306_v25 = vadd.f32 %v5305_v9, %v4901_v11  ;;  %v12286_v37 = vld [vmem:[#allocation7 + $0x224] ss:$16 sps:$4 sm:$0xff]   ;;  %v12290_v14 = vld [vmem:[#allocation7 + $0x220] ss:$16 sps:$4 sm:$0xff]   ;;  %v12292_v9 = vld [vmem:[#allocation7 + $0x228] ss:$16 sps:$4 sm:$0xff]  }
 0x970   :  { %v5266_v18 = vpop.f32.mrf.mxu0  ;;  %v5307_v32 = vpop.f32.mrf.mxu1  ;;  %v12334_v11 = vld [vmem:[#allocation7 + $0x3a4] ss:$16 sps:$4 sm:$0xff]  }
 0x971   :  { %v9289_v44 = vmul.f32 -1.442695, %v5265_v50  ;;  %v5267_v58 = vadd.f32 %v5266_v18, %v4897_v23  ;;  %v5308_v24 = vadd.f32 %v5307_v32, %v4905_v21  ;;  %v12288_v23 = vld [vmem:[#allocation7 + $0x22c] ss:$16 sps:$4 sm:$0xff]   ;;  %v12298_v50 = vld [vmem:[#allocation7 + $0x204] ss:$16 sps:$4 sm:$0xff]  }
 0x972   :  { %v5268_v41 = vpop.f32.mrf.mxu0  ;;  %v5309_v6 = vpop.f32.mrf.mxu1  ;;  %v12300_v18 = vld [vmem:[#allocation7 + $0x20c] ss:$16 sps:$4 sm:$0xff]   ;;  %v12302_v32 = vld [vmem:[#allocation7 + $0x200] ss:$16 sps:$4 sm:$0xff]  }
 0x973   :  { %10478 = vpow2.f32 %v9289_v44  ;;  %v9290_v29 = vmul.f32 -1.442695, %v5267_v58  ;;  %v9291_v31 = vmul.f32 -1.442695, %v5308_v24  ;;  %v12304_v44 = vld [vmem:[#allocation7 + $0x208] ss:$16 sps:$4 sm:$0xff]  }
 0x974   :  { %v5269_v8 = vpop.f32.mrf.mxu0  ;;  %v5310_v35 = vpop.f32.mrf.mxu1  ;;  %v12310_v58 = vld [vmem:[#allocation7 + $0x3e4] ss:$16 sps:$4 sm:$0xff]   ;;  %v12312_v41 = vld [vmem:[#allocation7 + $0x3ec] ss:$16 sps:$4 sm:$0xff]   ;;  %v12314_v6 = vld [vmem:[#allocation7 + $0x3e0] ss:$16 sps:$4 sm:$0xff]  }
 0x975   :  { %10480 = vpow2.f32 %v9290_v29  ;;  %v12316_v29 = vld [vmem:[#allocation7 + $0x3e8] ss:$16 sps:$4 sm:$0xff]   ;;  %v12322_v8 = vld [vmem:[#allocation7 + $0x3c4] ss:$16 sps:$4 sm:$0xff]   ;;  %v12324_v35 = vld [vmem:[#allocation7 + $0x3cc] ss:$16 sps:$4 sm:$0xff]  }
 0x976   :  { %10482 = vpow2.f32 %v9291_v31  ;;  %v12326_v21 = vld [vmem:[#allocation7 + $0x3c0] ss:$16 sps:$4 sm:$0xff]   ;;  %v12328_v24 = vld [vmem:[#allocation7 + $0x3c8] ss:$16 sps:$4 sm:$0xff]   ;;  %v12336_v31 = vld [vmem:[#allocation7 + $0x3ac] ss:$16 sps:$4 sm:$0xff]  }
 0x980   :  { %v10479_v22 = vpop.eup %10478 }
 0x981   :  { %v5315_v1 = vadd.f32 1.0, %v10479_v22  ;;  %v12338_v22 = vld [vmem:[#allocation7 + $0x3a0] ss:$16 sps:$4 sm:$0xff]  }
 0x982   :  { %v10481_v20 = vpop.eup %10480  ;;  %13255 = vst [vmem:[#allocation28_spill] sm:$0xff] %v12338_v22 }
 0x983   :  { %10484 = vrcp.f32 %v5315_v1  ;;  %v5321_v33 = vadd.f32 1.0, %v10481_v20  ;;  %v10483_v3 = vpop.eup %10482  ;;  %v12344_v1 = vld [vmem:[#allocation7 + $0x384] ss:$16 sps:$4 sm:$0xff]   ;;  %v12348_v20 = vld [vmem:[#allocation7 + $0x380] ss:$16 sps:$4 sm:$0xff]  }
 0x984   :  { %10486 = vtanh.f32 %v5306_v25  ;;  %v5328_v26 = vadd.f32 1.0, %v10483_v3  ;;  %v12340_v25 = vld [vmem:[#allocation7 + $0x3a8] ss:$16 sps:$4 sm:$0xff]   ;;  %13257 = vst [vmem:[#allocation31_spill] sm:$0xff] %v12344_v1  ;;  %13258 = vst [vmem:[#allocation40_spill] sm:$0xff] %v12348_v20 }
 0x985   :  { %10488 = vrcp.f32 %v5321_v33  ;;  %13256 = vst [vmem:[#allocation33_spill] sm:$0xff] %v12340_v25  ;;  %v12350_v33 = vld [vmem:[#allocation7 + $0x388] ss:$16 sps:$4 sm:$0xff]   ;;  %v12352_v3 = vld [vmem:[#allocation7 + $0x38c] ss:$16 sps:$4 sm:$0xff]  }
 0x986   :  { %10490 = vrcp.f32 %v5328_v26  ;;  %13259 = vst [vmem:[#allocation48_spill] sm:$0xff] %v12350_v33  ;;  %13260 = vst [vmem:[#allocation34_spill] sm:$0xff] %v12352_v3  ;;  %v12364_v26 = vld [vmem:[#allocation7 + $0x368] ss:$16 sps:$4 sm:$0xff]  }
 0x987   :  { %13264 = vst [vmem:[#allocation42_spill] sm:$0xff] %v12364_v26 }
 0x990   :  { %v10485_v17 = vpop.eup %10484 }
 0x991   :  { %v10487_v40 = vpop.eup %10486 }
 0x992   :  { %v10489_v59 = vpop.eup %10488  ;;  %v5332_v30 = vmul.f32 %v10487_v40, %v10485_v17  ;;  %v12355_v17 = vld [vmem:[#allocation7 + $0x364] ss:$16 sps:$4 sm:$0xff]   ;;  %v12357_v40 = vld [vmem:[#allocation7 + $0x36c] ss:$16 sps:$4 sm:$0xff]  }
 0x993   :  { %v5331_v28 = vmul.f32 %v10489_v59, %v12137_v62  ;;  %v10491_v5 = vpop.eup %10490  ;;  %v12226_v62 = vld [vmem:[#allocation7 + $0x2c4] ss:$16 sps:$4 sm:$0xff]   ;;  %13261 = vst [vmem:[#allocation49_spill] sm:$0xff] %v12355_v17  ;;  %13262 = vst [vmem:[#allocation35_spill] sm:$0xff] %v12357_v40  ;;  %v12362_v59 = vld [vmem:[#allocation7 + $0x360] ss:$16 sps:$4 sm:$0xff]  }
 0x994   :  { %13263 = vst [vmem:[#allocation50_spill] sm:$0xff] %v12362_v59 }
 0x995   :  { %v12215_v56 = vadd.f32 %v5332_v30, %v5331_v28  ;;  %v12368_v30 = vld [vmem:[#allocation7 + $0x344] ss:$16 sps:$4 sm:$0xff]   ;;  %v12370_v28 = vld [vmem:[#allocation7 + $0x34c] ss:$16 sps:$4 sm:$0xff]  }
 0x996   :  { %13265 = vst [vmem:[#allocation51_spill] sm:$0xff] %v12368_v30  ;;  %13266 = vst [vmem:[#allocation44_spill] sm:$0xff] %v12370_v28 }
 0x997   :  { %10492 = vtanh.f32 %v12215_v56 }
 0x9a4   :  { %v10493_v34 = vpop.eup %10492 }
 0x9a5   :  { %v5335_v38 = vmul.f32 %v10493_v34, %v10491_v5  ;;  %v12374_v5 = vld [vmem:[#allocation7 + $0x340] ss:$16 sps:$4 sm:$0xff]   ;;  %v12376_v34 = vld [vmem:[#allocation7 + $0x348] ss:$16 sps:$4 sm:$0xff]  }
 0x9a6   :  { %13267 = vst [vmem:[#allocation43_spill] sm:$0xff] %v12374_v5  ;;  %13268 = vst [vmem:[#allocation37_spill] sm:$0xff] %v12376_v34 }
 0x9a7   :  { %v5342_v39 = vpack.c.bf16 %v5335_v38, %v5335_v38  ;;  %v12380_v38 = vld [vmem:[#allocation7 + $0x324] ss:$16 sps:$4 sm:$0xff]  }
 0x9a8   :  { %13269 = vst [vmem:[#allocation52_spill] sm:$0xff] %v12380_v38 }
 0x9a9   :  { %5781 = vmatprep.mubr.bf16.mxu0 %v5342_v39  ;;  %5822 = vmatprep.mubr.bf16.mxu1 %v5342_v39  ;;  %v12382_v39 = vld [vmem:[#allocation7 + $0x32c] ss:$16 sps:$4 sm:$0xff]  }
 0x9aa   :  { %5782 = vmatmul.mubr.bf16.vlgmr.msra.gmra.mxu0 %v13254_v46  ;;  %5823 = vmatmul.mubr.bf16.vlgmr.msra.gmra.mxu1 %v13254_v46  ;;  %13270 = vst [vmem:[#allocation36_spill] sm:$0xff] %v12382_v39  ;;  %v12386_v46 = vld [vmem:[#allocation7 + $0x320] ss:$16 sps:$4 sm:$0xff]  }
 0x9ab   :  { %6269 = vmatpush1.bf16.msra.mxu0 %v12218_v43  ;;  %6310 = vmatpush1.bf16.msra.mxu1 %v12220_v27  ;;  %13271 = vst [vmem:[#allocation45_spill] sm:$0xff] %v12386_v46 }
 0x9ac   :  { %6270 = vmatprep.subr.bf16.mxu0 %v12226_v62  ;;  %6311 = vmatprep.subr.bf16.mxu1 %v12228_v47 }
 0x9af   :  { %6271 = vmatpush1.bf16.msra.mxu0 %v12230_v48  ;;  %6312 = vmatpush1.bf16.msra.mxu1 %v12232_v49 }
 0x9b0   :  { %6272 = vmatprep.subr.bf16.mxu0 %v12238_v51  ;;  %6313 = vmatprep.subr.bf16.mxu1 %v12240_v52 }
 0x9b3   :  { %6273 = vmatpush1.bf16.msra.mxu0 %v12242_v53  ;;  %6314 = vmatpush1.bf16.msra.mxu1 %v12244_v55 }
 0x9b4   :  { %6274 = vmatprep.subr.bf16.mxu0 %v12250_v60  ;;  %6315 = vmatprep.subr.bf16.mxu1 %v12252_v57 }
 0x9b7   :  { %6275 = vmatpush1.bf16.msra.mxu0 %v12254_v61  ;;  %6316 = vmatpush1.bf16.msra.mxu1 %v12256_v63 }
 0x9b8   :  { %6276 = vmatprep.subr.bf16.mxu0 %v12262_v0  ;;  %6317 = vmatprep.subr.bf16.mxu1 %v12264_v2 }
 0x9bb   :  { %6277 = vmatpush1.bf16.msra.mxu0 %v12266_v54  ;;  %6318 = vmatpush1.bf16.msra.mxu1 %v12268_v4 }
 0x9bc   :  { %6278 = vmatprep.subr.bf16.mxu0 %v12274_v7  ;;  %6319 = vmatprep.subr.bf16.mxu1 %v12276_v10 }
 0x9bf   :  { %6279 = vmatpush1.bf16.msra.mxu0 %v12278_v12  ;;  %6320 = vmatpush1.bf16.msra.mxu1 %v12280_v19 }
 0x9c0   :  { %6280 = vmatprep.subr.bf16.mxu0 %v12286_v37  ;;  %6321 = vmatprep.subr.bf16.mxu1 %v12288_v23 }
 0x9c3   :  { %6281 = vmatpush1.bf16.msra.mxu0 %v12290_v14  ;;  %6322 = vmatpush1.bf16.msra.mxu1 %v12292_v9 }
 0x9c4   :  { %6282 = vmatprep.subr.bf16.mxu0 %v12298_v50  ;;  %6323 = vmatprep.subr.bf16.mxu1 %v12300_v18 }
 0x9c7   :  { %6283 = vmatpush1.bf16.msra.mxu0 %v12302_v32  ;;  %6324 = vmatpush1.bf16.msra.mxu1 %v12304_v44 }
 0x9c8   :  { %6284 = vmatprep.subr.bf16.mxu0 %v12310_v58  ;;  %6325 = vmatprep.subr.bf16.mxu1 %v12312_v41 }
 0x9cb   :  { %6285 = vmatpush2.bf16.msra.mxu0 %v12314_v6  ;;  %6326 = vmatpush2.bf16.msra.mxu1 %v12316_v29 }
 0x9cc   :  { %6286 = vmatprep.subr.bf16.mxu0 %v12322_v8  ;;  %6327 = vmatprep.subr.bf16.mxu1 %v12324_v35 }
 0x9cf   :  { %6287 = vmatpush2.bf16.msra.mxu0 %v12326_v21  ;;  %6328 = vmatpush2.bf16.msra.mxu1 %v12328_v24 }
 0x9d0   :  { %6288 = vmatprep.subr.bf16.mxu0 %v12334_v11  ;;  %6329 = vmatprep.subr.bf16.mxu1 %v12336_v31 }
 0x9d3   :  { %6289 = vmatpush2.bf16.msra.mxu0 %v12338_v22  ;;  %6330 = vmatpush2.bf16.msra.mxu1 %v12340_v25 }
 0x9d4   :  { %6290 = vmatprep.subr.bf16.mxu0 %v12344_v1  ;;  %6331 = vmatprep.subr.bf16.mxu1 %v12352_v3 }
 0x9d7   :  { %6291 = vmatpush2.bf16.msra.mxu0 %v12348_v20  ;;  %6332 = vmatpush2.bf16.msra.mxu1 %v12350_v33 }
 0x9d8   :  { %6292 = vmatprep.subr.bf16.mxu0 %v12355_v17  ;;  %6333 = vmatprep.subr.bf16.mxu1 %v12357_v40 }
 0x9db   :  { %6293 = vmatpush2.bf16.msra.mxu0 %v12362_v59  ;;  %6334 = vmatpush2.bf16.msra.mxu1 %v12364_v26  ;;  %v12388_v59 = vld [vmem:[#allocation7 + $0x328] ss:$16 sps:$4 sm:$0xff]   ;;  %v12392_v26 = vld [vmem:[#allocation7 + $0x304] ss:$16 sps:$4 sm:$0xff]  }
 0x9dc   :  { %6294 = vmatprep.subr.bf16.mxu0 %v12368_v30  ;;  %6335 = vmatprep.subr.bf16.mxu1 %v12370_v28  ;;  %13272 = vst [vmem:[#allocation38_spill] sm:$0xff] %v12388_v59  ;;  %13273 = vst [vmem:[#allocation53_spill] sm:$0xff] %v12392_v26  ;;  %v12394_v30 = vld [vmem:[#allocation7 + $0x30c] ss:$16 sps:$4 sm:$0xff]   ;;  %v12398_v28 = vld [vmem:[#allocation7 + $0x300] ss:$16 sps:$4 sm:$0xff]  }
 0x9dd   :  { %13274 = vst [vmem:[#allocation39_spill] sm:$0xff] %v12394_v30  ;;  %13275 = vst [vmem:[#allocation47_spill] sm:$0xff] %v12398_v28 }
 0x9df   :  { %6295 = vmatpush2.bf16.msra.mxu0 %v12374_v5  ;;  %6336 = vmatpush2.bf16.msra.mxu1 %v12376_v34  ;;  %v12400_v5 = vld [vmem:[#allocation7 + $0x308] ss:$16 sps:$4 sm:$0xff]  }
 0x9e0   :  { %6296 = vmatprep.subr.bf16.mxu0 %v12380_v38  ;;  %6337 = vmatprep.subr.bf16.mxu1 %v12382_v39  ;;  %13276 = vst [vmem:[#allocation41_spill] sm:$0xff] %v12400_v5  ;;  %v5407_v39 = vld [vmem:[#allocation9 + $0x4] sm:$0xf] }
 0x9e3   :  { %6297 = vmatpush2.bf16.msra.mxu0 %v12386_v46  ;;  %6338 = vmatpush2.bf16.msra.mxu1 %v12388_v59  ;;  %v5412_v46 = vrot.slane %v5407_v39, %v13223_v45  ;;  %v5416_v59 = vrot.slane %v5407_v39, %v13224_v36  ;;  %v5420_v45 = vrot.slane %v5407_v39, %v13226_v13 }
 0x9e4   :  { %6298 = vmatprep.subr.bf16.mxu0 %v12392_v26  ;;  %6339 = vmatprep.subr.bf16.mxu1 %v12394_v30 }
 0x9e7   :  { %6299 = vmatpush2.bf16.msra.mxu0 %v12398_v28  ;;  %6340 = vmatpush2.bf16.msra.mxu1 %v12400_v5 }
 0x9e8   :  { %6787 = vmatprep.subr.bf16.mxu0 %v12204_v15  ;;  %6828 = vmatprep.subr.bf16.mxu1 %v12206_v16  ;;  %v5424_v16 = vrot.slane %v5407_v39, %v13225_v42  ;;  %v13283_v39 = vld [vmem:[#allocation48_spill] sm:$0xff] }
 0xa6a   :  { %v5783_v38 = vpop.f32.mrf.mxu0  ;;  %v5824_v34 = vpop.f32.mrf.mxu1 }
 0xa6b   :  { %v5784_v40 = vadd.f32 %v5783_v38, %v5412_v46  ;;  %v5825_v22 = vadd.f32 %v5824_v34, %v5420_v45  ;;  %v13282_v34 = vld [vmem:[#allocation40_spill] sm:$0xff] }
 0xa6c   :  { %v5785_v17 = vpop.f32.mrf.mxu0  ;;  %v5826_v26 = vpop.f32.mrf.mxu1 }
 0xa6d   :  { %v9356_v33 = vmul.f32 -1.442695, %v5784_v40  ;;  %v5786_v30 = vadd.f32 %v5785_v17, %v5416_v59  ;;  %v5827_v1 = vadd.f32 %v5826_v26, %v5424_v16 }
 0xa6e   :  { %v5787_v20 = vpop.f32.mrf.mxu0  ;;  %v5828_v28 = vpop.f32.mrf.mxu1 }
 0xa6f   :  { %10494 = vpow2.f32 %v9356_v33  ;;  %v9357_v5 = vmul.f32 -1.442695, %v5786_v30  ;;  %v9358_v36 = vmul.f32 -1.442695, %v5827_v1  ;;  %v13279_v30 = vld [vmem:[#allocation33_spill] sm:$0xff]  ;;  %v13280_v28 = vld [vmem:[#allocation31_spill] sm:$0xff] }
 0xa70   :  { %v5788_v3 = vpop.f32.mrf.mxu0  ;;  %v5829_v15 = vpop.f32.mrf.mxu1 }
 0xa71   :  { %10496 = vpow2.f32 %v9357_v5  ;;  %v13281_v5 = vld [vmem:[#allocation34_spill] sm:$0xff] }
 0xa72   :  { %10498 = vpow2.f32 %v9358_v36 }
 0xa7c   :  { %v10495_v25 = vpop.eup %10494 }
 0xa7d   :  { %v5834_v38 = vadd.f32 1.0, %v10495_v25 }
 0xa7e   :  { %v10497_v46 = vpop.eup %10496 }
 0xa7f   :  { %10500 = vrcp.f32 %v5834_v38  ;;  %v5840_v17 = vadd.f32 1.0, %v10497_v46  ;;  %v10499_v20 = vpop.eup %10498  ;;  %v13284_v38 = vld [vmem:[#allocation49_spill] sm:$0xff]  ;;  %v13285_v46 = vld [vmem:[#allocation35_spill] sm:$0xff] }
 0xa80   :  { %10502 = vtanh.f32 %v5825_v22  ;;  %v5847_v40 = vadd.f32 1.0, %v10499_v20  ;;  %v13277_v22 = vld [vmem:[#allocation30_spill] sm:$0xff] }
 0xa81   :  { %10504 = vrcp.f32 %v5840_v17  ;;  %v13286_v17 = vld [vmem:[#allocation50_spill] sm:$0xff] }
 0xa82   :  { %10506 = vrcp.f32 %v5847_v40  ;;  %v13287_v20 = vld [vmem:[#allocation42_spill] sm:$0xff]  ;;  %v13291_v40 = vld [vmem:[#allocation37_spill] sm:$0xff] }
 0xa8c   :  { %v10501_v33 = vpop.eup %10500 }
 0xa8d   :  { %v10503_v3 = vpop.eup %10502 }
 0xa8e   :  { %v10505_v15 = vpop.eup %10504  ;;  %v5851_v59 = vmul.f32 %v10503_v3, %v10501_v33  ;;  %v13288_v33 = vld [vmem:[#allocation51_spill] sm:$0xff]  ;;  %v13289_v3 = vld [vmem:[#allocation44_spill] sm:$0xff] }
 0xa8f   :  { %v5850_v16 = vmul.f32 %v10505_v15, %v12215_v56  ;;  %v10507_v45 = vpop.eup %10506  ;;  %v13278_v56 = vld [vmem:[#allocation28_spill] sm:$0xff]  ;;  %v13290_v15 = vld [vmem:[#allocation43_spill] sm:$0xff] }
 0xa91   :  { %v12413_v26 = vadd.f32 %v5851_v59, %v5850_v16  ;;  %v13292_v59 = vld [vmem:[#allocation52_spill] sm:$0xff] }
 0xa92   :  { %v13293_v16 = vld [vmem:[#allocation36_spill] sm:$0xff] }
 0xa93   :  { %10508 = vtanh.f32 %v12413_v26 }
 0xaa0   :  { %v10509_v25 = vpop.eup %10508 }
 0xaa1   :  { %v5854_v36 = vmul.f32 %v10509_v25, %v10507_v45  ;;  %v13294_v45 = vld [vmem:[#allocation45_spill] sm:$0xff]  ;;  %v13295_v25 = vld [vmem:[#allocation38_spill] sm:$0xff] }
 0xaa3   :  { %v5861_v1 = vpack.c.bf16 %v5854_v36, %v5854_v36  ;;  %v13296_v36 = vld [vmem:[#allocation53_spill] sm:$0xff] }
 0xaa5   :  { %6300 = vmatprep.mubr.bf16.mxu0 %v5861_v1  ;;  %6341 = vmatprep.mubr.bf16.mxu1 %v5861_v1  ;;  %v13297_v1 = vld [vmem:[#allocation39_spill] sm:$0xff] }
 0xaa6   :  { %6301 = vmatmul.mubr.bf16.vlgmr.msra.gmra.mxu0 %v13277_v22  ;;  %6342 = vmatmul.mubr.bf16.vlgmr.msra.gmra.mxu1 %v13277_v22  ;;  %v13298_v22 = vld [vmem:[#allocation47_spill] sm:$0xff] }
 0xaa7   :  { %6788 = vmatpush1.bf16.msra.mxu0 %v12218_v43  ;;  %6829 = vmatpush1.bf16.msra.mxu1 %v12220_v27 }
 0xaa8   :  { %6789 = vmatprep.subr.bf16.mxu0 %v12226_v62  ;;  %6830 = vmatprep.subr.bf16.mxu1 %v12228_v47 }
 0xaab   :  { %6790 = vmatpush1.bf16.msra.mxu0 %v12230_v48  ;;  %6831 = vmatpush1.bf16.msra.mxu1 %v12232_v49 }
 0xaac   :  { %6791 = vmatprep.subr.bf16.mxu0 %v12238_v51  ;;  %6832 = vmatprep.subr.bf16.mxu1 %v12240_v52 }
 0xaaf   :  { %6792 = vmatpush1.bf16.msra.mxu0 %v12242_v53  ;;  %6833 = vmatpush1.bf16.msra.mxu1 %v12244_v55 }
 0xab0   :  { %6793 = vmatprep.subr.bf16.mxu0 %v12250_v60  ;;  %6834 = vmatprep.subr.bf16.mxu1 %v12252_v57 }
 0xab3   :  { %6794 = vmatpush1.bf16.msra.mxu0 %v12254_v61  ;;  %6835 = vmatpush1.bf16.msra.mxu1 %v12256_v63 }
 0xab4   :  { %6795 = vmatprep.subr.bf16.mxu0 %v12262_v0  ;;  %6836 = vmatprep.subr.bf16.mxu1 %v12264_v2 }
 0xab7   :  { %6796 = vmatpush1.bf16.msra.mxu0 %v12266_v54  ;;  %6837 = vmatpush1.bf16.msra.mxu1 %v12268_v4 }
 0xab8   :  { %6797 = vmatprep.subr.bf16.mxu0 %v12274_v7  ;;  %6838 = vmatprep.subr.bf16.mxu1 %v12276_v10 }
 0xabb   :  { %6798 = vmatpush1.bf16.msra.mxu0 %v12278_v12  ;;  %6839 = vmatpush1.bf16.msra.mxu1 %v12280_v19 }
 0xabc   :  { %6799 = vmatprep.subr.bf16.mxu0 %v12286_v37  ;;  %6840 = vmatprep.subr.bf16.mxu1 %v12288_v23 }
 0xabf   :  { %6800 = vmatpush1.bf16.msra.mxu0 %v12290_v14  ;;  %6841 = vmatpush1.bf16.msra.mxu1 %v12292_v9 }
 0xac0   :  { %6801 = vmatprep.subr.bf16.mxu0 %v12298_v50  ;;  %6842 = vmatprep.subr.bf16.mxu1 %v12300_v18 }
 0xac3   :  { %6802 = vmatpush1.bf16.msra.mxu0 %v12302_v32  ;;  %6843 = vmatpush1.bf16.msra.mxu1 %v12304_v44 }
 0xac4   :  { %6803 = vmatprep.subr.bf16.mxu0 %v12310_v58  ;;  %6844 = vmatprep.subr.bf16.mxu1 %v12312_v41 }
 0xac7   :  { %6804 = vmatpush2.bf16.msra.mxu0 %v12314_v6  ;;  %6845 = vmatpush2.bf16.msra.mxu1 %v12316_v29 }
 0xac8   :  { %6805 = vmatprep.subr.bf16.mxu0 %v12322_v8  ;;  %6846 = vmatprep.subr.bf16.mxu1 %v12324_v35 }
 0xacb   :  { %6806 = vmatpush2.bf16.msra.mxu0 %v12326_v21  ;;  %6847 = vmatpush2.bf16.msra.mxu1 %v12328_v24 }
 0xacc   :  { %6807 = vmatprep.subr.bf16.mxu0 %v12334_v11  ;;  %6848 = vmatprep.subr.bf16.mxu1 %v12336_v31 }
 0xacf   :  { %6808 = vmatpush2.bf16.msra.mxu0 %v13278_v56  ;;  %6849 = vmatpush2.bf16.msra.mxu1 %v13279_v30 }
 0xad0   :  { %6809 = vmatprep.subr.bf16.mxu0 %v13280_v28  ;;  %6850 = vmatprep.subr.bf16.mxu1 %v13281_v5 }
 0xad3   :  { %6810 = vmatpush2.bf16.msra.mxu0 %v13282_v34  ;;  %6851 = vmatpush2.bf16.msra.mxu1 %v13283_v39 }
 0xad4   :  { %6811 = vmatprep.subr.bf16.mxu0 %v13284_v38  ;;  %6852 = vmatprep.subr.bf16.mxu1 %v13285_v46 }
 0xad7   :  { %6812 = vmatpush2.bf16.msra.mxu0 %v13286_v17  ;;  %6853 = vmatpush2.bf16.msra.mxu1 %v13287_v20 }
 0xad8   :  { %6813 = vmatprep.subr.bf16.mxu0 %v13288_v33  ;;  %6854 = vmatprep.subr.bf16.mxu1 %v13289_v3  ;;  %v13299_v33 = vld [vmem:[#allocation41_spill] sm:$0xff] }
 0xad9   :  { %v13300_v3 = vld [vmem:[#allocation29_spill] sm:$0xff] }
 0xadb   :  { %6814 = vmatpush2.bf16.msra.mxu0 %v13290_v15  ;;  %6855 = vmatpush2.bf16.msra.mxu1 %v13291_v40  ;;  %v13301_v15 = vld [vmem:[#allocation27_spill] sm:$0xff] }
 0xadc   :  { %6815 = vmatprep.subr.bf16.mxu0 %v13292_v59  ;;  %6856 = vmatprep.subr.bf16.mxu1 %v13293_v16  ;;  %v5926_v40 = vld [vmem:[#allocation9 + $0x4] sm:$0xf]  ;;  %v13302_v59 = vld [vmem:[#allocation25_spill] sm:$0xff]  ;;  %v13303_v16 = vld [vmem:[#allocation26_spill] sm:$0xff] }
 0xadd   :  { %v5931_v20 = vrot.slane %v5926_v40, %v13302_v59  ;;  %v5935_v17 = vrot.slane %v5926_v40, %v13303_v16  ;;  %v5939_v59 = vrot.slane %v5926_v40, %v13226_v13 }
 0xadf   :  { %6816 = vmatpush2.bf16.msra.mxu0 %v13294_v45  ;;  %6857 = vmatpush2.bf16.msra.mxu1 %v13295_v25 }
 0xae0   :  { %6817 = vmatprep.subr.bf16.mxu0 %v13296_v36  ;;  %6858 = vmatprep.subr.bf16.mxu1 %v13297_v1 }
 0xae3   :  { %6818 = vmatpush2.bf16.msra.mxu0 %v13298_v22  ;;  %6859 = vmatpush2.bf16.msra.mxu1 %v13299_v33 }
 0xae4   :  { %7306 = vmatprep.subr.bf16.mxu0 %v13300_v3  ;;  %7347 = vmatprep.subr.bf16.mxu1 %v13301_v15  ;;  %v5943_v15 = vrot.slane %v5926_v40, %v13225_v42 }
 0xb66   :  { %v6302_v45 = vpop.f32.mrf.mxu0  ;;  %v6343_v46 = vpop.f32.mrf.mxu1 }
 0xb67   :  { %v6303_v25 = vadd.f32 %v6302_v45, %v5931_v20  ;;  %v6344_v56 = vadd.f32 %v6343_v46, %v5939_v59 }
 0xb68   :  { %v6304_v38 = vpop.f32.mrf.mxu0  ;;  %v6345_v36 = vpop.f32.mrf.mxu1 }
 0xb69   :  { %v9423_v39 = vmul.f32 -1.442695, %v6303_v25  ;;  %v6305_v1 = vadd.f32 %v6304_v38, %v5935_v17  ;;  %v6346_v28 = vadd.f32 %v6345_v36, %v5943_v15 }
 0xb6a   :  { %v6306_v34 = vpop.f32.mrf.mxu0  ;;  %v6347_v22 = vpop.f32.mrf.mxu1 }
 0xb6b   :  { %10510 = vpow2.f32 %v9423_v39  ;;  %v9424_v33 = vmul.f32 -1.442695, %v6305_v1  ;;  %v9425_v16 = vmul.f32 -1.442695, %v6346_v28 }
 0xb6c   :  { %v6307_v5 = vpop.f32.mrf.mxu0  ;;  %v6348_v3 = vpop.f32.mrf.mxu1 }
 0xb6d   :  { %10512 = vpow2.f32 %v9424_v33 }
 0xb6e   :  { %10514 = vpow2.f32 %v9425_v16 }
 0xb78   :  { %v10511_v30 = vpop.eup %10510 }
 0xb79   :  { %v6353_v20 = vadd.f32 1.0, %v10511_v30 }
 0xb7a   :  { %v10513_v45 = vpop.eup %10512 }
 0xb7b   :  { %10516 = vrcp.f32 %v6353_v20  ;;  %v6359_v38 = vadd.f32 1.0, %v10513_v45  ;;  %v10515_v34 = vpop.eup %10514 }
 0xb7c   :  { %10518 = vtanh.f32 %v6344_v56  ;;  %v6366_v33 = vadd.f32 1.0, %v10515_v34  ;;  %v13304_v56 = vld [vmem:[#allocation32_spill] sm:$0xff] }
 0xb7d   :  { %10520 = vrcp.f32 %v6359_v38 }
 0xb7e   :  { %10522 = vrcp.f32 %v6366_v33 }
 0xb88   :  { %v10517_v39 = vpop.eup %10516 }
 0xb89   :  { %v10519_v5 = vpop.eup %10518 }
 0xb8a   :  { %v10521_v17 = vpop.eup %10520  ;;  %v6370_v25 = vmul.f32 %v10519_v5, %v10517_v39 }
 0xb8b   :  { %v6369_v36 = vmul.f32 %v10521_v17, %v12413_v26  ;;  %v10523_v30 = vpop.eup %10522 }
 0xb8d   :  { %v12487_v1 = vadd.f32 %v6370_v25, %v6369_v36 }
 0xb8f   :  { %10524 = vtanh.f32 %v12487_v1 }
 0xb9c   :  { %v10525_v28 = vpop.eup %10524 }
 0xb9d   :  { %v6373_v46 = vmul.f32 %v10525_v28, %v10523_v30 }
 0xb9f   :  { %v6380_v40 = vpack.c.bf16 %v6373_v46, %v6373_v46 }
 0xba1   :  { %6819 = vmatprep.mubr.bf16.mxu0 %v6380_v40  ;;  %6860 = vmatprep.mubr.bf16.mxu1 %v6380_v40 }
 0xba2   :  { %6820 = vmatmul.mubr.bf16.vlgmr.msra.gmra.mxu0 %v13304_v56  ;;  %6861 = vmatmul.mubr.bf16.vlgmr.msra.gmra.mxu1 %v13304_v56 }
 0xba3   :  { %7307 = vmatpush1.bf16.msra.mxu0 %v12218_v43  ;;  %7348 = vmatpush1.bf16.msra.mxu1 %v12220_v27  ;;  %v13305_v43 = vld [vmem:[#allocation28_spill] sm:$0xff]  ;;  %v13306_v27 = vld [vmem:[#allocation33_spill] sm:$0xff] }
 0xba4   :  { %7308 = vmatprep.subr.bf16.mxu0 %v12226_v62  ;;  %7349 = vmatprep.subr.bf16.mxu1 %v12228_v47  ;;  %v13307_v62 = vld [vmem:[#allocation31_spill] sm:$0xff]  ;;  %v13308_v47 = vld [vmem:[#allocation34_spill] sm:$0xff] }
 0xba7   :  { %7309 = vmatpush1.bf16.msra.mxu0 %v12230_v48  ;;  %7350 = vmatpush1.bf16.msra.mxu1 %v12232_v49  ;;  %v13309_v48 = vld [vmem:[#allocation40_spill] sm:$0xff] }
 0xba8   :  { %7310 = vmatprep.subr.bf16.mxu0 %v12238_v51  ;;  %7351 = vmatprep.subr.bf16.mxu1 %v12240_v52  ;;  %v13310_v49 = vld [vmem:[#allocation48_spill] sm:$0xff]  ;;  %v13311_v51 = vld [vmem:[#allocation49_spill] sm:$0xff]  ;;  %v13312_v52 = vld [vmem:[#allocation35_spill] sm:$0xff] }
 0xbab   :  { %7311 = vmatpush1.bf16.msra.mxu0 %v12242_v53  ;;  %7352 = vmatpush1.bf16.msra.mxu1 %v12244_v55  ;;  %v13313_v53 = vld [vmem:[#allocation50_spill] sm:$0xff] }
 0xbac   :  { %7312 = vmatprep.subr.bf16.mxu0 %v12250_v60  ;;  %7353 = vmatprep.subr.bf16.mxu1 %v12252_v57  ;;  %v13314_v55 = vld [vmem:[#allocation42_spill] sm:$0xff]  ;;  %v13315_v60 = vld [vmem:[#allocation51_spill] sm:$0xff]  ;;  %v13316_v57 = vld [vmem:[#allocation44_spill] sm:$0xff] }
 0xbaf   :  { %7313 = vmatpush1.bf16.msra.mxu0 %v12254_v61  ;;  %7354 = vmatpush1.bf16.msra.mxu1 %v12256_v63  ;;  %v13317_v61 = vld [vmem:[#allocation43_spill] sm:$0xff]  ;;  %v13318_v63 = vld [vmem:[#allocation37_spill] sm:$0xff] }
 0xbb0   :  { %7314 = vmatprep.subr.bf16.mxu0 %v12262_v0  ;;  %7355 = vmatprep.subr.bf16.mxu1 %v12264_v2  ;;  %v13319_v0 = vld [vmem:[#allocation52_spill] sm:$0xff] }
 0xbb1   :  { %v13320_v2 = vld [vmem:[#allocation36_spill] sm:$0xff] }
 0xbb3   :  { %7315 = vmatpush1.bf16.msra.mxu0 %v12266_v54  ;;  %7356 = vmatpush1.bf16.msra.mxu1 %v12268_v4  ;;  %v13321_v54 = vld [vmem:[#allocation45_spill] sm:$0xff]  ;;  %v13322_v4 = vld [vmem:[#allocation38_spill] sm:$0xff] }
 0xbb4   :  { %7316 = vmatprep.subr.bf16.mxu0 %v12274_v7  ;;  %7357 = vmatprep.subr.bf16.mxu1 %v12276_v10  ;;  %v13323_v7 = vld [vmem:[#allocation53_spill] sm:$0xff]  ;;  %v13324_v10 = vld [vmem:[#allocation39_spill] sm:$0xff] }
 0xbb7   :  { %7317 = vmatpush1.bf16.msra.mxu0 %v12278_v12  ;;  %7358 = vmatpush1.bf16.msra.mxu1 %v12280_v19  ;;  %v13325_v12 = vld [vmem:[#allocation47_spill] sm:$0xff]  ;;  %v13326_v19 = vld [vmem:[#allocation41_spill] sm:$0xff] }
 0xbb8   :  { %7318 = vmatprep.subr.bf16.mxu0 %v12286_v37  ;;  %7359 = vmatprep.subr.bf16.mxu1 %v12288_v23  ;;  %v12554_v37 = vld [vmem:[#allocation7 + $0x2e4] ss:$16 sps:$4 sm:$0xff]   ;;  %v12556_v23 = vld [vmem:[#allocation7 + $0x2ec] ss:$16 sps:$4 sm:$0xff]  }
 0xbbb   :  { %7319 = vmatpush1.bf16.msra.mxu0 %v12290_v14  ;;  %7360 = vmatpush1.bf16.msra.mxu1 %v12292_v9  ;;  %v6445_v14 = vld [vmem:[#allocation9 + $0x4] sm:$0xf]  ;;  %v13327_v9 = vld [vmem:[#allocation25_spill] sm:$0xff] }
 0xbbc   :  { %7320 = vmatprep.subr.bf16.mxu0 %v12298_v50  ;;  %7361 = vmatprep.subr.bf16.mxu1 %v12300_v18  ;;  %v6450_v50 = vrot.slane %v6445_v14, %v13327_v9  ;;  %v13328_v18 = vld [vmem:[#allocation26_spill] sm:$0xff]  ;;  %v6462_v59 = vrot.slane %v6445_v14, %v13225_v42  ;;  %v6458_v22 = vrot.slane %v6445_v14, %v13226_v13 }
 0xbbf   :  { %7321 = vmatpush1.bf16.msra.mxu0 %v12302_v32  ;;  %7362 = vmatpush1.bf16.msra.mxu1 %v12304_v44  ;;  %v6454_v32 = vrot.slane %v6445_v14, %v13328_v18  ;;  %v12630_v14 = vld [vmem:[#allocation7 + $0x248] ss:$16 sps:$4 sm:$0xff]  }
 0xbc0   :  { %7322 = vmatprep.subr.bf16.mxu0 %v12310_v58  ;;  %7363 = vmatprep.subr.bf16.mxu1 %v12312_v41 }
 0xbc3   :  { %7323 = vmatpush2.bf16.msra.mxu0 %v12314_v6  ;;  %7364 = vmatpush2.bf16.msra.mxu1 %v12316_v29 }
 0xbc4   :  { %7324 = vmatprep.subr.bf16.mxu0 %v12322_v8  ;;  %7365 = vmatprep.subr.bf16.mxu1 %v12324_v35 }
 0xbc7   :  { %7325 = vmatpush2.bf16.msra.mxu0 %v12326_v21  ;;  %7366 = vmatpush2.bf16.msra.mxu1 %v12328_v24 }
 0xbc8   :  { %7326 = vmatprep.subr.bf16.mxu0 %v12334_v11  ;;  %7367 = vmatprep.subr.bf16.mxu1 %v12336_v31 }
 0xbcb   :  { %7327 = vmatpush2.bf16.msra.mxu0 %v13305_v43  ;;  %7368 = vmatpush2.bf16.msra.mxu1 %v13306_v27  ;;  %v12568_v27 = vld [vmem:[#allocation7 + $0x2e0] ss:$16 sps:$4 sm:$0xff]  }
 0xbcc   :  { %7328 = vmatprep.subr.bf16.mxu0 %v13307_v62  ;;  %7369 = vmatprep.subr.bf16.mxu1 %v13308_v47  ;;  %v12570_v62 = vld [vmem:[#allocation7 + $0x2e8] ss:$16 sps:$4 sm:$0xff]  }
 0xbcd   :  { %v13329_v47 = vld [vmem:[#allocation56_spill] sm:$0xff] }
 0xbcf   :  { %7329 = vmatpush2.bf16.msra.mxu0 %v13309_v48  ;;  %7370 = vmatpush2.bf16.msra.mxu1 %v13310_v49  ;;  %v12578_v48 = vld [vmem:[#allocation7 + $0x2cc] ss:$16 sps:$4 sm:$0xff]   ;;  %v12580_v49 = vld [vmem:[#allocation7 + $0x2c0] ss:$16 sps:$4 sm:$0xff]  }
 0xbd0   :  { %7330 = vmatprep.subr.bf16.mxu0 %v13311_v51  ;;  %7371 = vmatprep.subr.bf16.mxu1 %v13312_v52  ;;  %v12582_v51 = vld [vmem:[#allocation7 + $0x2c8] ss:$16 sps:$4 sm:$0xff]   ;;  %v12588_v52 = vld [vmem:[#allocation7 + $0x2a4] ss:$16 sps:$4 sm:$0xff]  }
 0xbd3   :  { %7331 = vmatpush2.bf16.msra.mxu0 %v13313_v53  ;;  %7372 = vmatpush2.bf16.msra.mxu1 %v13314_v55  ;;  %v12590_v53 = vld [vmem:[#allocation7 + $0x2ac] ss:$16 sps:$4 sm:$0xff]   ;;  %v12592_v55 = vld [vmem:[#allocation7 + $0x2a0] ss:$16 sps:$4 sm:$0xff]  }
 0xbd4   :  { %7332 = vmatprep.subr.bf16.mxu0 %v13315_v60  ;;  %7373 = vmatprep.subr.bf16.mxu1 %v13316_v57  ;;  %v12594_v60 = vld [vmem:[#allocation7 + $0x2a8] ss:$16 sps:$4 sm:$0xff]   ;;  %v12600_v57 = vld [vmem:[#allocation7 + $0x284] ss:$16 sps:$4 sm:$0xff]  }
 0xbd7   :  { %7333 = vmatpush2.bf16.msra.mxu0 %v13317_v61  ;;  %7374 = vmatpush2.bf16.msra.mxu1 %v13318_v63  ;;  %v12602_v61 = vld [vmem:[#allocation7 + $0x28c] ss:$16 sps:$4 sm:$0xff]   ;;  %v12604_v63 = vld [vmem:[#allocation7 + $0x280] ss:$16 sps:$4 sm:$0xff]  }
 0xbd8   :  { %7334 = vmatprep.subr.bf16.mxu0 %v13319_v0  ;;  %7375 = vmatprep.subr.bf16.mxu1 %v13320_v2  ;;  %v12606_v0 = vld [vmem:[#allocation7 + $0x288] ss:$16 sps:$4 sm:$0xff]   ;;  %v12612_v2 = vld [vmem:[#allocation7 + $0x264] ss:$16 sps:$4 sm:$0xff]  }
 0xbdb   :  { %7335 = vmatpush2.bf16.msra.mxu0 %v13321_v54  ;;  %7376 = vmatpush2.bf16.msra.mxu1 %v13322_v4  ;;  %v12614_v54 = vld [vmem:[#allocation7 + $0x26c] ss:$16 sps:$4 sm:$0xff]   ;;  %v12616_v4 = vld [vmem:[#allocation7 + $0x260] ss:$16 sps:$4 sm:$0xff]  }
 0xbdc   :  { %7336 = vmatprep.subr.bf16.mxu0 %v13323_v7  ;;  %7377 = vmatprep.subr.bf16.mxu1 %v13324_v10  ;;  %v12618_v7 = vld [vmem:[#allocation7 + $0x268] ss:$16 sps:$4 sm:$0xff]   ;;  %v12624_v10 = vld [vmem:[#allocation7 + $0x244] ss:$16 sps:$4 sm:$0xff]  }
 0xbdf   :  { %7337 = vmatpush2.bf16.msra.mxu0 %v13325_v12  ;;  %7378 = vmatpush2.bf16.msra.mxu1 %v13326_v19  ;;  %v12626_v12 = vld [vmem:[#allocation7 + $0x24c] ss:$16 sps:$4 sm:$0xff]   ;;  %v12628_v19 = vld [vmem:[#allocation7 + $0x240] ss:$16 sps:$4 sm:$0xff]  }
 0xbe0   :  { %7825 = vmatprep.subr.bf16.mxu0 %v12554_v37  ;;  %7866 = vmatprep.subr.bf16.mxu1 %v12556_v23 }
 0xc62   :  { %v6821_v44 = vpop.f32.mrf.mxu0  ;;  %v6862_v58 = vpop.f32.mrf.mxu1 }
 0xc63   :  { %v6822_v41 = vadd.f32 %v6821_v44, %v6450_v50  ;;  %v6863_v20 = vadd.f32 %v6862_v58, %v6458_v22  ;;  %v12636_v50 = vld [vmem:[#allocation7 + $0x224] ss:$16 sps:$4 sm:$0xff]   ;;  %v12640_v44 = vld [vmem:[#allocation7 + $0x220] ss:$16 sps:$4 sm:$0xff]   ;;  %v12642_v58 = vld [vmem:[#allocation7 + $0x228] ss:$16 sps:$4 sm:$0xff]  }
 0xc64   :  { %v6823_v6 = vpop.f32.mrf.mxu0  ;;  %v6864_v29 = vpop.f32.mrf.mxu1  ;;  %v12684_v22 = vld [vmem:[#allocation7 + $0x3a4] ss:$16 sps:$4 sm:$0xff]  }
 0xc65   :  { %v9490_v8 = vmul.f32 -1.442695, %v6822_v41  ;;  %v6824_v35 = vadd.f32 %v6823_v6, %v6454_v32  ;;  %v6865_v16 = vadd.f32 %v6864_v29, %v6462_v59  ;;  %v12638_v32 = vld [vmem:[#allocation7 + $0x22c] ss:$16 sps:$4 sm:$0xff]   ;;  %v12648_v41 = vld [vmem:[#allocation7 + $0x204] ss:$16 sps:$4 sm:$0xff]  }
 0xc66   :  { %v6825_v21 = vpop.f32.mrf.mxu0  ;;  %v6866_v24 = vpop.f32.mrf.mxu1  ;;  %v12650_v6 = vld [vmem:[#allocation7 + $0x20c] ss:$16 sps:$4 sm:$0xff]   ;;  %v12652_v29 = vld [vmem:[#allocation7 + $0x200] ss:$16 sps:$4 sm:$0xff]  }
 0xc67   :  { %10526 = vpow2.f32 %v9490_v8  ;;  %v9491_v11 = vmul.f32 -1.442695, %v6824_v35  ;;  %v9492_v3 = vmul.f32 -1.442695, %v6865_v16  ;;  %v12654_v8 = vld [vmem:[#allocation7 + $0x208] ss:$16 sps:$4 sm:$0xff]  }
 0xc68   :  { %v6826_v31 = vpop.f32.mrf.mxu0  ;;  %v6867_v26 = vpop.f32.mrf.mxu1  ;;  %v12660_v35 = vld [vmem:[#allocation7 + $0x3e4] ss:$16 sps:$4 sm:$0xff]   ;;  %v12662_v21 = vld [vmem:[#allocation7 + $0x3ec] ss:$16 sps:$4 sm:$0xff]   ;;  %v12664_v24 = vld [vmem:[#allocation7 + $0x3e0] ss:$16 sps:$4 sm:$0xff]  }
 0xc69   :  { %10528 = vpow2.f32 %v9491_v11  ;;  %v12666_v11 = vld [vmem:[#allocation7 + $0x3e8] ss:$16 sps:$4 sm:$0xff]   ;;  %v12672_v31 = vld [vmem:[#allocation7 + $0x3c4] ss:$16 sps:$4 sm:$0xff]   ;;  %v12674_v26 = vld [vmem:[#allocation7 + $0x3cc] ss:$16 sps:$4 sm:$0xff]  }
 0xc6a   :  { %10530 = vpow2.f32 %v9492_v3  ;;  %v12676_v59 = vld [vmem:[#allocation7 + $0x3c0] ss:$16 sps:$4 sm:$0xff]   ;;  %v12678_v16 = vld [vmem:[#allocation7 + $0x3c8] ss:$16 sps:$4 sm:$0xff]   ;;  %v12686_v3 = vld [vmem:[#allocation7 + $0x3ac] ss:$16 sps:$4 sm:$0xff]  }
 0xc74   :  { %v10527_v15 = vpop.eup %10526 }
 0xc75   :  { %v6872_v45 = vadd.f32 1.0, %v10527_v15  ;;  %v12688_v15 = vld [vmem:[#allocation7 + $0x3a0] ss:$16 sps:$4 sm:$0xff]  }
 0xc76   :  { %v10529_v38 = vpop.eup %10528  ;;  %13330 = vst [vmem:[#allocation54_spill] sm:$0xff] %v12688_v15 }
 0xc77   :  { %10532 = vrcp.f32 %v6872_v45  ;;  %v6878_v34 = vadd.f32 1.0, %v10529_v38  ;;  %v10531_v39 = vpop.eup %10530  ;;  %v12694_v45 = vld [vmem:[#allocation7 + $0x384] ss:$16 sps:$4 sm:$0xff]   ;;  %v12698_v38 = vld [vmem:[#allocation7 + $0x380] ss:$16 sps:$4 sm:$0xff]  }
 0xc78   :  { %10534 = vtanh.f32 %v6863_v20  ;;  %v6885_v25 = vadd.f32 1.0, %v10531_v39  ;;  %v12690_v20 = vld [vmem:[#allocation7 + $0x3a8] ss:$16 sps:$4 sm:$0xff]   ;;  %13332 = vst [vmem:[#allocation58_spill] sm:$0xff] %v12694_v45  ;;  %13333 = vst [vmem:[#allocation59_spill] sm:$0xff] %v12698_v38 }
 0xc79   :  { %10536 = vrcp.f32 %v6878_v34  ;;  %13331 = vst [vmem:[#allocation57_spill] sm:$0xff] %v12690_v20  ;;  %v12700_v34 = vld [vmem:[#allocation7 + $0x388] ss:$16 sps:$4 sm:$0xff]   ;;  %v12702_v39 = vld [vmem:[#allocation7 + $0x38c] ss:$16 sps:$4 sm:$0xff]  }
 0xc7a   :  { %10538 = vrcp.f32 %v6885_v25  ;;  %13334 = vst [vmem:[#allocation55_spill] sm:$0xff] %v12700_v34  ;;  %13335 = vst [vmem:[#allocation30_spill] sm:$0xff] %v12702_v39  ;;  %v12714_v25 = vld [vmem:[#allocation7 + $0x368] ss:$16 sps:$4 sm:$0xff]  }
 0xc7b   :  { %13339 = vst [vmem:[#allocation28_spill] sm:$0xff] %v12714_v25 }
 0xc84   :  { %v10533_v5 = vpop.eup %10532 }
 0xc85   :  { %v10535_v17 = vpop.eup %10534 }
 0xc86   :  { %v10537_v33 = vpop.eup %10536  ;;  %v6889_v36 = vmul.f32 %v10535_v17, %v10533_v5  ;;  %v12705_v5 = vld [vmem:[#allocation7 + $0x364] ss:$16 sps:$4 sm:$0xff]   ;;  %v12707_v17 = vld [vmem:[#allocation7 + $0x36c] ss:$16 sps:$4 sm:$0xff]  }
 0xc87   :  { %v6888_v30 = vmul.f32 %v10537_v33, %v12487_v1  ;;  %v10539_v46 = vpop.eup %10538  ;;  %v12576_v1 = vld [vmem:[#allocation7 + $0x2c4] ss:$16 sps:$4 sm:$0xff]   ;;  %13336 = vst [vmem:[#allocation29_spill] sm:$0xff] %v12705_v5  ;;  %13337 = vst [vmem:[#allocation27_spill] sm:$0xff] %v12707_v17  ;;  %v12712_v33 = vld [vmem:[#allocation7 + $0x360] ss:$16 sps:$4 sm:$0xff]  }
 0xc88   :  { %13338 = vst [vmem:[#allocation32_spill] sm:$0xff] %v12712_v33 }
 0xc89   :  { %v12565_v28 = vadd.f32 %v6889_v36, %v6888_v30  ;;  %v12718_v36 = vld [vmem:[#allocation7 + $0x344] ss:$16 sps:$4 sm:$0xff]   ;;  %v12720_v30 = vld [vmem:[#allocation7 + $0x34c] ss:$16 sps:$4 sm:$0xff]  }
 0xc8a   :  { %13340 = vst [vmem:[#allocation33_spill] sm:$0xff] %v12718_v36  ;;  %13341 = vst [vmem:[#allocation31_spill] sm:$0xff] %v12720_v30 }
 0xc8b   :  { %10540 = vtanh.f32 %v12565_v28 }
 0xc98   :  { %v10541_v40 = vpop.eup %10540 }
 0xc99   :  { %v6892_v56 = vmul.f32 %v10541_v40, %v10539_v46  ;;  %v12724_v46 = vld [vmem:[#allocation7 + $0x340] ss:$16 sps:$4 sm:$0xff]   ;;  %v12726_v40 = vld [vmem:[#allocation7 + $0x348] ss:$16 sps:$4 sm:$0xff]  }
 0xc9a   :  { %13342 = vst [vmem:[#allocation34_spill] sm:$0xff] %v12724_v46  ;;  %13343 = vst [vmem:[#allocation40_spill] sm:$0xff] %v12726_v40 }
 0xc9b   :  { %v6899_v43 = vpack.c.bf16 %v6892_v56, %v6892_v56  ;;  %v12730_v56 = vld [vmem:[#allocation7 + $0x324] ss:$16 sps:$4 sm:$0xff]  }
 0xc9c   :  { %13344 = vst [vmem:[#allocation48_spill] sm:$0xff] %v12730_v56 }
 0xc9d   :  { %7338 = vmatprep.mubr.bf16.mxu0 %v6899_v43  ;;  %7379 = vmatprep.mubr.bf16.mxu1 %v6899_v43  ;;  %v12732_v43 = vld [vmem:[#allocation7 + $0x32c] ss:$16 sps:$4 sm:$0xff]  }
 0xc9e   :  { %7339 = vmatmul.mubr.bf16.vlgmr.msra.gmra.mxu0 %v13329_v47  ;;  %7380 = vmatmul.mubr.bf16.vlgmr.msra.gmra.mxu1 %v13329_v47  ;;  %13345 = vst [vmem:[#allocation49_spill] sm:$0xff] %v12732_v43  ;;  %v12736_v47 = vld [vmem:[#allocation7 + $0x320] ss:$16 sps:$4 sm:$0xff]  }
 0xc9f   :  { %7826 = vmatpush1.bf16.msra.mxu0 %v12568_v27  ;;  %7867 = vmatpush1.bf16.msra.mxu1 %v12570_v62  ;;  %13346 = vst [vmem:[#allocation35_spill] sm:$0xff] %v12736_v47 }
 0xca0   :  { %7827 = vmatprep.subr.bf16.mxu0 %v12576_v1  ;;  %7868 = vmatprep.subr.bf16.mxu1 %v12578_v48 }
 0xca3   :  { %7828 = vmatpush1.bf16.msra.mxu0 %v12580_v49  ;;  %7869 = vmatpush1.bf16.msra.mxu1 %v12582_v51 }
 0xca4   :  { %7829 = vmatprep.subr.bf16.mxu0 %v12588_v52  ;;  %7870 = vmatprep.subr.bf16.mxu1 %v12590_v53 }
 0xca7   :  { %7830 = vmatpush1.bf16.msra.mxu0 %v12592_v55  ;;  %7871 = vmatpush1.bf16.msra.mxu1 %v12594_v60 }
 0xca8   :  { %7831 = vmatprep.subr.bf16.mxu0 %v12600_v57  ;;  %7872 = vmatprep.subr.bf16.mxu1 %v12602_v61 }
 0xcab   :  { %7832 = vmatpush1.bf16.msra.mxu0 %v12604_v63  ;;  %7873 = vmatpush1.bf16.msra.mxu1 %v12606_v0 }
 0xcac   :  { %7833 = vmatprep.subr.bf16.mxu0 %v12612_v2  ;;  %7874 = vmatprep.subr.bf16.mxu1 %v12614_v54 }
 0xcaf   :  { %7834 = vmatpush1.bf16.msra.mxu0 %v12616_v4  ;;  %7875 = vmatpush1.bf16.msra.mxu1 %v12618_v7 }
 0xcb0   :  { %7835 = vmatprep.subr.bf16.mxu0 %v12624_v10  ;;  %7876 = vmatprep.subr.bf16.mxu1 %v12626_v12 }
 0xcb3   :  { %7836 = vmatpush1.bf16.msra.mxu0 %v12628_v19  ;;  %7877 = vmatpush1.bf16.msra.mxu1 %v12630_v14 }
 0xcb4   :  { %7837 = vmatprep.subr.bf16.mxu0 %v12636_v50  ;;  %7878 = vmatprep.subr.bf16.mxu1 %v12638_v32 }
 0xcb7   :  { %7838 = vmatpush1.bf16.msra.mxu0 %v12640_v44  ;;  %7879 = vmatpush1.bf16.msra.mxu1 %v12642_v58 }
 0xcb8   :  { %7839 = vmatprep.subr.bf16.mxu0 %v12648_v41  ;;  %7880 = vmatprep.subr.bf16.mxu1 %v12650_v6 }
 0xcbb   :  { %7840 = vmatpush1.bf16.msra.mxu0 %v12652_v29  ;;  %7881 = vmatpush1.bf16.msra.mxu1 %v12654_v8 }
 0xcbc   :  { %7841 = vmatprep.subr.bf16.mxu0 %v12660_v35  ;;  %7882 = vmatprep.subr.bf16.mxu1 %v12662_v21 }
 0xcbf   :  { %7842 = vmatpush2.bf16.msra.mxu0 %v12664_v24  ;;  %7883 = vmatpush2.bf16.msra.mxu1 %v12666_v11 }
 0xcc0   :  { %7843 = vmatprep.subr.bf16.mxu0 %v12672_v31  ;;  %7884 = vmatprep.subr.bf16.mxu1 %v12674_v26 }
 0xcc3   :  { %7844 = vmatpush2.bf16.msra.mxu0 %v12676_v59  ;;  %7885 = vmatpush2.bf16.msra.mxu1 %v12678_v16 }
 0xcc4   :  { %7845 = vmatprep.subr.bf16.mxu0 %v12684_v22  ;;  %7886 = vmatprep.subr.bf16.mxu1 %v12686_v3 }
 0xcc7   :  { %7846 = vmatpush2.bf16.msra.mxu0 %v12688_v15  ;;  %7887 = vmatpush2.bf16.msra.mxu1 %v12690_v20 }
 0xcc8   :  { %7847 = vmatprep.subr.bf16.mxu0 %v12694_v45  ;;  %7888 = vmatprep.subr.bf16.mxu1 %v12702_v39 }
 0xccb   :  { %7848 = vmatpush2.bf16.msra.mxu0 %v12698_v38  ;;  %7889 = vmatpush2.bf16.msra.mxu1 %v12700_v34 }
 0xccc   :  { %7849 = vmatprep.subr.bf16.mxu0 %v12705_v5  ;;  %7890 = vmatprep.subr.bf16.mxu1 %v12707_v17 }
 0xccf   :  { %7850 = vmatpush2.bf16.msra.mxu0 %v12712_v33  ;;  %7891 = vmatpush2.bf16.msra.mxu1 %v12714_v25  ;;  %v12738_v33 = vld [vmem:[#allocation7 + $0x328] ss:$16 sps:$4 sm:$0xff]   ;;  %v12742_v25 = vld [vmem:[#allocation7 + $0x304] ss:$16 sps:$4 sm:$0xff]  }
 0xcd0   :  { %7851 = vmatprep.subr.bf16.mxu0 %v12718_v36  ;;  %7892 = vmatprep.subr.bf16.mxu1 %v12720_v30  ;;  %13347 = vst [vmem:[#allocation50_spill] sm:$0xff] %v12738_v33  ;;  %13348 = vst [vmem:[#allocation42_spill] sm:$0xff] %v12742_v25  ;;  %v12744_v36 = vld [vmem:[#allocation7 + $0x30c] ss:$16 sps:$4 sm:$0xff]   ;;  %v12748_v30 = vld [vmem:[#allocation7 + $0x300] ss:$16 sps:$4 sm:$0xff]  }
 0xcd1   :  { %13349 = vst [vmem:[#allocation51_spill] sm:$0xff] %v12744_v36  ;;  %13350 = vst [vmem:[#allocation44_spill] sm:$0xff] %v12748_v30 }
 0xcd3   :  { %7852 = vmatpush2.bf16.msra.mxu0 %v12724_v46  ;;  %7893 = vmatpush2.bf16.msra.mxu1 %v12726_v40  ;;  %v12750_v46 = vld [vmem:[#allocation7 + $0x308] ss:$16 sps:$4 sm:$0xff]  }
 0xcd4   :  { %7853 = vmatprep.subr.bf16.mxu0 %v12730_v56  ;;  %7894 = vmatprep.subr.bf16.mxu1 %v12732_v43  ;;  %13351 = vst [vmem:[#allocation43_spill] sm:$0xff] %v12750_v46  ;;  %v6964_v43 = vld [vmem:[#allocation9 + $0x4] sm:$0xf] }
 0xcd7   :  { %7854 = vmatpush2.bf16.msra.mxu0 %v12736_v47  ;;  %7895 = vmatpush2.bf16.msra.mxu1 %v12738_v33  ;;  %v6969_v47 = vrot.slane %v6964_v43, %v13327_v9  ;;  %v6973_v33 = vrot.slane %v6964_v43, %v13328_v18  ;;  %v6977_v9 = vrot.slane %v6964_v43, %v13226_v13 }
 0xcd8   :  { %7855 = vmatprep.subr.bf16.mxu0 %v12742_v25  ;;  %7896 = vmatprep.subr.bf16.mxu1 %v12744_v36 }
 0xcdb   :  { %7856 = vmatpush2.bf16.msra.mxu0 %v12748_v30  ;;  %7897 = vmatpush2.bf16.msra.mxu1 %v12750_v46 }
 0xcdc   :  { %8344 = vmatprep.subr.bf16.mxu0 %v12554_v37  ;;  %8385 = vmatprep.subr.bf16.mxu1 %v12556_v23  ;;  %v6981_v23 = vrot.slane %v6964_v43, %v13225_v42 }
 0xd5e   :  { %v7340_v56 = vpop.f32.mrf.mxu0  ;;  %v7381_v40 = vpop.f32.mrf.mxu1 }
 0xd5f   :  { %v7341_v17 = vadd.f32 %v7340_v56, %v6969_v47  ;;  %v7382_v15 = vadd.f32 %v7381_v40, %v6977_v9 }
 0xd60   :  { %v7342_v5 = vpop.f32.mrf.mxu0  ;;  %v7383_v25 = vpop.f32.mrf.mxu1 }
 0xd61   :  { %v9557_v34 = vmul.f32 -1.442695, %v7341_v17  ;;  %v7343_v36 = vadd.f32 %v7342_v5, %v6973_v33  ;;  %v7384_v45 = vadd.f32 %v7383_v25, %v6981_v23 }
 0xd62   :  { %v7344_v38 = vpop.f32.mrf.mxu0  ;;  %v7385_v30 = vpop.f32.mrf.mxu1 }
 0xd63   :  { %10542 = vpow2.f32 %v9557_v34  ;;  %v9558_v46 = vmul.f32 -1.442695, %v7343_v36  ;;  %v9559_v18 = vmul.f32 -1.442695, %v7384_v45 }
 0xd64   :  { %v7345_v39 = vpop.f32.mrf.mxu0  ;;  %v7386_v37 = vpop.f32.mrf.mxu1 }
 0xd65   :  { %10544 = vpow2.f32 %v9558_v46 }
 0xd66   :  { %10546 = vpow2.f32 %v9559_v18 }
 0xd70   :  { %v10543_v20 = vpop.eup %10542 }
 0xd71   :  { %v7391_v56 = vadd.f32 1.0, %v10543_v20 }
 0xd72   :  { %v10545_v47 = vpop.eup %10544 }
 0xd73   :  { %10548 = vrcp.f32 %v7391_v56  ;;  %v7397_v5 = vadd.f32 1.0, %v10545_v47  ;;  %v10547_v38 = vpop.eup %10546 }
 0xd74   :  { %10550 = vtanh.f32 %v7382_v15  ;;  %v7404_v33 = vadd.f32 1.0, %v10547_v38  ;;  %v13352_v15 = vld [vmem:[#allocation46_spill] sm:$0xff] }
 0xd75   :  { %10552 = vrcp.f32 %v7397_v5 }
 0xd76   :  { %10554 = vrcp.f32 %v7404_v33 }
 0xd80   :  { %v10549_v34 = vpop.eup %10548 }
 0xd81   :  { %v10551_v39 = vpop.eup %10550 }
 0xd82   :  { %v10553_v17 = vpop.eup %10552  ;;  %v7408_v36 = vmul.f32 %v10551_v39, %v10549_v34 }
 0xd83   :  { %v7407_v25 = vmul.f32 %v10553_v17, %v12565_v28  ;;  %v10555_v9 = vpop.eup %10554  ;;  %v13353_v28 = vld [vmem:[#allocation54_spill] sm:$0xff] }
 0xd85   :  { %v12763_v30 = vadd.f32 %v7408_v36, %v7407_v25 }
 0xd87   :  { %10556 = vtanh.f32 %v12763_v30 }
 0xd94   :  { %v10557_v20 = vpop.eup %10556 }
 0xd95   :  { %v7411_v18 = vmul.f32 %v10557_v20, %v10555_v9 }
 0xd97   :  { %v7418_v45 = vpack.c.bf16 %v7411_v18, %v7411_v18 }
 0xd99   :  { %7857 = vmatprep.mubr.bf16.mxu0 %v7418_v45  ;;  %7898 = vmatprep.mubr.bf16.mxu1 %v7418_v45 }
 0xd9a   :  { %7858 = vmatmul.mubr.bf16.vlgmr.msra.gmra.mxu0 %v13352_v15  ;;  %7899 = vmatmul.mubr.bf16.vlgmr.msra.gmra.mxu1 %v13352_v15  ;;  %v10651_v15 = vld [vmem:[#allocation16] sm:$0xff] }
 0xd9b   :  { %8345 = vmatpush1.bf16.msra.mxu0 %v12568_v27  ;;  %8386 = vmatpush1.bf16.msra.mxu1 %v12570_v62  ;;  %v13354_v27 = vld [vmem:[#allocation57_spill] sm:$0xff]  ;;  %v13355_v62 = vld [vmem:[#allocation58_spill] sm:$0xff] }
 0xd9c   :  { %8346 = vmatprep.subr.bf16.mxu0 %v12576_v1  ;;  %8387 = vmatprep.subr.bf16.mxu1 %v12578_v48  ;;  %v13356_v1 = vld [vmem:[#allocation30_spill] sm:$0xff]  ;;  %v13357_v48 = vld [vmem:[#allocation59_spill] sm:$0xff] }
 0xd9f   :  { %8347 = vmatpush1.bf16.msra.mxu0 %v12580_v49  ;;  %8388 = vmatpush1.bf16.msra.mxu1 %v12582_v51  ;;  %v13358_v49 = vld [vmem:[#allocation55_spill] sm:$0xff]  ;;  %v13359_v51 = vld [vmem:[#allocation29_spill] sm:$0xff] }
 0xda0   :  { %8348 = vmatprep.subr.bf16.mxu0 %v12588_v52  ;;  %8389 = vmatprep.subr.bf16.mxu1 %v12590_v53  ;;  %v13360_v52 = vld [vmem:[#allocation27_spill] sm:$0xff]  ;;  %v13361_v53 = vld [vmem:[#allocation32_spill] sm:$0xff] }
 0xda3   :  { %8349 = vmatpush1.bf16.msra.mxu0 %v12592_v55  ;;  %8390 = vmatpush1.bf16.msra.mxu1 %v12594_v60  ;;  %v13362_v55 = vld [vmem:[#allocation28_spill] sm:$0xff]  ;;  %v13363_v60 = vld [vmem:[#allocation33_spill] sm:$0xff] }
 0xda4   :  { %8350 = vmatprep.subr.bf16.mxu0 %v12600_v57  ;;  %8391 = vmatprep.subr.bf16.mxu1 %v12602_v61  ;;  %v13364_v57 = vld [vmem:[#allocation31_spill] sm:$0xff]  ;;  %v13365_v61 = vld [vmem:[#allocation34_spill] sm:$0xff] }
 0xda7   :  { %8351 = vmatpush1.bf16.msra.mxu0 %v12604_v63  ;;  %8392 = vmatpush1.bf16.msra.mxu1 %v12606_v0  ;;  %v13366_v63 = vld [vmem:[#allocation40_spill] sm:$0xff] }
 0xda8   :  { %8352 = vmatprep.subr.bf16.mxu0 %v12612_v2  ;;  %8393 = vmatprep.subr.bf16.mxu1 %v12614_v54  ;;  %v13367_v0 = vld [vmem:[#allocation48_spill] sm:$0xff]  ;;  %v13368_v2 = vld [vmem:[#allocation49_spill] sm:$0xff]  ;;  %v13369_v54 = vld [vmem:[#allocation35_spill] sm:$0xff] }
 0xdab   :  { %8353 = vmatpush1.bf16.msra.mxu0 %v12616_v4  ;;  %8394 = vmatpush1.bf16.msra.mxu1 %v12618_v7  ;;  %v13370_v4 = vld [vmem:[#allocation50_spill] sm:$0xff] }
 0xdac   :  { %8354 = vmatprep.subr.bf16.mxu0 %v12624_v10  ;;  %8395 = vmatprep.subr.bf16.mxu1 %v12626_v12  ;;  %v13371_v7 = vld [vmem:[#allocation42_spill] sm:$0xff]  ;;  %v13372_v10 = vld [vmem:[#allocation51_spill] sm:$0xff]  ;;  %v13373_v12 = vld [vmem:[#allocation44_spill] sm:$0xff] }
 0xdaf   :  { %8355 = vmatpush1.bf16.msra.mxu0 %v12628_v19  ;;  %8396 = vmatpush1.bf16.msra.mxu1 %v12630_v14  ;;  %v13374_v19 = vld [vmem:[#allocation43_spill] sm:$0xff] }
 0xdb0   :  { %8356 = vmatprep.subr.bf16.mxu0 %v12636_v50  ;;  %8397 = vmatprep.subr.bf16.mxu1 %v12638_v32  ;;  %v7483_v14 = vld [vmem:[#allocation9 + $0x4] sm:$0xf]  ;;  %v13375_v50 = vld [vmem:[#allocation25_spill] sm:$0xff] }
 0xdb1   :  { %v7488_v32 = vrot.slane %v7483_v14, %v13375_v50  ;;  %v7496_v46 = vrot.slane %v7483_v14, %v13226_v13 }
 0xdb3   :  { %8357 = vmatpush1.bf16.msra.mxu0 %v12640_v44  ;;  %8398 = vmatpush1.bf16.msra.mxu1 %v12642_v58  ;;  %v13376_v44 = vld [vmem:[#allocation26_spill] sm:$0xff] }
 0xdb4   :  { %8358 = vmatprep.subr.bf16.mxu0 %v12648_v41  ;;  %8399 = vmatprep.subr.bf16.mxu1 %v12650_v6  ;;  %v7492_v58 = vrot.slane %v7483_v14, %v13376_v44 }
 0xdb7   :  { %8359 = vmatpush1.bf16.msra.mxu0 %v12652_v29  ;;  %8400 = vmatpush1.bf16.msra.mxu1 %v12654_v8 }
 0xdb8   :  { %8360 = vmatprep.subr.bf16.mxu0 %v12660_v35  ;;  %8401 = vmatprep.subr.bf16.mxu1 %v12662_v21 }
 0xdbb   :  { %8361 = vmatpush2.bf16.msra.mxu0 %v12664_v24  ;;  %8402 = vmatpush2.bf16.msra.mxu1 %v12666_v11 }
 0xdbc   :  { %8362 = vmatprep.subr.bf16.mxu0 %v12672_v31  ;;  %8403 = vmatprep.subr.bf16.mxu1 %v12674_v26 }
 0xdbf   :  { %8363 = vmatpush2.bf16.msra.mxu0 %v12676_v59  ;;  %8404 = vmatpush2.bf16.msra.mxu1 %v12678_v16 }
 0xdc0   :  { %8364 = vmatprep.subr.bf16.mxu0 %v12684_v22  ;;  %8405 = vmatprep.subr.bf16.mxu1 %v12686_v3  ;;  %v7500_v22 = vrot.slane %v7483_v14, %v13225_v42 }
 0xdc3   :  { %8365 = vmatpush2.bf16.msra.mxu0 %v13353_v28  ;;  %8406 = vmatpush2.bf16.msra.mxu1 %v13354_v27  ;;  %v7936_v28 = vpack.c.bf16 %v10651_v15, %v10651_v15  ;;  %v10326_v27 = vld [vmem:[#allocation13 + $0x38] sm:$0xff]  }
 0xdc4   :  { %8366 = vmatprep.subr.bf16.mxu0 %v13355_v62  ;;  %8407 = vmatprep.subr.bf16.mxu1 %v13356_v1  ;;  %v10856_v62 = vmov 0.0   ;;  %v10328_v1 = vld [vmem:[#allocation13 + $0x28] sm:$0xff]  }
 0xdc7   :  { %8367 = vmatpush2.bf16.msra.mxu0 %v13357_v48  ;;  %8408 = vmatpush2.bf16.msra.mxu1 %v13358_v49  ;;  %v10329_v48 = vld [vmem:[#allocation13 + $0x20] sm:$0xff]   ;;  %v10330_v49 = vld [vmem:[#allocation13 + $0x18] sm:$0xff]  }
 0xdc8   :  { %8368 = vmatprep.subr.bf16.mxu0 %v13359_v51  ;;  %8409 = vmatprep.subr.bf16.mxu1 %v13360_v52  ;;  %v10331_v51 = vld [vmem:[#allocation13 + $0x10] sm:$0xff]   ;;  %v10332_v52 = vld [vmem:[#allocation13 + $0x8] sm:$0xff]  }
 0xdcb   :  { %8369 = vmatpush2.bf16.msra.mxu0 %v13361_v53  ;;  %8410 = vmatpush2.bf16.msra.mxu1 %v13362_v55  ;;  %v10333_v53 = vld [vmem:[#allocation13] sm:$0xff]   ;;  %v8002_v55 = vld [vmem:[#allocation9 + $0x4] sm:$0xf] }
 0xdcc   :  { %8370 = vmatprep.subr.bf16.mxu0 %v13363_v60  ;;  %8411 = vmatprep.subr.bf16.mxu1 %v13364_v57  ;;  %v8007_v60 = vrot.slane %v8002_v55, %v13375_v50  ;;  %v8011_v57 = vrot.slane %v8002_v55, %v13376_v44  ;;  %v8015_v50 = vrot.slane %v8002_v55, %v13226_v13 }
 0xdcf   :  { %8371 = vmatpush2.bf16.msra.mxu0 %v13365_v61  ;;  %8412 = vmatpush2.bf16.msra.mxu1 %v13366_v63 }
 0xdd0   :  { %8372 = vmatprep.subr.bf16.mxu0 %v13367_v0  ;;  %8413 = vmatprep.subr.bf16.mxu1 %v13368_v2 }
 0xdd3   :  { %8373 = vmatpush2.bf16.msra.mxu0 %v13369_v54  ;;  %8414 = vmatpush2.bf16.msra.mxu1 %v13370_v4 }
 0xdd4   :  { %8374 = vmatprep.subr.bf16.mxu0 %v13371_v7  ;;  %8415 = vmatprep.subr.bf16.mxu1 %v13372_v10 }
 0xdd7   :  { %8375 = vmatpush2.bf16.msra.mxu0 %v13373_v12  ;;  %8416 = vmatpush2.bf16.msra.mxu1 %v13374_v19 }
 0xdd8   :  { %9713 = vmatprep.subr.bf16.mxu0 %v10856_v62 }
 0xe5a   :  { %v7859_v41 = vpop.f32.mrf.mxu0  ;;  %v7900_v6 = vpop.f32.mrf.mxu1 }
 0xe5b   :  { %v7860_v29 = vadd.f32 %v7859_v41, %v7488_v32  ;;  %v7901_v37 = vadd.f32 %v7900_v6, %v7496_v46 }
 0xe5c   :  { %v7861_v8 = vpop.f32.mrf.mxu0  ;;  %v7902_v35 = vpop.f32.mrf.mxu1 }
 0xe5d   :  { %v9624_v21 = vmul.f32 -1.442695, %v7860_v29  ;;  %v7862_v24 = vadd.f32 %v7861_v8, %v7492_v58  ;;  %v7903_v3 = vadd.f32 %v7902_v35, %v7500_v22  ;;  %v8019_v58 = vrot.slane %v8002_v55, %v13225_v42 }
 0xe5e   :  { %v7863_v11 = vpop.f32.mrf.mxu0  ;;  %v7904_v31 = vpop.f32.mrf.mxu1 }
 0xe5f   :  { %10558 = vpow2.f32 %v9624_v21  ;;  %v9625_v26 = vmul.f32 -1.442695, %v7862_v24  ;;  %v9626_v40 = vmul.f32 -1.442695, %v7903_v3 }
 0xe60   :  { %v7864_v59 = vpop.f32.mrf.mxu0  ;;  %v7905_v16 = vpop.f32.mrf.mxu1 }
 0xe61   :  { %10560 = vpow2.f32 %v9625_v26 }
 0xe62   :  { %10562 = vpow2.f32 %v9626_v40 }
 0xe6c   :  { %v10559_v43 = vpop.eup %10558 }
 0xe6d   :  { %v7910_v23 = vadd.f32 1.0, %v10559_v43 }
 0xe6e   :  { %v10561_v56 = vpop.eup %10560 }
 0xe6f   :  { %10564 = vrcp.f32 %v7910_v23  ;;  %v7916_v47 = vadd.f32 1.0, %v10561_v56  ;;  %v10563_v5 = vpop.eup %10562 }
 0xe70   :  { %10566 = vtanh.f32 %v7901_v37  ;;  %v7923_v17 = vadd.f32 1.0, %v10563_v5 }
 0xe71   :  { %10568 = vrcp.f32 %v7916_v47 }
 0xe72   :  { %10570 = vrcp.f32 %v7923_v17 }
 0xe7c   :  { %v10565_v38 = vpop.eup %10564 }
 0xe7d   :  { %v10567_v34 = vpop.eup %10566 }
 0xe7e   :  { %v10569_v39 = vpop.eup %10568  ;;  %v7927_v33 = vmul.f32 %v10567_v34, %v10565_v38 }
 0xe7f   :  { %v7926_v36 = vmul.f32 %v10569_v39, %v12763_v30  ;;  %v10571_v9 = vpop.eup %10570  ;;  %v10327_v30 = vld [vmem:[#allocation13 + $0x30] sm:$0xff]  }
 0xe81   :  { %v12835_v25 = vadd.f32 %v7927_v33, %v7926_v36 }
 0xe83   :  { %10572 = vtanh.f32 %v12835_v25 }
 0xe90   :  { %v10573_v20 = vpop.eup %10572 }
 0xe91   :  { %v7930_v18 = vmul.f32 %v10573_v20, %v10571_v9 }
 0xe93   :  { %v7937_v45 = vpack.c.bf16 %v7930_v18, %v7930_v18 }
 0xe95   :  { %8376 = vmatprep.mubr.bf16.mxu0 %v7937_v45  ;;  %8417 = vmatprep.mubr.bf16.mxu1 %v7937_v45 }
 0xe96   :  { %8377 = vmatmul.mubr.bf16.vlgmr.msra.gmra.mxu0 %v7936_v28  ;;  %8418 = vmatmul.mubr.bf16.vlgmr.msra.gmra.mxu1 %v7936_v28 }
 0xe97   :  { %9714 = vmatpush3.bf16.msra.mxu0 %v10326_v27  ;;  %9729 = vmatprep.mubr.msk.bf16.mxu0 %vm10857_vm0, %v10856_v62 }
 0xe98   :  { %9715 = vmatprep.subr.bf16.mxu0 %v10856_v62 }
 0xe9b   :  { %9716 = vmatpush3.bf16.msra.mxu0 %v10327_v30 }
 0xe9c   :  { %9717 = vmatprep.subr.bf16.mxu0 %v10856_v62 }
 0xe9f   :  { %9718 = vmatpush3.bf16.msra.mxu0 %v10328_v1 }
 0xea0   :  { %9719 = vmatprep.subr.bf16.mxu0 %v10856_v62 }
 0xea3   :  { %9720 = vmatpush3.bf16.msra.mxu0 %v10329_v48 }
 0xea4   :  { %9721 = vmatprep.subr.bf16.mxu0 %v10856_v62 }
 0xea7   :  { %9722 = vmatpush3.bf16.msra.mxu0 %v10330_v49 }
 0xea8   :  { %9723 = vmatprep.subr.bf16.mxu0 %v10856_v62 }
 0xeab   :  { %9724 = vmatpush3.bf16.msra.mxu0 %v10331_v51 }
 0xeac   :  { %9725 = vmatprep.subr.bf16.mxu0 %v10856_v62 }
 0xeaf   :  { %9726 = vmatpush3.bf16.msra.mxu0 %v10332_v52 }
 0xeb0   :  { %9727 = vmatprep.subr.bf16.mxu0 %v10856_v62 }
 0xeb3   :  { %9728 = vmatpush3.bf16.msra.mxu0 %v10333_v53 }
 0xf56   :  { %v8378_v61 = vpop.f32.mrf.mxu0  ;;  %v8419_v63 = vpop.f32.mrf.mxu1 }
 0xf57   :  { %v8379_v0 = vadd.f32 %v8378_v61, %v8007_v60  ;;  %v8420_v29 = vadd.f32 %v8419_v63, %v8015_v50 }
 0xf58   :  { %v8380_v2 = vpop.f32.mrf.mxu0  ;;  %v8421_v54 = vpop.f32.mrf.mxu1 }
 0xf59   :  { %v9691_v4 = vmul.f32 -1.442695, %v8379_v0  ;;  %v8381_v7 = vadd.f32 %v8380_v2, %v8011_v57  ;;  %v8422_v41 = vadd.f32 %v8421_v54, %v8019_v58 }
 0xf5a   :  { %v8382_v10 = vpop.f32.mrf.mxu0  ;;  %v8423_v12 = vpop.f32.mrf.mxu1 }
 0xf5b   :  { %10574 = vpow2.f32 %v9691_v4  ;;  %v9692_v19 = vmul.f32 -1.442695, %v8381_v7  ;;  %v9693_v44 = vmul.f32 -1.442695, %v8422_v41 }
 0xf5c   :  { %v8383_v14 = vpop.f32.mrf.mxu0  ;;  %v8424_v32 = vpop.f32.mrf.mxu1 }
 0xf5d   :  { %10576 = vpow2.f32 %v9692_v19 }
 0xf5e   :  { %10578 = vpow2.f32 %v9693_v44 }
 0xf68   :  { %v10575_v6 = vpop.eup %10574 }
 0xf69   :  { %v8429_v8 = vadd.f32 1.0, %v10575_v6 }
 0xf6a   :  { %v10577_v35 = vpop.eup %10576 }
 0xf6b   :  { %10580 = vrcp.f32 %v8429_v8  ;;  %v8435_v21 = vadd.f32 1.0, %v10577_v35  ;;  %v10579_v24 = vpop.eup %10578 }
 0xf6c   :  { %10582 = vtanh.f32 %v8420_v29  ;;  %v8442_v59 = vadd.f32 1.0, %v10579_v24 }
 0xf6d   :  { %10584 = vrcp.f32 %v8435_v21 }
 0xf6e   :  { %10586 = vrcp.f32 %v8442_v59 }
 0xf78   :  { %v10581_v11 = vpop.eup %10580 }
 0xf79   :  { %v10583_v31 = vpop.eup %10582 }
 0xf7a   :  { %v10585_v26 = vpop.eup %10584  ;;  %v8446_v16 = vmul.f32 %v10583_v31, %v10581_v11 }
 0xf7b   :  { %v8445_v42 = vmul.f32 %v10585_v26, %v12835_v25  ;;  %v10587_v13 = vpop.eup %10586 }
 0xf7d   :  { %v8447_v22 = vadd.f32 %v8446_v16, %v8445_v42 }
 0xf7f   :  { %8453 = vst [vmem:[#allocation18 + $0x8] sm:$0xff] %v8447_v22  ;;  %10588 = vtanh.f32 %v8447_v22 }
 0xf8c   :  { %v10589_v3 = vpop.eup %10588 }
 0xf8d   :  { %v8449_v46 = vmul.f32 %v10589_v3, %v10587_v13 }
 0xf8f   :  { %v8454_v40 = vpack.c.bf16 %v8449_v46, %v8449_v46  ;;  %8451 = vst [vmem:[#allocation16 + $0x8] sm:$0xff] %v8449_v46 }
 0xf91   :  { %9730 = vmatmul.mubr.bf16.vlgmr.msra.gmra.mxu0 %v8454_v40 }
 0xf92   :  { %10783 = shalt.err (!%p10780_p6)
}
 0xf93   :  { %8594 = dma.vmem_to_hbm [thread:$0]  %s8589_s5, 256, %s12869_s8, [#allocation17], %s10849_s21, %s10849_s21, %s10850_s22  }
 0xf94   :  { %s10859_s1 = smov [#allocation18]  }
 0xf95   :  { %s8600_s25 = sshll.u32 %s10859_s1, 4  ;;  %s8601_s25 = int_to_ptr.vmem [resolvable:$true] %s8600_s25 }
 0xf96   :  { %s10792_s26 = scalar_lea.vmem %s8601_s25, 256  ;;  %p10797_p8 = scmp.lt.s32.totalorder %s8601_s25, %s8601_s25 }
 0xf97   :  { %p10793_p7 = scmp.ne.s32.totalorder %s8601_s25, %s10792_s26  ;;  %p10798_p9 = scmp.lt.s32.totalorder %s10792_s26, %s10792_s26 }
 0xf99   :  { %p10799_p10 = por %p10798_p9, %p10797_p8 }
 0xf9b   :  { %p10800_p11 = pnand %p10799_p10, %p10793_p7 }
 0xf9d   :  { %10803 = shalt.err (!%p10800_p11)
}
 0xf9e   :  { %8606 = dma.vmem_to_hbm [thread:$0]  %s8601_s25, 256, %s12870_s9, [#allocation17], %s10849_s21, %s10849_s21, %s10850_s22  }
 0xf9f   :  { %v9694_v43 = vld [vmem:[%s12867_s6] ss:$0 sm:$0xff]  ;;  %s10860_s8 = smov [#allocation15]  }
 0xfa0   :  { %s8579_s30 = sshll.u32 %s10860_s8, 4  ;;  %s8580_s30 = int_to_ptr.vmem [resolvable:$true] %s8579_s30 }
 0xfa1   :  { %s10812_s9 = scalar_lea.vmem %s8580_s30, 128  ;;  %p10817_p13 = scmp.lt.s32.totalorder %s8580_s30, %s8580_s30 }
 0xfa2   :  { %p10813_p12 = scmp.ne.s32.totalorder %s8580_s30, %s10812_s9  ;;  %p10818_p0 = scmp.lt.s32.totalorder %s10812_s9, %s10812_s9 }
 0xfa4   :  { %p10819_p1 = por %p10818_p0, %p10817_p13 }
 0xfa6   :  { %p10820_p2 = pnand %p10819_p1, %p10813_p12 }
0x1051   :  { %v8560_v37 = vpop.f32.mrf.mxu0 }
0x1052   :  { %v8561_v23 = vadd.f32 %v9694_v43, %v8560_v37 }
0x1053   :  { %v9731_v56 = vpop.f32.mrf.mxu0 }
0x1054   :  { %v9703_v47 = vmul.f32 -1.442695, %v8561_v23 }
0x1055   :  { %v8563_v5 = vpop.f32.mrf.mxu0 }
0x1056   :  { %10590 = vpow2.f32 %v9703_v47 }
0x1057   :  { %v9732_v38 = vpop.f32.mrf.mxu0 }
0x1063   :  { %v10591_v34 = vpop.eup %10590 }
0x1064   :  { %v8569_v39 = vadd.f32 1.0, %v10591_v34 }
0x1066   :  { %10592 = vrcp.f32 %v8569_v39 }
0x1073   :  { %v10593_v17 = vpop.eup %10592 }
0x1074   :  { %8572 = vst [vmem:[#allocation15] sm:$0xff] %v10593_v17 }
0x1075   :  { %10823 = shalt.err (!%p10820_p2)
}
0x1076   :  { %8582 = dma.vmem_to_hbm [thread:$0]  %s8580_s30, 128, %s12868_s7, [#allocation6]  }
0x1077   :  { %10840 = dma.done.wait [#allocation6], 128  }
0x1078   :  { %10841 = vsyncadd [#allocation6], 4294967168 }
0x1079   :  { %10842 = dma.done.wait [#allocation17], 512  }
0x107a   :  { %10843 = vsyncadd [#allocation17], 4294966784 }
0x107b   :  { %8616 = vsyncpa [#allocation5], 1 }
0x107c   :  { %8617 = vsyncpa [#allocation8], 1 }
0x107d   :  { %8618 = vsyncpa [#allocation11], 1 }
0x107e   :  { %8619 = vsyncpa [#allocation14], 1 }
0x107f   :  { %8620 = vsyncpa [#allocation6], 1 }
0x1080   :  { %8621 = vsyncpa [#allocation17], 1 }

</bundles_post_ra>
